<compile_context>
chip_gen: v6e
topology: v6e:2x2x1
jax: 0.10.0
libtpu: 0.0.40
codegen_flags: <defaults>
</compile_context>

<pallas_src>
import jax
import jax.numpy as jnp
from jax.experimental import pallas as pl
from jax.experimental.pallas import tpu as pltpu


def _make_pa_kernel(H, W, tile_d, cblk):
    HW = H * W
    P = W + 1                    # lane padding: covers the +-1 (W) and +-W (H) shifts

    def kernel(w_ref, b_ref, x_ref, halo_ref, mask_ref, o_ref, xpad_ref):
        # w_ref   : (C*27,) f32 SMEM (scalar prefetch), index = c*27 + kd*9 + kh*3 + kw
        # b_ref   : (C,)    f32 SMEM (scalar prefetch)
        # x_ref   : (1, cblk, 1, tile_d, H*W)   this (n, c-block, d-tile) block
        # halo_ref: (1, cblk, 1, 2, H*W)        [plane before tile, plane after tile]
        # mask_ref: (2, H*W) f32                [valid lanes for dw=-1, dw=+1]
        # o_ref   : (1, cblk, 1, tile_d, H*W)
        # xpad_ref: (tile_d + 2, H*W + 2P) f32 VMEM scratch (padded working tile)
        cb = pl.program_id(1)

        # Only the two pad-lane strips need zeroing each step; the interior and
        # both halo rows are fully overwritten for every channel below.
        # (Do NOT convert this into "zero only at program_id==0": under megacore
        #  each core owns its own scratch and its first grid index is not 0.)
        xpad_ref[:, 0:P] = jnp.zeros((tile_d + 2, P), jnp.float32)
        xpad_ref[:, P + HW:HW + 2 * P] = jnp.zeros((tile_d + 2, P), jnp.float32)

        masks = mask_ref[...]
        mask_l = masks[0:1, :]                  # valid lanes for dw = -1 (w > 0)
        mask_r = masks[1:2, :]                  # valid lanes for dw = +1 (w < W-1)

        for cc in range(cblk):                  # static unroll over the channel block
            c = cb * cblk + cc                  # global channel id for SMEM taps/bias

            xf = x_ref[0, cc, 0].astype(jnp.float32)          # (tile_d, HW)
            halo = halo_ref[0, cc, 0].astype(jnp.float32)     # (2, HW)

            xpad_ref[1:tile_d + 1, P:P + HW] = xf
            xpad_ref[0:1, P:P + HW] = halo[0:1, :]
            xpad_ref[tile_d + 1:tile_d + 2, P:P + HW] = halo[1:2, :]
            xpad = xpad_ref[...]                              # (tile_d+2, HW+2P)

            acc = jnp.zeros((tile_d, HW), jnp.float32)
            for kw in range(3):
                dw = kw - 1
                part = jnp.zeros((tile_d, HW), jnp.float32)
                for kh in range(3):
                    dh = kh - 1
                    off = P + dh * W + dw
                    win = xpad[:, off:off + HW]               # one lane shift per (kh,kw)
                    for kd in range(3):
                        # single expression per tap (FMA-friendly where f32 FMA exists)
                        part = part + win[kd:kd + tile_d, :] * w_ref[c * 27 + kd * 9 + kh * 3 + kw]
                # Mask lanes where the flattened W-shift wrapped across a row.
                if dw == -1:
                    acc = acc + part * mask_l
                elif dw == 1:
                    acc = acc + part * mask_r
                else:
                    acc = acc + part

            # TODO(synk): if a bundle dump shows the vld/vst slots (not VALU)
            # binding for large tiles, restructure this 27-tap chain over
            # vreg-resident (8, <=512) sub-blocks; bf16 MACs (v6e/v7x) and an
            # approx-EUP sigmoid are further options pending a precision check.
            gate = jax.nn.sigmoid(acc + b_ref[c])
            o_ref[0, cc, 0] = (xf * gate).astype(o_ref.dtype)

    return kernel


def _vmem_limit_bytes():
    """Generation-aware scoped-VMEM budget (v7x has only 64 MiB physical VMEM)."""
    try:
        cap = int(pltpu.get_tpu_info().vmem_capacity_bytes)
    except Exception:
        cap = 64 * 1024 * 1024          # conservative (v7x-sized) fallback
    return min((cap * 3) // 4, 96 * 1024 * 1024)


def _choose_tiling(C, D, HW, block_cap_bytes):
    """Pick (tile_d, padded_D, cblk).

    Whole-D tiles + channel blocking when the per-channel volume is small,
    divisor D-tiles (multiple of 8) otherwise, and zero-padded D as a last
    resort instead of sublane-sparse tiny tiles.
    """
    elem_cap = max(HW, block_cap_bytes // 4)        # f32 elements per block
    cap_planes = max(1, elem_cap // HW)

    if D <= cap_planes:
        # Whole D in one tile; block channels to amortize per-step overhead.
        cblk_cap = max(1, min(32, elem_cap // (D * HW)))
        cblk = max(t for t in range(1, C + 1) if C % t == 0 and t <= cblk_cap)
        return D, D, cblk

    divs = [t for t in range(1, D + 1) if D % t == 0 and t <= cap_planes]
    mult8 = [t for t in divs if t % 8 == 0]
    tile_d = max(mult8) if mult8 else max(divs)
    if tile_d >= 8 or cap_planes < 8:
        return tile_d, D, 1
    # No decent divisor: pad D with zero planes (zeros are exactly the conv's
    # boundary padding and x*gate == 0 there; sliced off afterwards).
    tile_d = cap_planes - cap_planes % 8
    padded_d = -(-D // tile_d) * tile_d
    return tile_d, padded_d, 1


def pa_forward(x_ncdhw, weight_oidhw, bias, tile_d=None, cblk=None):
    """PA forward: x * sigmoid(depthwise_conv3d(x, k=3, pad=1, groups=C) + b).

    x_ncdhw:      (N, C, D, H, W)  PyTorch NCDHW layout, kept end-to-end
    weight_oidhw: (C, 1, 3, 3, 3)  PyTorch Conv3d weight (groups=C)
    bias:         (C,)
    """
    N, C, D, H, W = x_ncdhw.shape
    HW = H * W
    P = W + 1

    vmem_limit = _vmem_limit_bytes()
    # ~2x(in) + ~2x(out) double-buffered blocks + scratch + elementwise
    # temporaries stay well inside the scoped limit at this block size.
    block_cap = max(1 << 20, min(4 << 20, vmem_limit // 16))

    auto_tile_d, padded_d, auto_cblk = _choose_tiling(C, D, HW, block_cap)
    if tile_d is None:
        tile_d = auto_tile_d
    else:
        padded_d = -(-D // tile_d) * tile_d
    if cblk is None:
        cblk = auto_cblk if (tile_d == auto_tile_d and padded_d == D) else 1
    assert C % cblk == 0, "cblk must divide C"
    num_dt = padded_d // tile_d

    # Flattened, D-tiled view of x: contiguous reshape (no transpose); a padded
    # copy is only made in the no-good-divisor fallback.
    x_flat = x_ncdhw.reshape(N, C, D, HW)
    if padded_d != D:
        x_flat = jnp.pad(x_flat, ((0, 0), (0, 0), (0, padded_d - D), (0, 0)))
    x_t = x_flat.reshape(N, C, num_dt, tile_d, HW)

    # Tiny D-halo tensor: the plane just before / after each D-tile (zeros at
    # the volume boundary).  When num_dt == 1 it is identically zero, so skip
    # the concatenates (extra HBM passes) and pass one shared zero block.
    if num_dt == 1:
        halo = jnp.zeros((1, cblk, 1, 2, HW), x_ncdhw.dtype)
        halo_map = lambda n, cb, t, *_: (0, 0, 0, 0, 0)
    else:
        zero_plane = jnp.zeros((N, C, 1, 1, HW), x_ncdhw.dtype)
        last_planes = x_t[:, :, :, tile_d - 1:tile_d, :]
        first_planes = x_t[:, :, :, 0:1, :]
        halo_lo = jnp.concatenate([zero_plane, last_planes[:, :, :-1]], axis=2)
        halo_hi = jnp.concatenate([first_planes[:, :, 1:], zero_plane], axis=2)
        halo = jnp.concatenate([halo_lo, halo_hi], axis=3)      # (N, C, num_dt, 2, HW)
        halo_map = lambda n, cb, t, *_: (n, cb, t, 0, 0)

    # Per-channel taps / bias (SMEM scalars; 1-D to avoid 2-D SMEM padding),
    # plus host-precomputed W-boundary lane masks.
    w_taps = weight_oidhw.reshape(C * 27).astype(jnp.float32)
    b = bias.astype(jnp.float32)
    wcol = jnp.arange(HW, dtype=jnp.int32) % W
    masks = jnp.stack([(wcol > 0).astype(jnp.float32),
                       (wcol < W - 1).astype(jnp.float32)])     # (2, HW)

    kernel = _make_pa_kernel(H, W, tile_d, cblk)

    n_elem = N * C * D * HW
    cost = pl.CostEstimate(
        flops=56 * n_elem,
        transcendentals=n_elem,
        bytes_accessed=2 * x_ncdhw.size * x_ncdhw.dtype.itemsize
                       + halo.size * halo.dtype.itemsize)

    out = pl.pallas_call(
        kernel,
        out_shape=jax.ShapeDtypeStruct((N, C, num_dt, tile_d, HW), x_ncdhw.dtype),
        grid_spec=pltpu.PrefetchScalarGridSpec(
            num_scalar_prefetch=2,                               # taps + bias -> SMEM
            grid=(N, C // cblk, num_dt),
            in_specs=[
                pl.BlockSpec((1, cblk, 1, tile_d, HW),
                             lambda n, cb, t, *_: (n, cb, t, 0, 0)),
                pl.BlockSpec((1, cblk, 1, 2, HW), halo_map),
                pl.BlockSpec((2, HW), lambda n, cb, t, *_: (0, 0)),
            ],
            out_specs=pl.BlockSpec((1, cblk, 1, tile_d, HW),
                                   lambda n, cb, t, *_: (n, cb, t, 0, 0)),
            scratch_shapes=[pltpu.VMEM((tile_d + 2, HW + 2 * P), jnp.float32)],
        ),
        compiler_params=pltpu.CompilerParams(
            dimension_semantics=("parallel", "parallel", "parallel"),
            vmem_limit_bytes=vmem_limit,
        ),
        cost_estimate=cost,
    )(w_taps, b, x_t, halo, masks)

    out = out.reshape(N, C, padded_d, H, W)
    if padded_d != D:
        out = out[:, :, :D]
    return out


def pa_reference(x_ncdhw, weight_oidhw, bias):
    """Pure-JAX reference matching torch's Conv3d(dim, dim, 3, padding=1, groups=dim)."""
    C = x_ncdhw.shape[1]
    conv = jax.lax.conv_general_dilated(
        x_ncdhw, weight_oidhw,
        window_strides=(1, 1, 1),
        padding=((1, 1), (1, 1), (1, 1)),
        dimension_numbers=("NCDHW", "OIDHW", "NCDHW"),
        feature_group_count=C,
        precision=jax.lax.Precision.HIGHEST,
    ) + bias.reshape(1, C, 1, 1, 1)
    return x_ncdhw * jax.nn.sigmoid(conv)


if __name__ == "__main__":
    key = jax.random.PRNGKey(0)
    k_x, k_w, k_b, k_x2, k_w2, k_b2 = jax.random.split(key, 6)

    # Case 1: dim=4, even shapes.  Auto path = whole-D tile + channel blocking
    # (no halo build); explicit tile_d exercises the D-halo and channel-block paths.
    N, C, D, H, W = 2, 4, 16, 8, 8
    x = jax.random.normal(k_x, (N, C, D, H, W), dtype=jnp.float32)
    weight = jax.random.normal(k_w, (C, 1, 3, 3, 3), dtype=jnp.float32) * 0.1
    bias = jax.random.normal(k_b, (C,), dtype=jnp.float32) * 0.1

    ref = pa_reference(x, weight, bias)
    out_auto = pa_forward(x, weight, bias)                      # tile_d=D, cblk=C
    out_tiled = pa_forward(x, weight, bias, tile_d=8)           # 2 D-tiles, halo path
    out_cblk = pa_forward(x, weight, bias, tile_d=8, cblk=2)    # halo + channel block
    jax.block_until_ready((out_auto, out_tiled, out_cblk))

    for o in (out_auto, out_tiled, out_cblk):
        assert o.shape == (N, C, D, H, W)
        assert jnp.allclose(o, ref, atol=1e-5, rtol=1e-5), float(jnp.abs(o - ref).max())

    # Case 2: odd shapes + non-divisor tile_d (exercises the zero-padded D path).
    N2, C2, D2, H2, W2 = 1, 3, 10, 5, 7
    x2 = jax.random.normal(k_x2, (N2, C2, D2, H2, W2), dtype=jnp.float32)
    w2 = jax.random.normal(k_w2, (C2, 1, 3, 3, 3), dtype=jnp.float32) * 0.1
    b2 = jax.random.normal(k_b2, (C2,), dtype=jnp.float32) * 0.1

    ref2 = pa_reference(x2, w2, b2)
    out2a = pa_forward(x2, w2, b2)                # single D tile, cblk=3
    out2b = pa_forward(x2, w2, b2, tile_d=8)      # D padded 10 -> 16, 2 tiles
    jax.block_until_ready((out2a, out2b))
    for o in (out2a, out2b):
        assert o.shape == (N2, C2, D2, H2, W2)
        assert jnp.allclose(o, ref2, atol=1e-5, rtol=1e-5), float(jnp.abs(o - ref2).max())

    print("KERNEL_OK")
</pallas_src>

<mosaic_0001>
module attributes {stable_mosaic.version = 11 : i64} {
  func.func @kernel(%arg0: i32, %arg1: i32, %arg2: i32, %arg3: memref<108xf32, #tpu.memory_space<smem>>, %arg4: memref<4xf32, #tpu.memory_space<smem>>, %arg5: memref<1x4x1x16x64xf32, #tpu.memory_space<vmem>>, %arg6: memref<1x4x1x2x64xf32, #tpu.memory_space<vmem>>, %arg7: memref<2x64xf32, #tpu.memory_space<vmem>>, %arg8: memref<1x4x1x16x64xf32, #tpu.memory_space<vmem>>, %arg9: memref<18x82xf32, #tpu.memory_space<vmem>>) attributes {dimension_semantics = [#tpu.dimension_semantics<parallel>, #tpu.dimension_semantics<parallel>, #tpu.dimension_semantics<parallel>], iteration_bounds = array<i64: 2, 1, 1>, scalar_prefetch = 2 : i64, scratch_operands = 1 : i64, tpu.core_type = #tpu.core_type<tc>, window_params = [{transform_indices = @transform_0, window_bounds = array<i64: 1, 4, 1, 16, 64>}, {pipeline_mode = #tpu.pipeline_mode<synchronous>, transform_indices = @transform_1, window_bounds = array<i64: 1, 4, 1, 2, 64>}, {pipeline_mode = #tpu.pipeline_mode<synchronous>, transform_indices = @transform_2, window_bounds = array<i64: 2, 64>}, {transform_indices = @transform_3, window_bounds = array<i64: 1, 4, 1, 16, 64>}]} {
    %cst = arith.constant 0.000000e+00 : f32
    %0 = vector.broadcast %cst : f32 to vector<18x9xf32>
    %c0 = arith.constant 0 : index
    %c0_0 = arith.constant 0 : index
    %1 = vector.load %arg9[%c0, %c0_0] : memref<18x82xf32, #tpu.memory_space<vmem>>, vector<18x9xf32>
    tpu.vector_store %arg9[%c0, %c0_0], %0 {strides = array<i32>} : memref<18x82xf32, #tpu.memory_space<vmem>>, vector<18x9xf32>,
    %cst_1 = arith.constant 0.000000e+00 : f32
    %2 = vector.broadcast %cst_1 : f32 to vector<18x9xf32>
    %c0_2 = arith.constant 0 : index
    %c73 = arith.constant 73 : index
    %3 = vector.load %arg9[%c0_2, %c73] : memref<18x82xf32, #tpu.memory_space<vmem>>, vector<18x9xf32>
    tpu.vector_store %arg9[%c0_2, %c73], %2 {strides = array<i32>} : memref<18x82xf32, #tpu.memory_space<vmem>>, vector<18x9xf32>,
    %c0_3 = arith.constant 0 : index
    %c0_4 = arith.constant 0 : index
    %4 = vector.load %arg7[%c0_3, %c0_4] : memref<2x64xf32, #tpu.memory_space<vmem>>, vector<2x64xf32>
    %5 = vector.extract_strided_slice %4 {offsets = [0, 0], sizes = [1, 64], strides = [1, 1]} : vector<2x64xf32> to vector<1x64xf32>
    %6 = vector.extract_strided_slice %4 {offsets = [1, 0], sizes = [1, 64], strides = [1, 1]} : vector<2x64xf32> to vector<1x64xf32>
    %c4_i32 = arith.constant 4 : i32
    %7 = arith.muli %arg1, %c4_i32 : i32
    %c0_i32 = arith.constant 0 : i32
    %8 = arith.addi %7, %c0_i32 : i32
    %c0_5 = arith.constant 0 : index
    %c0_6 = arith.constant 0 : index
    %c0_7 = arith.constant 0 : index
    %c0_8 = arith.constant 0 : index
    %c0_9 = arith.constant 0 : index
    %9 = vector.load %arg5[%c0_5, %c0_6, %c0_7, %c0_8, %c0_9] : memref<1x4x1x16x64xf32, #tpu.memory_space<vmem>>, vector<1x1x1x16x64xf32>
    %10 = vector.shape_cast %9 : vector<1x1x1x16x64xf32> to vector<16x64xf32>
    %c0_10 = arith.constant 0 : index
    %c0_11 = arith.constant 0 : index
    %c0_12 = arith.constant 0 : index
    %c0_13 = arith.constant 0 : index
    %c0_14 = arith.constant 0 : index
    %11 = vector.load %arg6[%c0_10, %c0_11, %c0_12, %c0_13, %c0_14] : memref<1x4x1x2x64xf32, #tpu.memory_space<vmem>>, vector<1x1x1x2x64xf32>
    %12 = vector.shape_cast %11 : vector<1x1x1x2x64xf32> to vector<2x64xf32>
    %c1 = arith.constant 1 : index
    %c9 = arith.constant 9 : index
    %13 = vector.load %arg9[%c1, %c9] : memref<18x82xf32, #tpu.memory_space<vmem>>, vector<16x64xf32>
    tpu.vector_store %arg9[%c1, %c9], %10 {strides = array<i32>} : memref<18x82xf32, #tpu.memory_space<vmem>>, vector<16x64xf32>,
    %14 = vector.extract_strided_slice %12 {offsets = [0, 0], sizes = [1, 64], strides = [1, 1]} : vector<2x64xf32> to vector<1x64xf32>
    %c0_15 = arith.constant 0 : index
    %c9_16 = arith.constant 9 : index
    %15 = vector.load %arg9[%c0_15, %c9_16] : memref<18x82xf32, #tpu.memory_space<vmem>>, vector<1x64xf32>
    tpu.vector_store %arg9[%c0_15, %c9_16], %14 {strides = array<i32>} : memref<18x82xf32, #tpu.memory_space<vmem>>, vector<1x64xf32>,
    %16 = vector.extract_strided_slice %12 {offsets = [1, 0], sizes = [1, 64], strides = [1, 1]} : vector<2x64xf32> to vector<1x64xf32>
    %c17 = arith.constant 17 : index
    %c9_17 = arith.constant 9 : index
    %17 = vector.load %arg9[%c17, %c9_17] : memref<18x82xf32, #tpu.memory_space<vmem>>, vector<1x64xf32>
    tpu.vector_store %arg9[%c17, %c9_17], %16 {strides = array<i32>} : memref<18x82xf32, #tpu.memory_space<vmem>>, vector<1x64xf32>,
    %c0_18 = arith.constant 0 : index
    %c0_19 = arith.constant 0 : index
    %18 = vector.load %arg9[%c0_18, %c0_19] : memref<18x82xf32, #tpu.memory_space<vmem>>, vector<18x82xf32>
    %cst_20 = arith.constant 0.000000e+00 : f32
    %19 = vector.broadcast %cst_20 : f32 to vector<16x64xf32>
    %cst_21 = arith.constant 0.000000e+00 : f32
    %20 = vector.broadcast %cst_21 : f32 to vector<16x64xf32>
    %21 = vector.extract_strided_slice %18 {offsets = [0, 0], sizes = [18, 64], strides = [1, 1]} : vector<18x82xf32> to vector<18x64xf32>
    %22 = vector.extract_strided_slice %21 {offsets = [0, 0], sizes = [16, 64], strides = [1, 1]} : vector<18x64xf32> to vector<16x64xf32>
    %c27_i32 = arith.constant 27 : i32
    %23 = arith.muli %8, %c27_i32 : i32
    %c0_i32_22 = arith.constant 0 : i32
    %24 = arith.addi %23, %c0_i32_22 : i32
    %c0_i32_23 = arith.constant 0 : i32
    %25 = arith.addi %24, %c0_i32_23 : i32
    %c0_i32_24 = arith.constant 0 : i32
    %26 = arith.addi %25, %c0_i32_24 : i32
    %27 = arith.index_cast %26 : i32 to index
    %28 = memref.load %arg3[%27] : memref<108xf32, #tpu.memory_space<smem>>
    %29 = vector.broadcast %28 : f32 to vector<16x64xf32>
    %30 = arith.mulf %22, %29 : vector<16x64xf32>
    %31 = arith.addf %20, %30 : vector<16x64xf32>
    %32 = vector.extract_strided_slice %21 {offsets = [1, 0], sizes = [16, 64], strides = [1, 1]} : vector<18x64xf32> to vector<16x64xf32>
    %c27_i32_25 = arith.constant 27 : i32
    %33 = arith.muli %8, %c27_i32_25 : i32
    %c9_i32 = arith.constant 9 : i32
    %34 = arith.addi %33, %c9_i32 : i32
    %c0_i32_26 = arith.constant 0 : i32
    %35 = arith.addi %34, %c0_i32_26 : i32
    %c0_i32_27 = arith.constant 0 : i32
    %36 = arith.addi %35, %c0_i32_27 : i32
    %37 = arith.index_cast %36 : i32 to index
    %38 = memref.load %arg3[%37] : memref<108xf32, #tpu.memory_space<smem>>
    %39 = vector.broadcast %38 : f32 to vector<16x64xf32>
    %40 = arith.mulf %32, %39 : vector<16x64xf32>
    %41 = arith.addf %31, %40 : vector<16x64xf32>
    %42 = vector.extract_strided_slice %21 {offsets = [2, 0], sizes = [16, 64], strides = [1, 1]} : vector<18x64xf32> to vector<16x64xf32>
    %c27_i32_28 = arith.constant 27 : i32
    %43 = arith.muli %8, %c27_i32_28 : i32
    %c18_i32 = arith.constant 18 : i32
    %44 = arith.addi %43, %c18_i32 : i32
    %c0_i32_29 = arith.constant 0 : i32
    %45 = arith.addi %44, %c0_i32_29 : i32
    %c0_i32_30 = arith.constant 0 : i32
    %46 = arith.addi %45, %c0_i32_30 : i32
    %47 = arith.index_cast %46 : i32 to index
    %48 = memref.load %arg3[%47] : memref<108xf32, #tpu.memory_space<smem>>
    %49 = vector.broadcast %48 : f32 to vector<16x64xf32>
    %50 = arith.mulf %42, %49 : vector<16x64xf32>
    %51 = arith.addf %41, %50 : vector<16x64xf32>
    %52 = vector.extract_strided_slice %18 {offsets = [0, 8], sizes = [18, 64], strides = [1, 1]} : vector<18x82xf32> to vector<18x64xf32>
    %53 = vector.extract_strided_slice %52 {offsets = [0, 0], sizes = [16, 64], strides = [1, 1]} : vector<18x64xf32> to vector<16x64xf32>
    %c27_i32_31 = arith.constant 27 : i32
    %54 = arith.muli %8, %c27_i32_31 : i32
    %c0_i32_32 = arith.constant 0 : i32
    %55 = arith.addi %54, %c0_i32_32 : i32
    %c3_i32 = arith.constant 3 : i32
    %56 = arith.addi %55, %c3_i32 : i32
    %c0_i32_33 = arith.constant 0 : i32
    %57 = arith.addi %56, %c0_i32_33 : i32
    %58 = arith.index_cast %57 : i32 to index
    %59 = memref.load %arg3[%58] : memref<108xf32, #tpu.memory_space<smem>>
    %60 = vector.broadcast %59 : f32 to vector<16x64xf32>
    %61 = arith.mulf %53, %60 : vector<16x64xf32>
    %62 = arith.addf %51, %61 : vector<16x64xf32>
    %63 = vector.extract_strided_slice %52 {offsets = [1, 0], sizes = [16, 64], strides = [1, 1]} : vector<18x64xf32> to vector<16x64xf32>
    %c27_i32_34 = arith.constant 27 : i32
    %64 = arith.muli %8, %c27_i32_34 : i32
    %c9_i32_35 = arith.constant 9 : i32
    %65 = arith.addi %64, %c9_i32_35 : i32
    %c3_i32_36 = arith.constant 3 : i32
    %66 = arith.addi %65, %c3_i32_36 : i32
    %c0_i32_37 = arith.constant 0 : i32
    %67 = arith.addi %66, %c0_i32_37 : i32
    %68 = arith.index_cast %67 : i32 to index
    %69 = memref.load %arg3[%68] : memref<108xf32, #tpu.memory_space<smem>>
    %70 = vector.broadcast %69 : f32 to vector<16x64xf32>
    %71 = arith.mulf %63, %70 : vector<16x64xf32>
    %72 = arith.addf %62, %71 : vector<16x64xf32>
    %73 = vector.extract_strided_slice %52 {offsets = [2, 0], sizes = [16, 64], strides = [1, 1]} : vector<18x64xf32> to vector<16x64xf32>
    %c27_i32_38 = arith.constant 27 : i32
    %74 = arith.muli %8, %c27_i32_38 : i32
    %c18_i32_39 = arith.constant 18 : i32
    %75 = arith.addi %74, %c18_i32_39 : i32
    %c3_i32_40 = arith.constant 3 : i32
    %76 = arith.addi %75, %c3_i32_40 : i32
    %c0_i32_41 = arith.constant 0 : i32
    %77 = arith.addi %76, %c0_i32_41 : i32
    %78 = arith.index_cast %77 : i32 to index
    %79 = memref.load %arg3[%78] : memref<108xf32, #tpu.memory_space<smem>>
    %80 = vector.broadcast %79 : f32 to vector<16x64xf32>
    %81 = arith.mulf %73, %80 : vector<16x64xf32>
    %82 = arith.addf %72, %81 : vector<16x64xf32>
    %83 = vector.extract_strided_slice %18 {offsets = [0, 16], sizes = [18, 64], strides = [1, 1]} : vector<18x82xf32> to vector<18x64xf32>
    %84 = vector.extract_strided_slice %83 {offsets = [0, 0], sizes = [16, 64], strides = [1, 1]} : vector<18x64xf32> to vector<16x64xf32>
    %c27_i32_42 = arith.constant 27 : i32
    %85 = arith.muli %8, %c27_i32_42 : i32
    %c0_i32_43 = arith.constant 0 : i32
    %86 = arith.addi %85, %c0_i32_43 : i32
    %c6_i32 = arith.constant 6 : i32
    %87 = arith.addi %86, %c6_i32 : i32
    %c0_i32_44 = arith.constant 0 : i32
    %88 = arith.addi %87, %c0_i32_44 : i32
    %89 = arith.index_cast %88 : i32 to index
    %90 = memref.load %arg3[%89] : memref<108xf32, #tpu.memory_space<smem>>
    %91 = vector.broadcast %90 : f32 to vector<16x64xf32>
    %92 = arith.mulf %84, %91 : vector<16x64xf32>
    %93 = arith.addf %82, %92 : vector<16x64xf32>
    %94 = vector.extract_strided_slice %83 {offsets = [1, 0], sizes = [16, 64], strides = [1, 1]} : vector<18x64xf32> to vector<16x64xf32>
    %c27_i32_45 = arith.constant 27 : i32
    %95 = arith.muli %8, %c27_i32_45 : i32
    %c9_i32_46 = arith.constant 9 : i32
    %96 = arith.addi %95, %c9_i32_46 : i32
    %c6_i32_47 = arith.constant 6 : i32
    %97 = arith.addi %96, %c6_i32_47 : i32
    %c0_i32_48 = arith.constant 0 : i32
    %98 = arith.addi %97, %c0_i32_48 : i32
    %99 = arith.index_cast %98 : i32 to index
    %100 = memref.load %arg3[%99] : memref<108xf32, #tpu.memory_space<smem>>
    %101 = vector.broadcast %100 : f32 to vector<16x64xf32>
    %102 = arith.mulf %94, %101 : vector<16x64xf32>
    %103 = arith.addf %93, %102 : vector<16x64xf32>
    %104 = vector.extract_strided_slice %83 {offsets = [2, 0], sizes = [16, 64], strides = [1, 1]} : vector<18x64xf32> to vector<16x64xf32>
    %c27_i32_49 = arith.constant 27 : i32
    %105 = arith.muli %8, %c27_i32_49 : i32
    %c18_i32_50 = arith.constant 18 : i32
    %106 = arith.addi %105, %c18_i32_50 : i32
    %c6_i32_51 = arith.constant 6 : i32
    %107 = arith.addi %106, %c6_i32_51 : i32
    %c0_i32_52 = arith.constant 0 : i32
    %108 = arith.addi %107, %c0_i32_52 : i32
    %109 = arith.index_cast %108 : i32 to index
    %110 = memref.load %arg3[%109] : memref<108xf32, #tpu.memory_space<smem>>
    %111 = vector.broadcast %110 : f32 to vector<16x64xf32>
    %112 = arith.mulf %104, %111 : vector<16x64xf32>
    %113 = arith.addf %103, %112 : vector<16x64xf32>
    %114 = vector.broadcast %5 : vector<1x64xf32> to vector<16x64xf32>
    %115 = arith.mulf %113, %114 : vector<16x64xf32>
    %116 = arith.addf %19, %115 : vector<16x64xf32>
    %cst_53 = arith.constant 0.000000e+00 : f32
    %117 = vector.broadcast %cst_53 : f32 to vector<16x64xf32>
    %118 = vector.extract_strided_slice %18 {offsets = [0, 1], sizes = [18, 64], strides = [1, 1]} : vector<18x82xf32> to vector<18x64xf32>
    %119 = vector.extract_strided_slice %118 {offsets = [0, 0], sizes = [16, 64], strides = [1, 1]} : vector<18x64xf32> to vector<16x64xf32>
    %c27_i32_54 = arith.constant 27 : i32
    %120 = arith.muli %8, %c27_i32_54 : i32
    %c0_i32_55 = arith.constant 0 : i32
    %121 = arith.addi %120, %c0_i32_55 : i32
    %c0_i32_56 = arith.constant 0 : i32
    %122 = arith.addi %121, %c0_i32_56 : i32
    %c1_i32 = arith.constant 1 : i32
    %123 = arith.addi %122, %c1_i32 : i32
    %124 = arith.index_cast %123 : i32 to index
    %125 = memref.load %arg3[%124] : memref<108xf32, #tpu.memory_space<smem>>
    %126 = vector.broadcast %125 : f32 to vector<16x64xf32>
    %127 = arith.mulf %119, %126 : vector<16x64xf32>
    %128 = arith.addf %117, %127 : vector<16x64xf32>
    %129 = vector.extract_strided_slice %118 {offsets = [1, 0], sizes = [16, 64], strides = [1, 1]} : vector<18x64xf32> to vector<16x64xf32>
    %c27_i32_57 = arith.constant 27 : i32
    %130 = arith.muli %8, %c27_i32_57 : i32
    %c9_i32_58 = arith.constant 9 : i32
    %131 = arith.addi %130, %c9_i32_58 : i32
    %c0_i32_59 = arith.constant 0 : i32
    %132 = arith.addi %131, %c0_i32_59 : i32
    %c1_i32_60 = arith.constant 1 : i32
    %133 = arith.addi %132, %c1_i32_60 : i32
    %134 = arith.index_cast %133 : i32 to index
    %135 = memref.load %arg3[%134] : memref<108xf32, #tpu.memory_space<smem>>
    %136 = vector.broadcast %135 : f32 to vector<16x64xf32>
    %137 = arith.mulf %129, %136 : vector<16x64xf32>
    %138 = arith.addf %128, %137 : vector<16x64xf32>
    %139 = vector.extract_strided_slice %118 {offsets = [2, 0], sizes = [16, 64], strides = [1, 1]} : vector<18x64xf32> to vector<16x64xf32>
    %c27_i32_61 = arith.constant 27 : i32
    %140 = arith.muli %8, %c27_i32_61 : i32
    %c18_i32_62 = arith.constant 18 : i32
    %141 = arith.addi %140, %c18_i32_62 : i32
    %c0_i32_63 = arith.constant 0 : i32
    %142 = arith.addi %141, %c0_i32_63 : i32
    %c1_i32_64 = arith.constant 1 : i32
    %143 = arith.addi %142, %c1_i32_64 : i32
    %144 = arith.index_cast %143 : i32 to index
    %145 = memref.load %arg3[%144] : memref<108xf32, #tpu.memory_space<smem>>
    %146 = vector.broadcast %145 : f32 to vector<16x64xf32>
    %147 = arith.mulf %139, %146 : vector<16x64xf32>
    %148 = arith.addf %138, %147 : vector<16x64xf32>
    %149 = vector.extract_strided_slice %18 {offsets = [0, 9], sizes = [18, 64], strides = [1, 1]} : vector<18x82xf32> to vector<18x64xf32>
    %150 = vector.extract_strided_slice %149 {offsets = [0, 0], sizes = [16, 64], strides = [1, 1]} : vector<18x64xf32> to vector<16x64xf32>
    %c27_i32_65 = arith.constant 27 : i32
    %151 = arith.muli %8, %c27_i32_65 : i32
    %c0_i32_66 = arith.constant 0 : i32
    %152 = arith.addi %151, %c0_i32_66 : i32
    %c3_i32_67 = arith.constant 3 : i32
    %153 = arith.addi %152, %c3_i32_67 : i32
    %c1_i32_68 = arith.constant 1 : i32
    %154 = arith.addi %153, %c1_i32_68 : i32
    %155 = arith.index_cast %154 : i32 to index
    %156 = memref.load %arg3[%155] : memref<108xf32, #tpu.memory_space<smem>>
    %157 = vector.broadcast %156 : f32 to vector<16x64xf32>
    %158 = arith.mulf %150, %157 : vector<16x64xf32>
    %159 = arith.addf %148, %158 : vector<16x64xf32>
    %160 = vector.extract_strided_slice %149 {offsets = [1, 0], sizes = [16, 64], strides = [1, 1]} : vector<18x64xf32> to vector<16x64xf32>
    %c27_i32_69 = arith.constant 27 : i32
    %161 = arith.muli %8, %c27_i32_69 : i32
    %c9_i32_70 = arith.constant 9 : i32
    %162 = arith.addi %161, %c9_i32_70 : i32
    %c3_i32_71 = arith.constant 3 : i32
    %163 = arith.addi %162, %c3_i32_71 : i32
    %c1_i32_72 = arith.constant 1 : i32
    %164 = arith.addi %163, %c1_i32_72 : i32
    %165 = arith.index_cast %164 : i32 to index
    %166 = memref.load %arg3[%165] : memref<108xf32, #tpu.memory_space<smem>>
    %167 = vector.broadcast %166 : f32 to vector<16x64xf32>
    %168 = arith.mulf %160, %167 : vector<16x64xf32>
    %169 = arith.addf %159, %168 : vector<16x64xf32>
    %170 = vector.extract_strided_slice %149 {offsets = [2, 0], sizes = [16, 64], strides = [1, 1]} : vector<18x64xf32> to vector<16x64xf32>
    %c27_i32_73 = arith.constant 27 : i32
    %171 = arith.muli %8, %c27_i32_73 : i32
    %c18_i32_74 = arith.constant 18 : i32
    %172 = arith.addi %171, %c18_i32_74 : i32
    %c3_i32_75 = arith.constant 3 : i32
    %173 = arith.addi %172, %c3_i32_75 : i32
    %c1_i32_76 = arith.constant 1 : i32
    %174 = arith.addi %173, %c1_i32_76 : i32
    %175 = arith.index_cast %174 : i32 to index
    %176 = memref.load %arg3[%175] : memref<108xf32, #tpu.memory_space<smem>>
    %177 = vector.broadcast %176 : f32 to vector<16x64xf32>
    %178 = arith.mulf %170, %177 : vector<16x64xf32>
    %179 = arith.addf %169, %178 : vector<16x64xf32>
    %180 = vector.extract_strided_slice %18 {offsets = [0, 17], sizes = [18, 64], strides = [1, 1]} : vector<18x82xf32> to vector<18x64xf32>
    %181 = vector.extract_strided_slice %180 {offsets = [0, 0], sizes = [16, 64], strides = [1, 1]} : vector<18x64xf32> to vector<16x64xf32>
    %c27_i32_77 = arith.constant 27 : i32
    %182 = arith.muli %8, %c27_i32_77 : i32
    %c0_i32_78 = arith.constant 0 : i32
    %183 = arith.addi %182, %c0_i32_78 : i32
    %c6_i32_79 = arith.constant 6 : i32
    %184 = arith.addi %183, %c6_i32_79 : i32
    %c1_i32_80 = arith.constant 1 : i32
    %185 = arith.addi %184, %c1_i32_80 : i32
    %186 = arith.index_cast %185 : i32 to index
    %187 = memref.load %arg3[%186] : memref<108xf32, #tpu.memory_space<smem>>
    %188 = vector.broadcast %187 : f32 to vector<16x64xf32>
    %189 = arith.mulf %181, %188 : vector<16x64xf32>
    %190 = arith.addf %179, %189 : vector<16x64xf32>
    %191 = vector.extract_strided_slice %180 {offsets = [1, 0], sizes = [16, 64], strides = [1, 1]} : vector<18x64xf32> to vector<16x64xf32>
    %c27_i32_81 = arith.constant 27 : i32
    %192 = arith.muli %8, %c27_i32_81 : i32
    %c9_i32_82 = arith.constant 9 : i32
    %193 = arith.addi %192, %c9_i32_82 : i32
    %c6_i32_83 = arith.constant 6 : i32
    %194 = arith.addi %193, %c6_i32_83 : i32
    %c1_i32_84 = arith.constant 1 : i32
    %195 = arith.addi %194, %c1_i32_84 : i32
    %196 = arith.index_cast %195 : i32 to index
    %197 = memref.load %arg3[%196] : memref<108xf32, #tpu.memory_space<smem>>
    %198 = vector.broadcast %197 : f32 to vector<16x64xf32>
    %199 = arith.mulf %191, %198 : vector<16x64xf32>
    %200 = arith.addf %190, %199 : vector<16x64xf32>
    %201 = vector.extract_strided_slice %180 {offsets = [2, 0], sizes = [16, 64], strides = [1, 1]} : vector<18x64xf32> to vector<16x64xf32>
    %c27_i32_85 = arith.constant 27 : i32
    %202 = arith.muli %8, %c27_i32_85 : i32
    %c18_i32_86 = arith.constant 18 : i32
    %203 = arith.addi %202, %c18_i32_86 : i32
    %c6_i32_87 = arith.constant 6 : i32
    %204 = arith.addi %203, %c6_i32_87 : i32
    %c1_i32_88 = arith.constant 1 : i32
    %205 = arith.addi %204, %c1_i32_88 : i32
    %206 = arith.index_cast %205 : i32 to index
    %207 = memref.load %arg3[%206] : memref<108xf32, #tpu.memory_space<smem>>
    %208 = vector.broadcast %207 : f32 to vector<16x64xf32>
    %209 = arith.mulf %201, %208 : vector<16x64xf32>
    %210 = arith.addf %200, %209 : vector<16x64xf32>
    %211 = arith.addf %116, %210 : vector<16x64xf32>
    %cst_89 = arith.constant 0.000000e+00 : f32
    %212 = vector.broadcast %cst_89 : f32 to vector<16x64xf32>
    %213 = vector.extract_strided_slice %18 {offsets = [0, 2], sizes = [18, 64], strides = [1, 1]} : vector<18x82xf32> to vector<18x64xf32>
    %214 = vector.extract_strided_slice %213 {offsets = [0, 0], sizes = [16, 64], strides = [1, 1]} : vector<18x64xf32> to vector<16x64xf32>
    %c27_i32_90 = arith.constant 27 : i32
    %215 = arith.muli %8, %c27_i32_90 : i32
    %c0_i32_91 = arith.constant 0 : i32
    %216 = arith.addi %215, %c0_i32_91 : i32
    %c0_i32_92 = arith.constant 0 : i32
    %217 = arith.addi %216, %c0_i32_92 : i32
    %c2_i32 = arith.constant 2 : i32
    %218 = arith.addi %217, %c2_i32 : i32
    %219 = arith.index_cast %218 : i32 to index
    %220 = memref.load %arg3[%219] : memref<108xf32, #tpu.memory_space<smem>>
    %221 = vector.broadcast %220 : f32 to vector<16x64xf32>
    %222 = arith.mulf %214, %221 : vector<16x64xf32>
    %223 = arith.addf %212, %222 : vector<16x64xf32>
    %224 = vector.extract_strided_slice %213 {offsets = [1, 0], sizes = [16, 64], strides = [1, 1]} : vector<18x64xf32> to vector<16x64xf32>
    %c27_i32_93 = arith.constant 27 : i32
    %225 = arith.muli %8, %c27_i32_93 : i32
    %c9_i32_94 = arith.constant 9 : i32
    %226 = arith.addi %225, %c9_i32_94 : i32
    %c0_i32_95 = arith.constant 0 : i32
    %227 = arith.addi %226, %c0_i32_95 : i32
    %c2_i32_96 = arith.constant 2 : i32
    %228 = arith.addi %227, %c2_i32_96 : i32
    %229 = arith.index_cast %228 : i32 to index
    %230 = memref.load %arg3[%229] : memref<108xf32, #tpu.memory_space<smem>>
    %231 = vector.broadcast %230 : f32 to vector<16x64xf32>
    %232 = arith.mulf %224, %231 : vector<16x64xf32>
    %233 = arith.addf %223, %232 : vector<16x64xf32>
    %234 = vector.extract_strided_slice %213 {offsets = [2, 0], sizes = [16, 64], strides = [1, 1]} : vector<18x64xf32> to vector<16x64xf32>
    %c27_i32_97 = arith.constant 27 : i32
    %235 = arith.muli %8, %c27_i32_97 : i32
    %c18_i32_98 = arith.constant 18 : i32
    %236 = arith.addi %235, %c18_i32_98 : i32
    %c0_i32_99 = arith.constant 0 : i32
    %237 = arith.addi %236, %c0_i32_99 : i32
    %c2_i32_100 = arith.constant 2 : i32
    %238 = arith.addi %237, %c2_i32_100 : i32
    %239 = arith.index_cast %238 : i32 to index
    %240 = memref.load %arg3[%239] : memref<108xf32, #tpu.memory_space<smem>>
    %241 = vector.broadcast %240 : f32 to vector<16x64xf32>
    %242 = arith.mulf %234, %241 : vector<16x64xf32>
    %243 = arith.addf %233, %242 : vector<16x64xf32>
    %244 = vector.extract_strided_slice %18 {offsets = [0, 10], sizes = [18, 64], strides = [1, 1]} : vector<18x82xf32> to vector<18x64xf32>
    %245 = vector.extract_strided_slice %244 {offsets = [0, 0], sizes = [16, 64], strides = [1, 1]} : vector<18x64xf32> to vector<16x64xf32>
    %c27_i32_101 = arith.constant 27 : i32
    %246 = arith.muli %8, %c27_i32_101 : i32
    %c0_i32_102 = arith.constant 0 : i32
    %247 = arith.addi %246, %c0_i32_102 : i32
    %c3_i32_103 = arith.constant 3 : i32
    %248 = arith.addi %247, %c3_i32_103 : i32
    %c2_i32_104 = arith.constant 2 : i32
    %249 = arith.addi %248, %c2_i32_104 : i32
    %250 = arith.index_cast %249 : i32 to index
    %251 = memref.load %arg3[%250] : memref<108xf32, #tpu.memory_space<smem>>
    %252 = vector.broadcast %251 : f32 to vector<16x64xf32>
    %253 = arith.mulf %245, %252 : vector<16x64xf32>
    %254 = arith.addf %243, %253 : vector<16x64xf32>
    %255 = vector.extract_strided_slice %244 {offsets = [1, 0], sizes = [16, 64], strides = [1, 1]} : vector<18x64xf32> to vector<16x64xf32>
    %c27_i32_105 = arith.constant 27 : i32
    %256 = arith.muli %8, %c27_i32_105 : i32
    %c9_i32_106 = arith.constant 9 : i32
    %257 = arith.addi %256, %c9_i32_106 : i32
    %c3_i32_107 = arith.constant 3 : i32
    %258 = arith.addi %257, %c3_i32_107 : i32
    %c2_i32_108 = arith.constant 2 : i32
    %259 = arith.addi %258, %c2_i32_108 : i32
    %260 = arith.index_cast %259 : i32 to index
    %261 = memref.load %arg3[%260] : memref<108xf32, #tpu.memory_space<smem>>
    %262 = vector.broadcast %261 : f32 to vector<16x64xf32>
    %263 = arith.mulf %255, %262 : vector<16x64xf32>
    %264 = arith.addf %254, %263 : vector<16x64xf32>
    %265 = vector.extract_strided_slice %244 {offsets = [2, 0], sizes = [16, 64], strides = [1, 1]} : vector<18x64xf32> to vector<16x64xf32>
    %c27_i32_109 = arith.constant 27 : i32
    %266 = arith.muli %8, %c27_i32_109 : i32
    %c18_i32_110 = arith.constant 18 : i32
    %267 = arith.addi %266, %c18_i32_110 : i32
    %c3_i32_111 = arith.constant 3 : i32
    %268 = arith.addi %267, %c3_i32_111 : i32
    %c2_i32_112 = arith.constant 2 : i32
    %269 = arith.addi %268, %c2_i32_112 : i32
    %270 = arith.index_cast %269 : i32 to index
    %271 = memref.load %arg3[%270] : memref<108xf32, #tpu.memory_space<smem>>
    %272 = vector.broadcast %271 : f32 to vector<16x64xf32>
    %273 = arith.mulf %265, %272 : vector<16x64xf32>
    %274 = arith.addf %264, %273 : vector<16x64xf32>
    %275 = vector.extract_strided_slice %18 {offsets = [0, 18], sizes = [18, 64], strides = [1, 1]} : vector<18x82xf32> to vector<18x64xf32>
    %276 = vector.extract_strided_slice %275 {offsets = [0, 0], sizes = [16, 64], strides = [1, 1]} : vector<18x64xf32> to vector<16x64xf32>
    %c27_i32_113 = arith.constant 27 : i32
    %277 = arith.muli %8, %c27_i32_113 : i32
    %c0_i32_114 = arith.constant 0 : i32
    %278 = arith.addi %277, %c0_i32_114 : i32
    %c6_i32_115 = arith.constant 6 : i32
    %279 = arith.addi %278, %c6_i32_115 : i32
    %c2_i32_116 = arith.constant 2 : i32
    %280 = arith.addi %279, %c2_i32_116 : i32
    %281 = arith.index_cast %280 : i32 to index
    %282 = memref.load %arg3[%281] : memref<108xf32, #tpu.memory_space<smem>>
    %283 = vector.broadcast %282 : f32 to vector<16x64xf32>
    %284 = arith.mulf %276, %283 : vector<16x64xf32>
    %285 = arith.addf %274, %284 : vector<16x64xf32>
    %286 = vector.extract_strided_slice %275 {offsets = [1, 0], sizes = [16, 64], strides = [1, 1]} : vector<18x64xf32> to vector<16x64xf32>
    %c27_i32_117 = arith.constant 27 : i32
    %287 = arith.muli %8, %c27_i32_117 : i32
    %c9_i32_118 = arith.constant 9 : i32
    %288 = arith.addi %287, %c9_i32_118 : i32
    %c6_i32_119 = arith.constant 6 : i32
    %289 = arith.addi %288, %c6_i32_119 : i32
    %c2_i32_120 = arith.constant 2 : i32
    %290 = arith.addi %289, %c2_i32_120 : i32
    %291 = arith.index_cast %290 : i32 to index
    %292 = memref.load %arg3[%291] : memref<108xf32, #tpu.memory_space<smem>>
    %293 = vector.broadcast %292 : f32 to vector<16x64xf32>
    %294 = arith.mulf %286, %293 : vector<16x64xf32>
    %295 = arith.addf %285, %294 : vector<16x64xf32>
    %296 = vector.extract_strided_slice %275 {offsets = [2, 0], sizes = [16, 64], strides = [1, 1]} : vector<18x64xf32> to vector<16x64xf32>
    %c27_i32_121 = arith.constant 27 : i32
    %297 = arith.muli %8, %c27_i32_121 : i32
    %c18_i32_122 = arith.constant 18 : i32
    %298 = arith.addi %297, %c18_i32_122 : i32
    %c6_i32_123 = arith.constant 6 : i32
    %299 = arith.addi %298, %c6_i32_123 : i32
    %c2_i32_124 = arith.constant 2 : i32
    %300 = arith.addi %299, %c2_i32_124 : i32
    %301 = arith.index_cast %300 : i32 to index
    %302 = memref.load %arg3[%301] : memref<108xf32, #tpu.memory_space<smem>>
    %303 = vector.broadcast %302 : f32 to vector<16x64xf32>
    %304 = arith.mulf %296, %303 : vector<16x64xf32>
    %305 = arith.addf %295, %304 : vector<16x64xf32>
    %306 = vector.broadcast %6 : vector<1x64xf32> to vector<16x64xf32>
    %307 = arith.mulf %305, %306 : vector<16x64xf32>
    %308 = arith.addf %211, %307 : vector<16x64xf32>
    %309 = arith.index_cast %8 : i32 to index
    %310 = memref.load %arg4[%309] : memref<4xf32, #tpu.memory_space<smem>>
    %311 = vector.broadcast %310 : f32 to vector<16x64xf32>
    %312 = arith.addf %308, %311 : vector<16x64xf32>
    %313 = arith.negf %312 : vector<16x64xf32>
    %314 = math.exp %313 : vector<16x64xf32>
    %cst_125 = arith.constant 1.000000e+00 : f32
    %315 = vector.broadcast %cst_125 : f32 to vector<16x64xf32>
    %316 = arith.addf %315, %314 : vector<16x64xf32>
    %317 = arith.divf %315, %316 : vector<16x64xf32>
    %318 = arith.mulf %10, %317 : vector<16x64xf32>
    %c0_126 = arith.constant 0 : index
    %c0_127 = arith.constant 0 : index
    %c0_128 = arith.constant 0 : index
    %c0_129 = arith.constant 0 : index
    %c0_130 = arith.constant 0 : index
    %319 = vector.load %arg8[%c0_126, %c0_127, %c0_128, %c0_129, %c0_130] : memref<1x4x1x16x64xf32, #tpu.memory_space<vmem>>, vector<1x1x1x16x64xf32>
    %320 = vector.shape_cast %319 : vector<1x1x1x16x64xf32> to vector<16x64xf32>
    %321 = vector.shape_cast %318 : vector<16x64xf32> to vector<1x1x1x16x64xf32>
    tpu.vector_store %arg8[%c0_126, %c0_127, %c0_128, %c0_129, %c0_130], %321 {strides = array<i32>} : memref<1x4x1x16x64xf32, #tpu.memory_space<vmem>>, vector<1x1x1x16x64xf32>,
    %c4_i32_131 = arith.constant 4 : i32
    %322 = arith.muli %arg1, %c4_i32_131 : i32
    %c1_i32_132 = arith.constant 1 : i32
    %323 = arith.addi %322, %c1_i32_132 : i32
    %c0_133 = arith.constant 0 : index
    %c1_134 = arith.constant 1 : index
    %c0_135 = arith.constant 0 : index
    %c0_136 = arith.constant 0 : index
    %c0_137 = arith.constant 0 : index
    %324 = vector.load %arg5[%c0_133, %c1_134, %c0_135, %c0_136, %c0_137] : memref<1x4x1x16x64xf32, #tpu.memory_space<vmem>>, vector<1x1x1x16x64xf32>
    %325 = vector.shape_cast %324 : vector<1x1x1x16x64xf32> to vector<16x64xf32>
    %c0_138 = arith.constant 0 : index
    %c1_139 = arith.constant 1 : index
    %c0_140 = arith.constant 0 : index
    %c0_141 = arith.constant 0 : index
    %c0_142 = arith.constant 0 : index
    %326 = vector.load %arg6[%c0_138, %c1_139, %c0_140, %c0_141, %c0_142] : memref<1x4x1x2x64xf32, #tpu.memory_space<vmem>>, vector<1x1x1x2x64xf32>
    %327 = vector.shape_cast %326 : vector<1x1x1x2x64xf32> to vector<2x64xf32>
    %c1_143 = arith.constant 1 : index
    %c9_144 = arith.constant 9 : index
    %328 = vector.load %arg9[%c1_143, %c9_144] : memref<18x82xf32, #tpu.memory_space<vmem>>, vector<16x64xf32>
    tpu.vector_store %arg9[%c1_143, %c9_144], %325 {strides = array<i32>} : memref<18x82xf32, #tpu.memory_space<vmem>>, vector<16x64xf32>,
    %329 = vector.extract_strided_slice %327 {offsets = [0, 0], sizes = [1, 64], strides = [1, 1]} : vector<2x64xf32> to vector<1x64xf32>
    %c0_145 = arith.constant 0 : index
    %c9_146 = arith.constant 9 : index
    %330 = vector.load %arg9[%c0_145, %c9_146] : memref<18x82xf32, #tpu.memory_space<vmem>>, vector<1x64xf32>
    tpu.vector_store %arg9[%c0_145, %c9_146], %329 {strides = array<i32>} : memref<18x82xf32, #tpu.memory_space<vmem>>, vector<1x64xf32>,
    %331 = vector.extract_strided_slice %327 {offsets = [1, 0], sizes = [1, 64], strides = [1, 1]} : vector<2x64xf32> to vector<1x64xf32>
    %c17_147 = arith.constant 17 : index
    %c9_148 = arith.constant 9 : index
    %332 = vector.load %arg9[%c17_147, %c9_148] : memref<18x82xf32, #tpu.memory_space<vmem>>, vector<1x64xf32>
    tpu.vector_store %arg9[%c17_147, %c9_148], %331 {strides = array<i32>} : memref<18x82xf32, #tpu.memory_space<vmem>>, vector<1x64xf32>,
    %c0_149 = arith.constant 0 : index
    %c0_150 = arith.constant 0 : index
    %333 = vector.load %arg9[%c0_149, %c0_150] : memref<18x82xf32, #tpu.memory_space<vmem>>, vector<18x82xf32>
    %cst_151 = arith.constant 0.000000e+00 : f32
    %334 = vector.broadcast %cst_151 : f32 to vector<16x64xf32>
    %cst_152 = arith.constant 0.000000e+00 : f32
    %335 = vector.broadcast %cst_152 : f32 to vector<16x64xf32>
    %336 = vector.extract_strided_slice %333 {offsets = [0, 0], sizes = [18, 64], strides = [1, 1]} : vector<18x82xf32> to vector<18x64xf32>
    %337 = vector.extract_strided_slice %336 {offsets = [0, 0], sizes = [16, 64], strides = [1, 1]} : vector<18x64xf32> to vector<16x64xf32>
    %c27_i32_153 = arith.constant 27 : i32
    %338 = arith.muli %323, %c27_i32_153 : i32
    %c0_i32_154 = arith.constant 0 : i32
    %339 = arith.addi %338, %c0_i32_154 : i32
    %c0_i32_155 = arith.constant 0 : i32
    %340 = arith.addi %339, %c0_i32_155 : i32
    %c0_i32_156 = arith.constant 0 : i32
    %341 = arith.addi %340, %c0_i32_156 : i32
    %342 = arith.index_cast %341 : i32 to index
    %343 = memref.load %arg3[%342] : memref<108xf32, #tpu.memory_space<smem>>
    %344 = vector.broadcast %343 : f32 to vector<16x64xf32>
    %345 = arith.mulf %337, %344 : vector<16x64xf32>
    %346 = arith.addf %335, %345 : vector<16x64xf32>
    %347 = vector.extract_strided_slice %336 {offsets = [1, 0], sizes = [16, 64], strides = [1, 1]} : vector<18x64xf32> to vector<16x64xf32>
    %c27_i32_157 = arith.constant 27 : i32
    %348 = arith.muli %323, %c27_i32_157 : i32
    %c9_i32_158 = arith.constant 9 : i32
    %349 = arith.addi %348, %c9_i32_158 : i32
    %c0_i32_159 = arith.constant 0 : i32
    %350 = arith.addi %349, %c0_i32_159 : i32
    %c0_i32_160 = arith.constant 0 : i32
    %351 = arith.addi %350, %c0_i32_160 : i32
    %352 = arith.index_cast %351 : i32 to index
    %353 = memref.load %arg3[%352] : memref<108xf32, #tpu.memory_space<smem>>
    %354 = vector.broadcast %353 : f32 to vector<16x64xf32>
    %355 = arith.mulf %347, %354 : vector<16x64xf32>
    %356 = arith.addf %346, %355 : vector<16x64xf32>
    %357 = vector.extract_strided_slice %336 {offsets = [2, 0], sizes = [16, 64], strides = [1, 1]} : vector<18x64xf32> to vector<16x64xf32>
    %c27_i32_161 = arith.constant 27 : i32
    %358 = arith.muli %323, %c27_i32_161 : i32
    %c18_i32_162 = arith.constant 18 : i32
    %359 = arith.addi %358, %c18_i32_162 : i32
    %c0_i32_163 = arith.constant 0 : i32
    %360 = arith.addi %359, %c0_i32_163 : i32
    %c0_i32_164 = arith.constant 0 : i32
    %361 = arith.addi %360, %c0_i32_164 : i32
    %362 = arith.index_cast %361 : i32 to index
    %363 = memref.load %arg3[%362] : memref<108xf32, #tpu.memory_space<smem>>
    %364 = vector.broadcast %363 : f32 to vector<16x64xf32>
    %365 = arith.mulf %357, %364 : vector<16x64xf32>
    %366 = arith.addf %356, %365 : vector<16x64xf32>
    %367 = vector.extract_strided_slice %333 {offsets = [0, 8], sizes = [18, 64], strides = [1, 1]} : vector<18x82xf32> to vector<18x64xf32>
    %368 = vector.extract_strided_slice %367 {offsets = [0, 0], sizes = [16, 64], strides = [1, 1]} : vector<18x64xf32> to vector<16x64xf32>
    %c27_i32_165 = arith.constant 27 : i32
    %369 = arith.muli %323, %c27_i32_165 : i32
    %c0_i32_166 = arith.constant 0 : i32
    %370 = arith.addi %369, %c0_i32_166 : i32
    %c3_i32_167 = arith.constant 3 : i32
    %371 = arith.addi %370, %c3_i32_167 : i32
    %c0_i32_168 = arith.constant 0 : i32
    %372 = arith.addi %371, %c0_i32_168 : i32
    %373 = arith.index_cast %372 : i32 to index
    %374 = memref.load %arg3[%373] : memref<108xf32, #tpu.memory_space<smem>>
    %375 = vector.broadcast %374 : f32 to vector<16x64xf32>
    %376 = arith.mulf %368, %375 : vector<16x64xf32>
    %377 = arith.addf %366, %376 : vector<16x64xf32>
    %378 = vector.extract_strided_slice %367 {offsets = [1, 0], sizes = [16, 64], strides = [1, 1]} : vector<18x64xf32> to vector<16x64xf32>
    %c27_i32_169 = arith.constant 27 : i32
    %379 = arith.muli %323, %c27_i32_169 : i32
    %c9_i32_170 = arith.constant 9 : i32
    %380 = arith.addi %379, %c9_i32_170 : i32
    %c3_i32_171 = arith.constant 3 : i32
    %381 = arith.addi %380, %c3_i32_171 : i32
    %c0_i32_172 = arith.constant 0 : i32
    %382 = arith.addi %381, %c0_i32_172 : i32
    %383 = arith.index_cast %382 : i32 to index
    %384 = memref.load %arg3[%383] : memref<108xf32, #tpu.memory_space<smem>>
    %385 = vector.broadcast %384 : f32 to vector<16x64xf32>
    %386 = arith.mulf %378, %385 : vector<16x64xf32>
    %387 = arith.addf %377, %386 : vector<16x64xf32>
    %388 = vector.extract_strided_slice %367 {offsets = [2, 0], sizes = [16, 64], strides = [1, 1]} : vector<18x64xf32> to vector<16x64xf32>
    %c27_i32_173 = arith.constant 27 : i32
    %389 = arith.muli %323, %c27_i32_173 : i32
    %c18_i32_174 = arith.constant 18 : i32
    %390 = arith.addi %389, %c18_i32_174 : i32
    %c3_i32_175 = arith.constant 3 : i32
    %391 = arith.addi %390, %c3_i32_175 : i32
    %c0_i32_176 = arith.constant 0 : i32
    %392 = arith.addi %391, %c0_i32_176 : i32
    %393 = arith.index_cast %392 : i32 to index
    %394 = memref.load %arg3[%393] : memref<108xf32, #tpu.memory_space<smem>>
    %395 = vector.broadcast %394 : f32 to vector<16x64xf32>
    %396 = arith.mulf %388, %395 : vector<16x64xf32>
    %397 = arith.addf %387, %396 : vector<16x64xf32>
    %398 = vector.extract_strided_slice %333 {offsets = [0, 16], sizes = [18, 64], strides = [1, 1]} : vector<18x82xf32> to vector<18x64xf32>
    %399 = vector.extract_strided_slice %398 {offsets = [0, 0], sizes = [16, 64], strides = [1, 1]} : vector<18x64xf32> to vector<16x64xf32>
    %c27_i32_177 = arith.constant 27 : i32
    %400 = arith.muli %323, %c27_i32_177 : i32
    %c0_i32_178 = arith.constant 0 : i32
    %401 = arith.addi %400, %c0_i32_178 : i32
    %c6_i32_179 = arith.constant 6 : i32
    %402 = arith.addi %401, %c6_i32_179 : i32
    %c0_i32_180 = arith.constant 0 : i32
    %403 = arith.addi %402, %c0_i32_180 : i32
    %404 = arith.index_cast %403 : i32 to index
    %405 = memref.load %arg3[%404] : memref<108xf32, #tpu.memory_space<smem>>
    %406 = vector.broadcast %405 : f32 to vector<16x64xf32>
    %407 = arith.mulf %399, %406 : vector<16x64xf32>
    %408 = arith.addf %397, %407 : vector<16x64xf32>
    %409 = vector.extract_strided_slice %398 {offsets = [1, 0], sizes = [16, 64], strides = [1, 1]} : vector<18x64xf32> to vector<16x64xf32>
    %c27_i32_181 = arith.constant 27 : i32
    %410 = arith.muli %323, %c27_i32_181 : i32
    %c9_i32_182 = arith.constant 9 : i32
    %411 = arith.addi %410, %c9_i32_182 : i32
    %c6_i32_183 = arith.constant 6 : i32
    %412 = arith.addi %411, %c6_i32_183 : i32
    %c0_i32_184 = arith.constant 0 : i32
    %413 = arith.addi %412, %c0_i32_184 : i32
    %414 = arith.index_cast %413 : i32 to index
    %415 = memref.load %arg3[%414] : memref<108xf32, #tpu.memory_space<smem>>
    %416 = vector.broadcast %415 : f32 to vector<16x64xf32>
    %417 = arith.mulf %409, %416 : vector<16x64xf32>
    %418 = arith.addf %408, %417 : vector<16x64xf32>
    %419 = vector.extract_strided_slice %398 {offsets = [2, 0], sizes = [16, 64], strides = [1, 1]} : vector<18x64xf32> to vector<16x64xf32>
    %c27_i32_185 = arith.constant 27 : i32
    %420 = arith.muli %323, %c27_i32_185 : i32
    %c18_i32_186 = arith.constant 18 : i32
    %421 = arith.addi %420, %c18_i32_186 : i32
    %c6_i32_187 = arith.constant 6 : i32
    %422 = arith.addi %421, %c6_i32_187 : i32
    %c0_i32_188 = arith.constant 0 : i32
    %423 = arith.addi %422, %c0_i32_188 : i32
    %424 = arith.index_cast %423 : i32 to index
    %425 = memref.load %arg3[%424] : memref<108xf32, #tpu.memory_space<smem>>
    %426 = vector.broadcast %425 : f32 to vector<16x64xf32>
    %427 = arith.mulf %419, %426 : vector<16x64xf32>
    %428 = arith.addf %418, %427 : vector<16x64xf32>
    %429 = vector.broadcast %5 : vector<1x64xf32> to vector<16x64xf32>
    %430 = arith.mulf %428, %429 : vector<16x64xf32>
    %431 = arith.addf %334, %430 : vector<16x64xf32>
    %cst_189 = arith.constant 0.000000e+00 : f32
    %432 = vector.broadcast %cst_189 : f32 to vector<16x64xf32>
    %433 = vector.extract_strided_slice %333 {offsets = [0, 1], sizes = [18, 64], strides = [1, 1]} : vector<18x82xf32> to vector<18x64xf32>
    %434 = vector.extract_strided_slice %433 {offsets = [0, 0], sizes = [16, 64], strides = [1, 1]} : vector<18x64xf32> to vector<16x64xf32>
    %c27_i32_190 = arith.constant 27 : i32
    %435 = arith.muli %323, %c27_i32_190 : i32
    %c0_i32_191 = arith.constant 0 : i32
    %436 = arith.addi %435, %c0_i32_191 : i32
    %c0_i32_192 = arith.constant 0 : i32
    %437 = arith.addi %436, %c0_i32_192 : i32
    %c1_i32_193 = arith.constant 1 : i32
    %438 = arith.addi %437, %c1_i32_193 : i32
    %439 = arith.index_cast %438 : i32 to index
    %440 = memref.load %arg3[%439] : memref<108xf32, #tpu.memory_space<smem>>
    %441 = vector.broadcast %440 : f32 to vector<16x64xf32>
    %442 = arith.mulf %434, %441 : vector<16x64xf32>
    %443 = arith.addf %432, %442 : vector<16x64xf32>
    %444 = vector.extract_strided_slice %433 {offsets = [1, 0], sizes = [16, 64], strides = [1, 1]} : vector<18x64xf32> to vector<16x64xf32>
    %c27_i32_194 = arith.constant 27 : i32
    %445 = arith.muli %323, %c27_i32_194 : i32
    %c9_i32_195 = arith.constant 9 : i32
    %446 = arith.addi %445, %c9_i32_195 : i32
    %c0_i32_196 = arith.constant 0 : i32
    %447 = arith.addi %446, %c0_i32_196 : i32
    %c1_i32_197 = arith.constant 1 : i32
    %448 = arith.addi %447, %c1_i32_197 : i32
    %449 = arith.index_cast %448 : i32 to index
    %450 = memref.load %arg3[%449] : memref<108xf32, #tpu.memory_space<smem>>
    %451 = vector.broadcast %450 : f32 to vector<16x64xf32>
    %452 = arith.mulf %444, %451 : vector<16x64xf32>
    %453 = arith.addf %443, %452 : vector<16x64xf32>
    %454 = vector.extract_strided_slice %433 {offsets = [2, 0], sizes = [16, 64], strides = [1, 1]} : vector<18x64xf32> to vector<16x64xf32>
    %c27_i32_198 = arith.constant 27 : i32
    %455 = arith.muli %323, %c27_i32_198 : i32
    %c18_i32_199 = arith.constant 18 : i32
    %456 = arith.addi %455, %c18_i32_199 : i32
    %c0_i32_200 = arith.constant 0 : i32
    %457 = arith.addi %456, %c0_i32_200 : i32
    %c1_i32_201 = arith.constant 1 : i32
    %458 = arith.addi %457, %c1_i32_201 : i32
    %459 = arith.index_cast %458 : i32 to index
    %460 = memref.load %arg3[%459] : memref<108xf32, #tpu.memory_space<smem>>
    %461 = vector.broadcast %460 : f32 to vector<16x64xf32>
    %462 = arith.mulf %454, %461 : vector<16x64xf32>
    %463 = arith.addf %453, %462 : vector<16x64xf32>
    %464 = vector.extract_strided_slice %333 {offsets = [0, 9], sizes = [18, 64], strides = [1, 1]} : vector<18x82xf32> to vector<18x64xf32>
    %465 = vector.extract_strided_slice %464 {offsets = [0, 0], sizes = [16, 64], strides = [1, 1]} : vector<18x64xf32> to vector<16x64xf32>
    %c27_i32_202 = arith.constant 27 : i32
    %466 = arith.muli %323, %c27_i32_202 : i32
    %c0_i32_203 = arith.constant 0 : i32
    %467 = arith.addi %466, %c0_i32_203 : i32
    %c3_i32_204 = arith.constant 3 : i32
    %468 = arith.addi %467, %c3_i32_204 : i32
    %c1_i32_205 = arith.constant 1 : i32
    %469 = arith.addi %468, %c1_i32_205 : i32
    %470 = arith.index_cast %469 : i32 to index
    %471 = memref.load %arg3[%470] : memref<108xf32, #tpu.memory_space<smem>>
    %472 = vector.broadcast %471 : f32 to vector<16x64xf32>
    %473 = arith.mulf %465, %472 : vector<16x64xf32>
    %474 = arith.addf %463, %473 : vector<16x64xf32>
    %475 = vector.extract_strided_slice %464 {offsets = [1, 0], sizes = [16, 64], strides = [1, 1]} : vector<18x64xf32> to vector<16x64xf32>
    %c27_i32_206 = arith.constant 27 : i32
    %476 = arith.muli %323, %c27_i32_206 : i32
    %c9_i32_207 = arith.constant 9 : i32
    %477 = arith.addi %476, %c9_i32_207 : i32
    %c3_i32_208 = arith.constant 3 : i32
    %478 = arith.addi %477, %c3_i32_208 : i32
    %c1_i32_209 = arith.constant 1 : i32
    %479 = arith.addi %478, %c1_i32_209 : i32
    %480 = arith.index_cast %479 : i32 to index
    %481 = memref.load %arg3[%480] : memref<108xf32, #tpu.memory_space<smem>>
    %482 = vector.broadcast %481 : f32 to vector<16x64xf32>
    %483 = arith.mulf %475, %482 : vector<16x64xf32>
    %484 = arith.addf %474, %483 : vector<16x64xf32>
    %485 = vector.extract_strided_slice %464 {offsets = [2, 0], sizes = [16, 64], strides = [1, 1]} : vector<18x64xf32> to vector<16x64xf32>
    %c27_i32_210 = arith.constant 27 : i32
    %486 = arith.muli %323, %c27_i32_210 : i32
    %c18_i32_211 = arith.constant 18 : i32
    %487 = arith.addi %486, %c18_i32_211 : i32
    %c3_i32_212 = arith.constant 3 : i32
    %488 = arith.addi %487, %c3_i32_212 : i32
    %c1_i32_213 = arith.constant 1 : i32
    %489 = arith.addi %488, %c1_i32_213 : i32
    %490 = arith.index_cast %489 : i32 to index
    %491 = memref.load %arg3[%490] : memref<108xf32, #tpu.memory_space<smem>>
    %492 = vector.broadcast %491 : f32 to vector<16x64xf32>
    %493 = arith.mulf %485, %492 : vector<16x64xf32>
    %494 = arith.addf %484, %493 : vector<16x64xf32>
    %495 = vector.extract_strided_slice %333 {offsets = [0, 17], sizes = [18, 64], strides = [1, 1]} : vector<18x82xf32> to vector<18x64xf32>
    %496 = vector.extract_strided_slice %495 {offsets = [0, 0], sizes = [16, 64], strides = [1, 1]} : vector<18x64xf32> to vector<16x64xf32>
    %c27_i32_214 = arith.constant 27 : i32
    %497 = arith.muli %323, %c27_i32_214 : i32
    %c0_i32_215 = arith.constant 0 : i32
    %498 = arith.addi %497, %c0_i32_215 : i32
    %c6_i32_216 = arith.constant 6 : i32
    %499 = arith.addi %498, %c6_i32_216 : i32
    %c1_i32_217 = arith.constant 1 : i32
    %500 = arith.addi %499, %c1_i32_217 : i32
    %501 = arith.index_cast %500 : i32 to index
    %502 = memref.load %arg3[%501] : memref<108xf32, #tpu.memory_space<smem>>
    %503 = vector.broadcast %502 : f32 to vector<16x64xf32>
    %504 = arith.mulf %496, %503 : vector<16x64xf32>
    %505 = arith.addf %494, %504 : vector<16x64xf32>
    %506 = vector.extract_strided_slice %495 {offsets = [1, 0], sizes = [16, 64], strides = [1, 1]} : vector<18x64xf32> to vector<16x64xf32>
    %c27_i32_218 = arith.constant 27 : i32
    %507 = arith.muli %323, %c27_i32_218 : i32
    %c9_i32_219 = arith.constant 9 : i32
    %508 = arith.addi %507, %c9_i32_219 : i32
    %c6_i32_220 = arith.constant 6 : i32
    %509 = arith.addi %508, %c6_i32_220 : i32
    %c1_i32_221 = arith.constant 1 : i32
    %510 = arith.addi %509, %c1_i32_221 : i32
    %511 = arith.index_cast %510 : i32 to index
    %512 = memref.load %arg3[%511] : memref<108xf32, #tpu.memory_space<smem>>
    %513 = vector.broadcast %512 : f32 to vector<16x64xf32>
    %514 = arith.mulf %506, %513 : vector<16x64xf32>
    %515 = arith.addf %505, %514 : vector<16x64xf32>
    %516 = vector.extract_strided_slice %495 {offsets = [2, 0], sizes = [16, 64], strides = [1, 1]} : vector<18x64xf32> to vector<16x64xf32>
    %c27_i32_222 = arith.constant 27 : i32
    %517 = arith.muli %323, %c27_i32_222 : i32
    %c18_i32_223 = arith.constant 18 : i32
    %518 = arith.addi %517, %c18_i32_223 : i32
    %c6_i32_224 = arith.constant 6 : i32
    %519 = arith.addi %518, %c6_i32_224 : i32
    %c1_i32_225 = arith.constant 1 : i32
    %520 = arith.addi %519, %c1_i32_225 : i32
    %521 = arith.index_cast %520 : i32 to index
    %522 = memref.load %arg3[%521] : memref<108xf32, #tpu.memory_space<smem>>
    %523 = vector.broadcast %522 : f32 to vector<16x64xf32>
    %524 = arith.mulf %516, %523 : vector<16x64xf32>
    %525 = arith.addf %515, %524 : vector<16x64xf32>
    %526 = arith.addf %431, %525 : vector<16x64xf32>
    %cst_226 = arith.constant 0.000000e+00 : f32
    %527 = vector.broadcast %cst_226 : f32 to vector<16x64xf32>
    %528 = vector.extract_strided_slice %333 {offsets = [0, 2], sizes = [18, 64], strides = [1, 1]} : vector<18x82xf32> to vector<18x64xf32>
    %529 = vector.extract_strided_slice %528 {offsets = [0, 0], sizes = [16, 64], strides = [1, 1]} : vector<18x64xf32> to vector<16x64xf32>
    %c27_i32_227 = arith.constant 27 : i32
    %530 = arith.muli %323, %c27_i32_227 : i32
    %c0_i32_228 = arith.constant 0 : i32
    %531 = arith.addi %530, %c0_i32_228 : i32
    %c0_i32_229 = arith.constant 0 : i32
    %532 = arith.addi %531, %c0_i32_229 : i32
    %c2_i32_230 = arith.constant 2 : i32
    %533 = arith.addi %532, %c2_i32_230 : i32
    %534 = arith.index_cast %533 : i32 to index
    %535 = memref.load %arg3[%534] : memref<108xf32, #tpu.memory_space<smem>>
    %536 = vector.broadcast %535 : f32 to vector<16x64xf32>
    %537 = arith.mulf %529, %536 : vector<16x64xf32>
    %538 = arith.addf %527, %537 : vector<16x64xf32>
    %539 = vector.extract_strided_slice %528 {offsets = [1, 0], sizes = [16, 64], strides = [1, 1]} : vector<18x64xf32> to vector<16x64xf32>
    %c27_i32_231 = arith.constant 27 : i32
    %540 = arith.muli %323, %c27_i32_231 : i32
    %c9_i32_232 = arith.constant 9 : i32
    %541 = arith.addi %540, %c9_i32_232 : i32
    %c0_i32_233 = arith.constant 0 : i32
    %542 = arith.addi %541, %c0_i32_233 : i32
    %c2_i32_234 = arith.constant 2 : i32
    %543 = arith.addi %542, %c2_i32_234 : i32
    %544 = arith.index_cast %543 : i32 to index
    %545 = memref.load %arg3[%544] : memref<108xf32, #tpu.memory_space<smem>>
    %546 = vector.broadcast %545 : f32 to vector<16x64xf32>
    %547 = arith.mulf %539, %546 : vector<16x64xf32>
    %548 = arith.addf %538, %547 : vector<16x64xf32>
    %549 = vector.extract_strided_slice %528 {offsets = [2, 0], sizes = [16, 64], strides = [1, 1]} : vector<18x64xf32> to vector<16x64xf32>
    %c27_i32_235 = arith.constant 27 : i32
    %550 = arith.muli %323, %c27_i32_235 : i32
    %c18_i32_236 = arith.constant 18 : i32
    %551 = arith.addi %550, %c18_i32_236 : i32
    %c0_i32_237 = arith.constant 0 : i32
    %552 = arith.addi %551, %c0_i32_237 : i32
    %c2_i32_238 = arith.constant 2 : i32
    %553 = arith.addi %552, %c2_i32_238 : i32
    %554 = arith.index_cast %553 : i32 to index
    %555 = memref.load %arg3[%554] : memref<108xf32, #tpu.memory_space<smem>>
    %556 = vector.broadcast %555 : f32 to vector<16x64xf32>
    %557 = arith.mulf %549, %556 : vector<16x64xf32>
    %558 = arith.addf %548, %557 : vector<16x64xf32>
    %559 = vector.extract_strided_slice %333 {offsets = [0, 10], sizes = [18, 64], strides = [1, 1]} : vector<18x82xf32> to vector<18x64xf32>
    %560 = vector.extract_strided_slice %559 {offsets = [0, 0], sizes = [16, 64], strides = [1, 1]} : vector<18x64xf32> to vector<16x64xf32>
    %c27_i32_239 = arith.constant 27 : i32
    %561 = arith.muli %323, %c27_i32_239 : i32
    %c0_i32_240 = arith.constant 0 : i32
    %562 = arith.addi %561, %c0_i32_240 : i32
    %c3_i32_241 = arith.constant 3 : i32
    %563 = arith.addi %562, %c3_i32_241 : i32
    %c2_i32_242 = arith.constant 2 : i32
    %564 = arith.addi %563, %c2_i32_242 : i32
    %565 = arith.index_cast %564 : i32 to index
    %566 = memref.load %arg3[%565] : memref<108xf32, #tpu.memory_space<smem>>
    %567 = vector.broadcast %566 : f32 to vector<16x64xf32>
    %568 = arith.mulf %560, %567 : vector<16x64xf32>
    %569 = arith.addf %558, %568 : vector<16x64xf32>
    %570 = vector.extract_strided_slice %559 {offsets = [1, 0], sizes = [16, 64], strides = [1, 1]} : vector<18x64xf32> to vector<16x64xf32>
    %c27_i32_243 = arith.constant 27 : i32
    %571 = arith.muli %323, %c27_i32_243 : i32
    %c9_i32_244 = arith.constant 9 : i32
    %572 = arith.addi %571, %c9_i32_244 : i32
    %c3_i32_245 = arith.constant 3 : i32
    %573 = arith.addi %572, %c3_i32_245 : i32
    %c2_i32_246 = arith.constant 2 : i32
    %574 = arith.addi %573, %c2_i32_246 : i32
    %575 = arith.index_cast %574 : i32 to index
    %576 = memref.load %arg3[%575] : memref<108xf32, #tpu.memory_space<smem>>
    %577 = vector.broadcast %576 : f32 to vector<16x64xf32>
    %578 = arith.mulf %570, %577 : vector<16x64xf32>
    %579 = arith.addf %569, %578 : vector<16x64xf32>
    %580 = vector.extract_strided_slice %559 {offsets = [2, 0], sizes = [16, 64], strides = [1, 1]} : vector<18x64xf32> to vector<16x64xf32>
    %c27_i32_247 = arith.constant 27 : i32
    %581 = arith.muli %323, %c27_i32_247 : i32
    %c18_i32_248 = arith.constant 18 : i32
    %582 = arith.addi %581, %c18_i32_248 : i32
    %c3_i32_249 = arith.constant 3 : i32
    %583 = arith.addi %582, %c3_i32_249 : i32
    %c2_i32_250 = arith.constant 2 : i32
    %584 = arith.addi %583, %c2_i32_250 : i32
    %585 = arith.index_cast %584 : i32 to index
    %586 = memref.load %arg3[%585] : memref<108xf32, #tpu.memory_space<smem>>
    %587 = vector.broadcast %586 : f32 to vector<16x64xf32>
    %588 = arith.mulf %580, %587 : vector<16x64xf32>
    %589 = arith.addf %579, %588 : vector<16x64xf32>
    %590 = vector.extract_strided_slice %333 {offsets = [0, 18], sizes = [18, 64], strides = [1, 1]} : vector<18x82xf32> to vector<18x64xf32>
    %591 = vector.extract_strided_slice %590 {offsets = [0, 0], sizes = [16, 64], strides = [1, 1]} : vector<18x64xf32> to vector<16x64xf32>
    %c27_i32_251 = arith.constant 27 : i32
    %592 = arith.muli %323, %c27_i32_251 : i32
    %c0_i32_252 = arith.constant 0 : i32
    %593 = arith.addi %592, %c0_i32_252 : i32
    %c6_i32_253 = arith.constant 6 : i32
    %594 = arith.addi %593, %c6_i32_253 : i32
    %c2_i32_254 = arith.constant 2 : i32
    %595 = arith.addi %594, %c2_i32_254 : i32
    %596 = arith.index_cast %595 : i32 to index
    %597 = memref.load %arg3[%596] : memref<108xf32, #tpu.memory_space<smem>>
    %598 = vector.broadcast %597 : f32 to vector<16x64xf32>
    %599 = arith.mulf %591, %598 : vector<16x64xf32>
    %600 = arith.addf %589, %599 : vector<16x64xf32>
    %601 = vector.extract_strided_slice %590 {offsets = [1, 0], sizes = [16, 64], strides = [1, 1]} : vector<18x64xf32> to vector<16x64xf32>
    %c27_i32_255 = arith.constant 27 : i32
    %602 = arith.muli %323, %c27_i32_255 : i32
    %c9_i32_256 = arith.constant 9 : i32
    %603 = arith.addi %602, %c9_i32_256 : i32
    %c6_i32_257 = arith.constant 6 : i32
    %604 = arith.addi %603, %c6_i32_257 : i32
    %c2_i32_258 = arith.constant 2 : i32
    %605 = arith.addi %604, %c2_i32_258 : i32
    %606 = arith.index_cast %605 : i32 to index
    %607 = memref.load %arg3[%606] : memref<108xf32, #tpu.memory_space<smem>>
    %608 = vector.broadcast %607 : f32 to vector<16x64xf32>
    %609 = arith.mulf %601, %608 : vector<16x64xf32>
    %610 = arith.addf %600, %609 : vector<16x64xf32>
    %611 = vector.extract_strided_slice %590 {offsets = [2, 0], sizes = [16, 64], strides = [1, 1]} : vector<18x64xf32> to vector<16x64xf32>
    %c27_i32_259 = arith.constant 27 : i32
    %612 = arith.muli %323, %c27_i32_259 : i32
    %c18_i32_260 = arith.constant 18 : i32
    %613 = arith.addi %612, %c18_i32_260 : i32
    %c6_i32_261 = arith.constant 6 : i32
    %614 = arith.addi %613, %c6_i32_261 : i32
    %c2_i32_262 = arith.constant 2 : i32
    %615 = arith.addi %614, %c2_i32_262 : i32
    %616 = arith.index_cast %615 : i32 to index
    %617 = memref.load %arg3[%616] : memref<108xf32, #tpu.memory_space<smem>>
    %618 = vector.broadcast %617 : f32 to vector<16x64xf32>
    %619 = arith.mulf %611, %618 : vector<16x64xf32>
    %620 = arith.addf %610, %619 : vector<16x64xf32>
    %621 = vector.broadcast %6 : vector<1x64xf32> to vector<16x64xf32>
    %622 = arith.mulf %620, %621 : vector<16x64xf32>
    %623 = arith.addf %526, %622 : vector<16x64xf32>
    %624 = arith.index_cast %323 : i32 to index
    %625 = memref.load %arg4[%624] : memref<4xf32, #tpu.memory_space<smem>>
    %626 = vector.broadcast %625 : f32 to vector<16x64xf32>
    %627 = arith.addf %623, %626 : vector<16x64xf32>
    %628 = arith.negf %627 : vector<16x64xf32>
    %629 = math.exp %628 : vector<16x64xf32>
    %cst_263 = arith.constant 1.000000e+00 : f32
    %630 = vector.broadcast %cst_263 : f32 to vector<16x64xf32>
    %631 = arith.addf %630, %629 : vector<16x64xf32>
    %632 = arith.divf %630, %631 : vector<16x64xf32>
    %633 = arith.mulf %325, %632 : vector<16x64xf32>
    %c0_264 = arith.constant 0 : index
    %c1_265 = arith.constant 1 : index
    %c0_266 = arith.constant 0 : index
    %c0_267 = arith.constant 0 : index
    %c0_268 = arith.constant 0 : index
    %634 = vector.load %arg8[%c0_264, %c1_265, %c0_266, %c0_267, %c0_268] : memref<1x4x1x16x64xf32, #tpu.memory_space<vmem>>, vector<1x1x1x16x64xf32>
    %635 = vector.shape_cast %634 : vector<1x1x1x16x64xf32> to vector<16x64xf32>
    %636 = vector.shape_cast %633 : vector<16x64xf32> to vector<1x1x1x16x64xf32>
    tpu.vector_store %arg8[%c0_264, %c1_265, %c0_266, %c0_267, %c0_268], %636 {strides = array<i32>} : memref<1x4x1x16x64xf32, #tpu.memory_space<vmem>>, vector<1x1x1x16x64xf32>,
    %c4_i32_269 = arith.constant 4 : i32
    %637 = arith.muli %arg1, %c4_i32_269 : i32
    %c2_i32_270 = arith.constant 2 : i32
    %638 = arith.addi %637, %c2_i32_270 : i32
    %c0_271 = arith.constant 0 : index
    %c2 = arith.constant 2 : index
    %c0_272 = arith.constant 0 : index
    %c0_273 = arith.constant 0 : index
    %c0_274 = arith.constant 0 : index
    %639 = vector.load %arg5[%c0_271, %c2, %c0_272, %c0_273, %c0_274] : memref<1x4x1x16x64xf32, #tpu.memory_space<vmem>>, vector<1x1x1x16x64xf32>
    %640 = vector.shape_cast %639 : vector<1x1x1x16x64xf32> to vector<16x64xf32>
    %c0_275 = arith.constant 0 : index
    %c2_276 = arith.constant 2 : index
    %c0_277 = arith.constant 0 : index
    %c0_278 = arith.constant 0 : index
    %c0_279 = arith.constant 0 : index
    %641 = vector.load %arg6[%c0_275, %c2_276, %c0_277, %c0_278, %c0_279] : memref<1x4x1x2x64xf32, #tpu.memory_space<vmem>>, vector<1x1x1x2x64xf32>
    %642 = vector.shape_cast %641 : vector<1x1x1x2x64xf32> to vector<2x64xf32>
    %c1_280 = arith.constant 1 : index
    %c9_281 = arith.constant 9 : index
    %643 = vector.load %arg9[%c1_280, %c9_281] : memref<18x82xf32, #tpu.memory_space<vmem>>, vector<16x64xf32>
    tpu.vector_store %arg9[%c1_280, %c9_281], %640 {strides = array<i32>} : memref<18x82xf32, #tpu.memory_space<vmem>>, vector<16x64xf32>,
    %644 = vector.extract_strided_slice %642 {offsets = [0, 0], sizes = [1, 64], strides = [1, 1]} : vector<2x64xf32> to vector<1x64xf32>
    %c0_282 = arith.constant 0 : index
    %c9_283 = arith.constant 9 : index
    %645 = vector.load %arg9[%c0_282, %c9_283] : memref<18x82xf32, #tpu.memory_space<vmem>>, vector<1x64xf32>
    tpu.vector_store %arg9[%c0_282, %c9_283], %644 {strides = array<i32>} : memref<18x82xf32, #tpu.memory_space<vmem>>, vector<1x64xf32>,
    %646 = vector.extract_strided_slice %642 {offsets = [1, 0], sizes = [1, 64], strides = [1, 1]} : vector<2x64xf32> to vector<1x64xf32>
    %c17_284 = arith.constant 17 : index
    %c9_285 = arith.constant 9 : index
    %647 = vector.load %arg9[%c17_284, %c9_285] : memref<18x82xf32, #tpu.memory_space<vmem>>, vector<1x64xf32>
    tpu.vector_store %arg9[%c17_284, %c9_285], %646 {strides = array<i32>} : memref<18x82xf32, #tpu.memory_space<vmem>>, vector<1x64xf32>,
    %c0_286 = arith.constant 0 : index
    %c0_287 = arith.constant 0 : index
    %648 = vector.load %arg9[%c0_286, %c0_287] : memref<18x82xf32, #tpu.memory_space<vmem>>, vector<18x82xf32>
    %cst_288 = arith.constant 0.000000e+00 : f32
    %649 = vector.broadcast %cst_288 : f32 to vector<16x64xf32>
    %cst_289 = arith.constant 0.000000e+00 : f32
    %650 = vector.broadcast %cst_289 : f32 to vector<16x64xf32>
    %651 = vector.extract_strided_slice %648 {offsets = [0, 0], sizes = [18, 64], strides = [1, 1]} : vector<18x82xf32> to vector<18x64xf32>
    %652 = vector.extract_strided_slice %651 {offsets = [0, 0], sizes = [16, 64], strides = [1, 1]} : vector<18x64xf32> to vector<16x64xf32>
    %c27_i32_290 = arith.constant 27 : i32
    %653 = arith.muli %638, %c27_i32_290 : i32
    %c0_i32_291 = arith.constant 0 : i32
    %654 = arith.addi %653, %c0_i32_291 : i32
    %c0_i32_292 = arith.constant 0 : i32
    %655 = arith.addi %654, %c0_i32_292 : i32
    %c0_i32_293 = arith.constant 0 : i32
    %656 = arith.addi %655, %c0_i32_293 : i32
    %657 = arith.index_cast %656 : i32 to index
    %658 = memref.load %arg3[%657] : memref<108xf32, #tpu.memory_space<smem>>
    %659 = vector.broadcast %658 : f32 to vector<16x64xf32>
    %660 = arith.mulf %652, %659 : vector<16x64xf32>
    %661 = arith.addf %650, %660 : vector<16x64xf32>
    %662 = vector.extract_strided_slice %651 {offsets = [1, 0], sizes = [16, 64], strides = [1, 1]} : vector<18x64xf32> to vector<16x64xf32>
    %c27_i32_294 = arith.constant 27 : i32
    %663 = arith.muli %638, %c27_i32_294 : i32
    %c9_i32_295 = arith.constant 9 : i32
    %664 = arith.addi %663, %c9_i32_295 : i32
    %c0_i32_296 = arith.constant 0 : i32
    %665 = arith.addi %664, %c0_i32_296 : i32
    %c0_i32_297 = arith.constant 0 : i32
    %666 = arith.addi %665, %c0_i32_297 : i32
    %667 = arith.index_cast %666 : i32 to index
    %668 = memref.load %arg3[%667] : memref<108xf32, #tpu.memory_space<smem>>
    %669 = vector.broadcast %668 : f32 to vector<16x64xf32>
    %670 = arith.mulf %662, %669 : vector<16x64xf32>
    %671 = arith.addf %661, %670 : vector<16x64xf32>
    %672 = vector.extract_strided_slice %651 {offsets = [2, 0], sizes = [16, 64], strides = [1, 1]} : vector<18x64xf32> to vector<16x64xf32>
    %c27_i32_298 = arith.constant 27 : i32
    %673 = arith.muli %638, %c27_i32_298 : i32
    %c18_i32_299 = arith.constant 18 : i32
    %674 = arith.addi %673, %c18_i32_299 : i32
    %c0_i32_300 = arith.constant 0 : i32
    %675 = arith.addi %674, %c0_i32_300 : i32
    %c0_i32_301 = arith.constant 0 : i32
    %676 = arith.addi %675, %c0_i32_301 : i32
    %677 = arith.index_cast %676 : i32 to index
    %678 = memref.load %arg3[%677] : memref<108xf32, #tpu.memory_space<smem>>
    %679 = vector.broadcast %678 : f32 to vector<16x64xf32>
    %680 = arith.mulf %672, %679 : vector<16x64xf32>
    %681 = arith.addf %671, %680 : vector<16x64xf32>
    %682 = vector.extract_strided_slice %648 {offsets = [0, 8], sizes = [18, 64], strides = [1, 1]} : vector<18x82xf32> to vector<18x64xf32>
    %683 = vector.extract_strided_slice %682 {offsets = [0, 0], sizes = [16, 64], strides = [1, 1]} : vector<18x64xf32> to vector<16x64xf32>
    %c27_i32_302 = arith.constant 27 : i32
    %684 = arith.muli %638, %c27_i32_302 : i32
    %c0_i32_303 = arith.constant 0 : i32
    %685 = arith.addi %684, %c0_i32_303 : i32
    %c3_i32_304 = arith.constant 3 : i32
    %686 = arith.addi %685, %c3_i32_304 : i32
    %c0_i32_305 = arith.constant 0 : i32
    %687 = arith.addi %686, %c0_i32_305 : i32
    %688 = arith.index_cast %687 : i32 to index
    %689 = memref.load %arg3[%688] : memref<108xf32, #tpu.memory_space<smem>>
    %690 = vector.broadcast %689 : f32 to vector<16x64xf32>
    %691 = arith.mulf %683, %690 : vector<16x64xf32>
    %692 = arith.addf %681, %691 : vector<16x64xf32>
    %693 = vector.extract_strided_slice %682 {offsets = [1, 0], sizes = [16, 64], strides = [1, 1]} : vector<18x64xf32> to vector<16x64xf32>
    %c27_i32_306 = arith.constant 27 : i32
    %694 = arith.muli %638, %c27_i32_306 : i32
    %c9_i32_307 = arith.constant 9 : i32
    %695 = arith.addi %694, %c9_i32_307 : i32
    %c3_i32_308 = arith.constant 3 : i32
    %696 = arith.addi %695, %c3_i32_308 : i32
    %c0_i32_309 = arith.constant 0 : i32
    %697 = arith.addi %696, %c0_i32_309 : i32
    %698 = arith.index_cast %697 : i32 to index
    %699 = memref.load %arg3[%698] : memref<108xf32, #tpu.memory_space<smem>>
    %700 = vector.broadcast %699 : f32 to vector<16x64xf32>
    %701 = arith.mulf %693, %700 : vector<16x64xf32>
    %702 = arith.addf %692, %701 : vector<16x64xf32>
    %703 = vector.extract_strided_slice %682 {offsets = [2, 0], sizes = [16, 64], strides = [1, 1]} : vector<18x64xf32> to vector<16x64xf32>
    %c27_i32_310 = arith.constant 27 : i32
    %704 = arith.muli %638, %c27_i32_310 : i32
    %c18_i32_311 = arith.constant 18 : i32
    %705 = arith.addi %704, %c18_i32_311 : i32
    %c3_i32_312 = arith.constant 3 : i32
    %706 = arith.addi %705, %c3_i32_312 : i32
    %c0_i32_313 = arith.constant 0 : i32
    %707 = arith.addi %706, %c0_i32_313 : i32
    %708 = arith.index_cast %707 : i32 to index
    %709 = memref.load %arg3[%708] : memref<108xf32, #tpu.memory_space<smem>>
    %710 = vector.broadcast %709 : f32 to vector<16x64xf32>
    %711 = arith.mulf %703, %710 : vector<16x64xf32>
    %712 = arith.addf %702, %711 : vector<16x64xf32>
    %713 = vector.extract_strided_slice %648 {offsets = [0, 16], sizes = [18, 64], strides = [1, 1]} : vector<18x82xf32> to vector<18x64xf32>
    %714 = vector.extract_strided_slice %713 {offsets = [0, 0], sizes = [16, 64], strides = [1, 1]} : vector<18x64xf32> to vector<16x64xf32>
    %c27_i32_314 = arith.constant 27 : i32
    %715 = arith.muli %638, %c27_i32_314 : i32
    %c0_i32_315 = arith.constant 0 : i32
    %716 = arith.addi %715, %c0_i32_315 : i32
    %c6_i32_316 = arith.constant 6 : i32
    %717 = arith.addi %716, %c6_i32_316 : i32
    %c0_i32_317 = arith.constant 0 : i32
    %718 = arith.addi %717, %c0_i32_317 : i32
    %719 = arith.index_cast %718 : i32 to index
    %720 = memref.load %arg3[%719] : memref<108xf32, #tpu.memory_space<smem>>
    %721 = vector.broadcast %720 : f32 to vector<16x64xf32>
    %722 = arith.mulf %714, %721 : vector<16x64xf32>
    %723 = arith.addf %712, %722 : vector<16x64xf32>
    %724 = vector.extract_strided_slice %713 {offsets = [1, 0], sizes = [16, 64], strides = [1, 1]} : vector<18x64xf32> to vector<16x64xf32>
    %c27_i32_318 = arith.constant 27 : i32
    %725 = arith.muli %638, %c27_i32_318 : i32
    %c9_i32_319 = arith.constant 9 : i32
    %726 = arith.addi %725, %c9_i32_319 : i32
    %c6_i32_320 = arith.constant 6 : i32
    %727 = arith.addi %726, %c6_i32_320 : i32
    %c0_i32_321 = arith.constant 0 : i32
    %728 = arith.addi %727, %c0_i32_321 : i32
    %729 = arith.index_cast %728 : i32 to index
    %730 = memref.load %arg3[%729] : memref<108xf32, #tpu.memory_space<smem>>
    %731 = vector.broadcast %730 : f32 to vector<16x64xf32>
    %732 = arith.mulf %724, %731 : vector<16x64xf32>
    %733 = arith.addf %723, %732 : vector<16x64xf32>
    %734 = vector.extract_strided_slice %713 {offsets = [2, 0], sizes = [16, 64], strides = [1, 1]} : vector<18x64xf32> to vector<16x64xf32>
    %c27_i32_322 = arith.constant 27 : i32
    %735 = arith.muli %638, %c27_i32_322 : i32
    %c18_i32_323 = arith.constant 18 : i32
    %736 = arith.addi %735, %c18_i32_323 : i32
    %c6_i32_324 = arith.constant 6 : i32
    %737 = arith.addi %736, %c6_i32_324 : i32
    %c0_i32_325 = arith.constant 0 : i32
    %738 = arith.addi %737, %c0_i32_325 : i32
    %739 = arith.index_cast %738 : i32 to index
    %740 = memref.load %arg3[%739] : memref<108xf32, #tpu.memory_space<smem>>
    %741 = vector.broadcast %740 : f32 to vector<16x64xf32>
    %742 = arith.mulf %734, %741 : vector<16x64xf32>
    %743 = arith.addf %733, %742 : vector<16x64xf32>
    %744 = vector.broadcast %5 : vector<1x64xf32> to vector<16x64xf32>
    %745 = arith.mulf %743, %744 : vector<16x64xf32>
    %746 = arith.addf %649, %745 : vector<16x64xf32>
    %cst_326 = arith.constant 0.000000e+00 : f32
    %747 = vector.broadcast %cst_326 : f32 to vector<16x64xf32>
    %748 = vector.extract_strided_slice %648 {offsets = [0, 1], sizes = [18, 64], strides = [1, 1]} : vector<18x82xf32> to vector<18x64xf32>
    %749 = vector.extract_strided_slice %748 {offsets = [0, 0], sizes = [16, 64], strides = [1, 1]} : vector<18x64xf32> to vector<16x64xf32>
    %c27_i32_327 = arith.constant 27 : i32
    %750 = arith.muli %638, %c27_i32_327 : i32
    %c0_i32_328 = arith.constant 0 : i32
    %751 = arith.addi %750, %c0_i32_328 : i32
    %c0_i32_329 = arith.constant 0 : i32
    %752 = arith.addi %751, %c0_i32_329 : i32
    %c1_i32_330 = arith.constant 1 : i32
    %753 = arith.addi %752, %c1_i32_330 : i32
    %754 = arith.index_cast %753 : i32 to index
    %755 = memref.load %arg3[%754] : memref<108xf32, #tpu.memory_space<smem>>
    %756 = vector.broadcast %755 : f32 to vector<16x64xf32>
    %757 = arith.mulf %749, %756 : vector<16x64xf32>
    %758 = arith.addf %747, %757 : vector<16x64xf32>
    %759 = vector.extract_strided_slice %748 {offsets = [1, 0], sizes = [16, 64], strides = [1, 1]} : vector<18x64xf32> to vector<16x64xf32>
    %c27_i32_331 = arith.constant 27 : i32
    %760 = arith.muli %638, %c27_i32_331 : i32
    %c9_i32_332 = arith.constant 9 : i32
    %761 = arith.addi %760, %c9_i32_332 : i32
    %c0_i32_333 = arith.constant 0 : i32
    %762 = arith.addi %761, %c0_i32_333 : i32
    %c1_i32_334 = arith.constant 1 : i32
    %763 = arith.addi %762, %c1_i32_334 : i32
    %764 = arith.index_cast %763 : i32 to index
    %765 = memref.load %arg3[%764] : memref<108xf32, #tpu.memory_space<smem>>
    %766 = vector.broadcast %765 : f32 to vector<16x64xf32>
    %767 = arith.mulf %759, %766 : vector<16x64xf32>
    %768 = arith.addf %758, %767 : vector<16x64xf32>
    %769 = vector.extract_strided_slice %748 {offsets = [2, 0], sizes = [16, 64], strides = [1, 1]} : vector<18x64xf32> to vector<16x64xf32>
    %c27_i32_335 = arith.constant 27 : i32
    %770 = arith.muli %638, %c27_i32_335 : i32
    %c18_i32_336 = arith.constant 18 : i32
    %771 = arith.addi %770, %c18_i32_336 : i32
    %c0_i32_337 = arith.constant 0 : i32
    %772 = arith.addi %771, %c0_i32_337 : i32
    %c1_i32_338 = arith.constant 1 : i32
    %773 = arith.addi %772, %c1_i32_338 : i32
    %774 = arith.index_cast %773 : i32 to index
    %775 = memref.load %arg3[%774] : memref<108xf32, #tpu.memory_space<smem>>
    %776 = vector.broadcast %775 : f32 to vector<16x64xf32>
    %777 = arith.mulf %769, %776 : vector<16x64xf32>
    %778 = arith.addf %768, %777 : vector<16x64xf32>
    %779 = vector.extract_strided_slice %648 {offsets = [0, 9], sizes = [18, 64], strides = [1, 1]} : vector<18x82xf32> to vector<18x64xf32>
    %780 = vector.extract_strided_slice %779 {offsets = [0, 0], sizes = [16, 64], strides = [1, 1]} : vector<18x64xf32> to vector<16x64xf32>
    %c27_i32_339 = arith.constant 27 : i32
    %781 = arith.muli %638, %c27_i32_339 : i32
    %c0_i32_340 = arith.constant 0 : i32
    %782 = arith.addi %781, %c0_i32_340 : i32
    %c3_i32_341 = arith.constant 3 : i32
    %783 = arith.addi %782, %c3_i32_341 : i32
    %c1_i32_342 = arith.constant 1 : i32
    %784 = arith.addi %783, %c1_i32_342 : i32
    %785 = arith.index_cast %784 : i32 to index
    %786 = memref.load %arg3[%785] : memref<108xf32, #tpu.memory_space<smem>>
    %787 = vector.broadcast %786 : f32 to vector<16x64xf32>
    %788 = arith.mulf %780, %787 : vector<16x64xf32>
    %789 = arith.addf %778, %788 : vector<16x64xf32>
    %790 = vector.extract_strided_slice %779 {offsets = [1, 0], sizes = [16, 64], strides = [1, 1]} : vector<18x64xf32> to vector<16x64xf32>
    %c27_i32_343 = arith.constant 27 : i32
    %791 = arith.muli %638, %c27_i32_343 : i32
    %c9_i32_344 = arith.constant 9 : i32
    %792 = arith.addi %791, %c9_i32_344 : i32
    %c3_i32_345 = arith.constant 3 : i32
    %793 = arith.addi %792, %c3_i32_345 : i32
    %c1_i32_346 = arith.constant 1 : i32
    %794 = arith.addi %793, %c1_i32_346 : i32
    %795 = arith.index_cast %794 : i32 to index
    %796 = memref.load %arg3[%795] : memref<108xf32, #tpu.memory_space<smem>>
    %797 = vector.broadcast %796 : f32 to vector<16x64xf32>
    %798 = arith.mulf %790, %797 : vector<16x64xf32>
    %799 = arith.addf %789, %798 : vector<16x64xf32>
    %800 = vector.extract_strided_slice %779 {offsets = [2, 0], sizes = [16, 64], strides = [1, 1]} : vector<18x64xf32> to vector<16x64xf32>
    %c27_i32_347 = arith.constant 27 : i32
    %801 = arith.muli %638, %c27_i32_347 : i32
    %c18_i32_348 = arith.constant 18 : i32
    %802 = arith.addi %801, %c18_i32_348 : i32
    %c3_i32_349 = arith.constant 3 : i32
    %803 = arith.addi %802, %c3_i32_349 : i32
    %c1_i32_350 = arith.constant 1 : i32
    %804 = arith.addi %803, %c1_i32_350 : i32
    %805 = arith.index_cast %804 : i32 to index
    %806 = memref.load %arg3[%805] : memref<108xf32, #tpu.memory_space<smem>>
    %807 = vector.broadcast %806 : f32 to vector<16x64xf32>
    %808 = arith.mulf %800, %807 : vector<16x64xf32>
    %809 = arith.addf %799, %808 : vector<16x64xf32>
    %810 = vector.extract_strided_slice %648 {offsets = [0, 17], sizes = [18, 64], strides = [1, 1]} : vector<18x82xf32> to vector<18x64xf32>
    %811 = vector.extract_strided_slice %810 {offsets = [0, 0], sizes = [16, 64], strides = [1, 1]} : vector<18x64xf32> to vector<16x64xf32>
    %c27_i32_351 = arith.constant 27 : i32
    %812 = arith.muli %638, %c27_i32_351 : i32
    %c0_i32_352 = arith.constant 0 : i32
    %813 = arith.addi %812, %c0_i32_352 : i32
    %c6_i32_353 = arith.constant 6 : i32
    %814 = arith.addi %813, %c6_i32_353 : i32
    %c1_i32_354 = arith.constant 1 : i32
    %815 = arith.addi %814, %c1_i32_354 : i32
    %816 = arith.index_cast %815 : i32 to index
    %817 = memref.load %arg3[%816] : memref<108xf32, #tpu.memory_space<smem>>
    %818 = vector.broadcast %817 : f32 to vector<16x64xf32>
    %819 = arith.mulf %811, %818 : vector<16x64xf32>
    %820 = arith.addf %809, %819 : vector<16x64xf32>
    %821 = vector.extract_strided_slice %810 {offsets = [1, 0], sizes = [16, 64], strides = [1, 1]} : vector<18x64xf32> to vector<16x64xf32>
    %c27_i32_355 = arith.constant 27 : i32
    %822 = arith.muli %638, %c27_i32_355 : i32
    %c9_i32_356 = arith.constant 9 : i32
    %823 = arith.addi %822, %c9_i32_356 : i32
    %c6_i32_357 = arith.constant 6 : i32
    %824 = arith.addi %823, %c6_i32_357 : i32
    %c1_i32_358 = arith.constant 1 : i32
    %825 = arith.addi %824, %c1_i32_358 : i32
    %826 = arith.index_cast %825 : i32 to index
    %827 = memref.load %arg3[%826] : memref<108xf32, #tpu.memory_space<smem>>
    %828 = vector.broadcast %827 : f32 to vector<16x64xf32>
    %829 = arith.mulf %821, %828 : vector<16x64xf32>
    %830 = arith.addf %820, %829 : vector<16x64xf32>
    %831 = vector.extract_strided_slice %810 {offsets = [2, 0], sizes = [16, 64], strides = [1, 1]} : vector<18x64xf32> to vector<16x64xf32>
    %c27_i32_359 = arith.constant 27 : i32
    %832 = arith.muli %638, %c27_i32_359 : i32
    %c18_i32_360 = arith.constant 18 : i32
    %833 = arith.addi %832, %c18_i32_360 : i32
    %c6_i32_361 = arith.constant 6 : i32
    %834 = arith.addi %833, %c6_i32_361 : i32
    %c1_i32_362 = arith.constant 1 : i32
    %835 = arith.addi %834, %c1_i32_362 : i32
    %836 = arith.index_cast %835 : i32 to index
    %837 = memref.load %arg3[%836] : memref<108xf32, #tpu.memory_space<smem>>
    %838 = vector.broadcast %837 : f32 to vector<16x64xf32>
    %839 = arith.mulf %831, %838 : vector<16x64xf32>
    %840 = arith.addf %830, %839 : vector<16x64xf32>
    %841 = arith.addf %746, %840 : vector<16x64xf32>
    %cst_363 = arith.constant 0.000000e+00 : f32
    %842 = vector.broadcast %cst_363 : f32 to vector<16x64xf32>
    %843 = vector.extract_strided_slice %648 {offsets = [0, 2], sizes = [18, 64], strides = [1, 1]} : vector<18x82xf32> to vector<18x64xf32>
    %844 = vector.extract_strided_slice %843 {offsets = [0, 0], sizes = [16, 64], strides = [1, 1]} : vector<18x64xf32> to vector<16x64xf32>
    %c27_i32_364 = arith.constant 27 : i32
    %845 = arith.muli %638, %c27_i32_364 : i32
    %c0_i32_365 = arith.constant 0 : i32
    %846 = arith.addi %845, %c0_i32_365 : i32
    %c0_i32_366 = arith.constant 0 : i32
    %847 = arith.addi %846, %c0_i32_366 : i32
    %c2_i32_367 = arith.constant 2 : i32
    %848 = arith.addi %847, %c2_i32_367 : i32
    %849 = arith.index_cast %848 : i32 to index
    %850 = memref.load %arg3[%849] : memref<108xf32, #tpu.memory_space<smem>>
    %851 = vector.broadcast %850 : f32 to vector<16x64xf32>
    %852 = arith.mulf %844, %851 : vector<16x64xf32>
    %853 = arith.addf %842, %852 : vector<16x64xf32>
    %854 = vector.extract_strided_slice %843 {offsets = [1, 0], sizes = [16, 64], strides = [1, 1]} : vector<18x64xf32> to vector<16x64xf32>
    %c27_i32_368 = arith.constant 27 : i32
    %855 = arith.muli %638, %c27_i32_368 : i32
    %c9_i32_369 = arith.constant 9 : i32
    %856 = arith.addi %855, %c9_i32_369 : i32
    %c0_i32_370 = arith.constant 0 : i32
    %857 = arith.addi %856, %c0_i32_370 : i32
    %c2_i32_371 = arith.constant 2 : i32
    %858 = arith.addi %857, %c2_i32_371 : i32
    %859 = arith.index_cast %858 : i32 to index
    %860 = memref.load %arg3[%859] : memref<108xf32, #tpu.memory_space<smem>>
    %861 = vector.broadcast %860 : f32 to vector<16x64xf32>
    %862 = arith.mulf %854, %861 : vector<16x64xf32>
    %863 = arith.addf %853, %862 : vector<16x64xf32>
    %864 = vector.extract_strided_slice %843 {offsets = [2, 0], sizes = [16, 64], strides = [1, 1]} : vector<18x64xf32> to vector<16x64xf32>
    %c27_i32_372 = arith.constant 27 : i32
    %865 = arith.muli %638, %c27_i32_372 : i32
    %c18_i32_373 = arith.constant 18 : i32
    %866 = arith.addi %865, %c18_i32_373 : i32
    %c0_i32_374 = arith.constant 0 : i32
    %867 = arith.addi %866, %c0_i32_374 : i32
    %c2_i32_375 = arith.constant 2 : i32
    %868 = arith.addi %867, %c2_i32_375 : i32
    %869 = arith.index_cast %868 : i32 to index
    %870 = memref.load %arg3[%869] : memref<108xf32, #tpu.memory_space<smem>>
    %871 = vector.broadcast %870 : f32 to vector<16x64xf32>
    %872 = arith.mulf %864, %871 : vector<16x64xf32>
    %873 = arith.addf %863, %872 : vector<16x64xf32>
    %874 = vector.extract_strided_slice %648 {offsets = [0, 10], sizes = [18, 64], strides = [1, 1]} : vector<18x82xf32> to vector<18x64xf32>
    %875 = vector.extract_strided_slice %874 {offsets = [0, 0], sizes = [16, 64], strides = [1, 1]} : vector<18x64xf32> to vector<16x64xf32>
    %c27_i32_376 = arith.constant 27 : i32
    %876 = arith.muli %638, %c27_i32_376 : i32
    %c0_i32_377 = arith.constant 0 : i32
    %877 = arith.addi %876, %c0_i32_377 : i32
    %c3_i32_378 = arith.constant 3 : i32
    %878 = arith.addi %877, %c3_i32_378 : i32
    %c2_i32_379 = arith.constant 2 : i32
    %879 = arith.addi %878, %c2_i32_379 : i32
    %880 = arith.index_cast %879 : i32 to index
    %881 = memref.load %arg3[%880] : memref<108xf32, #tpu.memory_space<smem>>
    %882 = vector.broadcast %881 : f32 to vector<16x64xf32>
    %883 = arith.mulf %875, %882 : vector<16x64xf32>
    %884 = arith.addf %873, %883 : vector<16x64xf32>
    %885 = vector.extract_strided_slice %874 {offsets = [1, 0], sizes = [16, 64], strides = [1, 1]} : vector<18x64xf32> to vector<16x64xf32>
    %c27_i32_380 = arith.constant 27 : i32
    %886 = arith.muli %638, %c27_i32_380 : i32
    %c9_i32_381 = arith.constant 9 : i32
    %887 = arith.addi %886, %c9_i32_381 : i32
    %c3_i32_382 = arith.constant 3 : i32
    %888 = arith.addi %887, %c3_i32_382 : i32
    %c2_i32_383 = arith.constant 2 : i32
    %889 = arith.addi %888, %c2_i32_383 : i32
    %890 = arith.index_cast %889 : i32 to index
    %891 = memref.load %arg3[%890] : memref<108xf32, #tpu.memory_space<smem>>
    %892 = vector.broadcast %891 : f32 to vector<16x64xf32>
    %893 = arith.mulf %885, %892 : vector<16x64xf32>
    %894 = arith.addf %884, %893 : vector<16x64xf32>
    %895 = vector.extract_strided_slice %874 {offsets = [2, 0], sizes = [16, 64], strides = [1, 1]} : vector<18x64xf32> to vector<16x64xf32>
    %c27_i32_384 = arith.constant 27 : i32
    %896 = arith.muli %638, %c27_i32_384 : i32
    %c18_i32_385 = arith.constant 18 : i32
    %897 = arith.addi %896, %c18_i32_385 : i32
    %c3_i32_386 = arith.constant 3 : i32
    %898 = arith.addi %897, %c3_i32_386 : i32
    %c2_i32_387 = arith.constant 2 : i32
    %899 = arith.addi %898, %c2_i32_387 : i32
    %900 = arith.index_cast %899 : i32 to index
    %901 = memref.load %arg3[%900] : memref<108xf32, #tpu.memory_space<smem>>
    %902 = vector.broadcast %901 : f32 to vector<16x64xf32>
    %903 = arith.mulf %895, %902 : vector<16x64xf32>
    %904 = arith.addf %894, %903 : vector<16x64xf32>
    %905 = vector.extract_strided_slice %648 {offsets = [0, 18], sizes = [18, 64], strides = [1, 1]} : vector<18x82xf32> to vector<18x64xf32>
    %906 = vector.extract_strided_slice %905 {offsets = [0, 0], sizes = [16, 64], strides = [1, 1]} : vector<18x64xf32> to vector<16x64xf32>
    %c27_i32_388 = arith.constant 27 : i32
    %907 = arith.muli %638, %c27_i32_388 : i32
    %c0_i32_389 = arith.constant 0 : i32
    %908 = arith.addi %907, %c0_i32_389 : i32
    %c6_i32_390 = arith.constant 6 : i32
    %909 = arith.addi %908, %c6_i32_390 : i32
    %c2_i32_391 = arith.constant 2 : i32
    %910 = arith.addi %909, %c2_i32_391 : i32
    %911 = arith.index_cast %910 : i32 to index
    %912 = memref.load %arg3[%911] : memref<108xf32, #tpu.memory_space<smem>>
    %913 = vector.broadcast %912 : f32 to vector<16x64xf32>
    %914 = arith.mulf %906, %913 : vector<16x64xf32>
    %915 = arith.addf %904, %914 : vector<16x64xf32>
    %916 = vector.extract_strided_slice %905 {offsets = [1, 0], sizes = [16, 64], strides = [1, 1]} : vector<18x64xf32> to vector<16x64xf32>
    %c27_i32_392 = arith.constant 27 : i32
    %917 = arith.muli %638, %c27_i32_392 : i32
    %c9_i32_393 = arith.constant 9 : i32
    %918 = arith.addi %917, %c9_i32_393 : i32
    %c6_i32_394 = arith.constant 6 : i32
    %919 = arith.addi %918, %c6_i32_394 : i32
    %c2_i32_395 = arith.constant 2 : i32
    %920 = arith.addi %919, %c2_i32_395 : i32
    %921 = arith.index_cast %920 : i32 to index
    %922 = memref.load %arg3[%921] : memref<108xf32, #tpu.memory_space<smem>>
    %923 = vector.broadcast %922 : f32 to vector<16x64xf32>
    %924 = arith.mulf %916, %923 : vector<16x64xf32>
    %925 = arith.addf %915, %924 : vector<16x64xf32>
    %926 = vector.extract_strided_slice %905 {offsets = [2, 0], sizes = [16, 64], strides = [1, 1]} : vector<18x64xf32> to vector<16x64xf32>
    %c27_i32_396 = arith.constant 27 : i32
    %927 = arith.muli %638, %c27_i32_396 : i32
    %c18_i32_397 = arith.constant 18 : i32
    %928 = arith.addi %927, %c18_i32_397 : i32
    %c6_i32_398 = arith.constant 6 : i32
    %929 = arith.addi %928, %c6_i32_398 : i32
    %c2_i32_399 = arith.constant 2 : i32
    %930 = arith.addi %929, %c2_i32_399 : i32
    %931 = arith.index_cast %930 : i32 to index
    %932 = memref.load %arg3[%931] : memref<108xf32, #tpu.memory_space<smem>>
    %933 = vector.broadcast %932 : f32 to vector<16x64xf32>
    %934 = arith.mulf %926, %933 : vector<16x64xf32>
    %935 = arith.addf %925, %934 : vector<16x64xf32>
    %936 = vector.broadcast %6 : vector<1x64xf32> to vector<16x64xf32>
    %937 = arith.mulf %935, %936 : vector<16x64xf32>
    %938 = arith.addf %841, %937 : vector<16x64xf32>
    %939 = arith.index_cast %638 : i32 to index
    %940 = memref.load %arg4[%939] : memref<4xf32, #tpu.memory_space<smem>>
    %941 = vector.broadcast %940 : f32 to vector<16x64xf32>
    %942 = arith.addf %938, %941 : vector<16x64xf32>
    %943 = arith.negf %942 : vector<16x64xf32>
    %944 = math.exp %943 : vector<16x64xf32>
    %cst_400 = arith.constant 1.000000e+00 : f32
    %945 = vector.broadcast %cst_400 : f32 to vector<16x64xf32>
    %946 = arith.addf %945, %944 : vector<16x64xf32>
    %947 = arith.divf %945, %946 : vector<16x64xf32>
    %948 = arith.mulf %640, %947 : vector<16x64xf32>
    %c0_401 = arith.constant 0 : index
    %c2_402 = arith.constant 2 : index
    %c0_403 = arith.constant 0 : index
    %c0_404 = arith.constant 0 : index
    %c0_405 = arith.constant 0 : index
    %949 = vector.load %arg8[%c0_401, %c2_402, %c0_403, %c0_404, %c0_405] : memref<1x4x1x16x64xf32, #tpu.memory_space<vmem>>, vector<1x1x1x16x64xf32>
    %950 = vector.shape_cast %949 : vector<1x1x1x16x64xf32> to vector<16x64xf32>
    %951 = vector.shape_cast %948 : vector<16x64xf32> to vector<1x1x1x16x64xf32>
    tpu.vector_store %arg8[%c0_401, %c2_402, %c0_403, %c0_404, %c0_405], %951 {strides = array<i32>} : memref<1x4x1x16x64xf32, #tpu.memory_space<vmem>>, vector<1x1x1x16x64xf32>,
    %c4_i32_406 = arith.constant 4 : i32
    %952 = arith.muli %arg1, %c4_i32_406 : i32
    %c3_i32_407 = arith.constant 3 : i32
    %953 = arith.addi %952, %c3_i32_407 : i32
    %c0_408 = arith.constant 0 : index
    %c3 = arith.constant 3 : index
    %c0_409 = arith.constant 0 : index
    %c0_410 = arith.constant 0 : index
    %c0_411 = arith.constant 0 : index
    %954 = vector.load %arg5[%c0_408, %c3, %c0_409, %c0_410, %c0_411] : memref<1x4x1x16x64xf32, #tpu.memory_space<vmem>>, vector<1x1x1x16x64xf32>
    %955 = vector.shape_cast %954 : vector<1x1x1x16x64xf32> to vector<16x64xf32>
    %c0_412 = arith.constant 0 : index
    %c3_413 = arith.constant 3 : index
    %c0_414 = arith.constant 0 : index
    %c0_415 = arith.constant 0 : index
    %c0_416 = arith.constant 0 : index
    %956 = vector.load %arg6[%c0_412, %c3_413, %c0_414, %c0_415, %c0_416] : memref<1x4x1x2x64xf32, #tpu.memory_space<vmem>>, vector<1x1x1x2x64xf32>
    %957 = vector.shape_cast %956 : vector<1x1x1x2x64xf32> to vector<2x64xf32>
    %c1_417 = arith.constant 1 : index
    %c9_418 = arith.constant 9 : index
    %958 = vector.load %arg9[%c1_417, %c9_418] : memref<18x82xf32, #tpu.memory_space<vmem>>, vector<16x64xf32>
    tpu.vector_store %arg9[%c1_417, %c9_418], %955 {strides = array<i32>} : memref<18x82xf32, #tpu.memory_space<vmem>>, vector<16x64xf32>,
    %959 = vector.extract_strided_slice %957 {offsets = [0, 0], sizes = [1, 64], strides = [1, 1]} : vector<2x64xf32> to vector<1x64xf32>
    %c0_419 = arith.constant 0 : index
    %c9_420 = arith.constant 9 : index
    %960 = vector.load %arg9[%c0_419, %c9_420] : memref<18x82xf32, #tpu.memory_space<vmem>>, vector<1x64xf32>
    tpu.vector_store %arg9[%c0_419, %c9_420], %959 {strides = array<i32>} : memref<18x82xf32, #tpu.memory_space<vmem>>, vector<1x64xf32>,
    %961 = vector.extract_strided_slice %957 {offsets = [1, 0], sizes = [1, 64], strides = [1, 1]} : vector<2x64xf32> to vector<1x64xf32>
    %c17_421 = arith.constant 17 : index
    %c9_422 = arith.constant 9 : index
    %962 = vector.load %arg9[%c17_421, %c9_422] : memref<18x82xf32, #tpu.memory_space<vmem>>, vector<1x64xf32>
    tpu.vector_store %arg9[%c17_421, %c9_422], %961 {strides = array<i32>} : memref<18x82xf32, #tpu.memory_space<vmem>>, vector<1x64xf32>,
    %c0_423 = arith.constant 0 : index
    %c0_424 = arith.constant 0 : index
    %963 = vector.load %arg9[%c0_423, %c0_424] : memref<18x82xf32, #tpu.memory_space<vmem>>, vector<18x82xf32>
    %cst_425 = arith.constant 0.000000e+00 : f32
    %964 = vector.broadcast %cst_425 : f32 to vector<16x64xf32>
    %cst_426 = arith.constant 0.000000e+00 : f32
    %965 = vector.broadcast %cst_426 : f32 to vector<16x64xf32>
    %966 = vector.extract_strided_slice %963 {offsets = [0, 0], sizes = [18, 64], strides = [1, 1]} : vector<18x82xf32> to vector<18x64xf32>
    %967 = vector.extract_strided_slice %966 {offsets = [0, 0], sizes = [16, 64], strides = [1, 1]} : vector<18x64xf32> to vector<16x64xf32>
    %c27_i32_427 = arith.constant 27 : i32
    %968 = arith.muli %953, %c27_i32_427 : i32
    %c0_i32_428 = arith.constant 0 : i32
    %969 = arith.addi %968, %c0_i32_428 : i32
    %c0_i32_429 = arith.constant 0 : i32
    %970 = arith.addi %969, %c0_i32_429 : i32
    %c0_i32_430 = arith.constant 0 : i32
    %971 = arith.addi %970, %c0_i32_430 : i32
    %972 = arith.index_cast %971 : i32 to index
    %973 = memref.load %arg3[%972] : memref<108xf32, #tpu.memory_space<smem>>
    %974 = vector.broadcast %973 : f32 to vector<16x64xf32>
    %975 = arith.mulf %967, %974 : vector<16x64xf32>
    %976 = arith.addf %965, %975 : vector<16x64xf32>
    %977 = vector.extract_strided_slice %966 {offsets = [1, 0], sizes = [16, 64], strides = [1, 1]} : vector<18x64xf32> to vector<16x64xf32>
    %c27_i32_431 = arith.constant 27 : i32
    %978 = arith.muli %953, %c27_i32_431 : i32
    %c9_i32_432 = arith.constant 9 : i32
    %979 = arith.addi %978, %c9_i32_432 : i32
    %c0_i32_433 = arith.constant 0 : i32
    %980 = arith.addi %979, %c0_i32_433 : i32
    %c0_i32_434 = arith.constant 0 : i32
    %981 = arith.addi %980, %c0_i32_434 : i32
    %982 = arith.index_cast %981 : i32 to index
    %983 = memref.load %arg3[%982] : memref<108xf32, #tpu.memory_space<smem>>
    %984 = vector.broadcast %983 : f32 to vector<16x64xf32>
    %985 = arith.mulf %977, %984 : vector<16x64xf32>
    %986 = arith.addf %976, %985 : vector<16x64xf32>
    %987 = vector.extract_strided_slice %966 {offsets = [2, 0], sizes = [16, 64], strides = [1, 1]} : vector<18x64xf32> to vector<16x64xf32>
    %c27_i32_435 = arith.constant 27 : i32
    %988 = arith.muli %953, %c27_i32_435 : i32
    %c18_i32_436 = arith.constant 18 : i32
    %989 = arith.addi %988, %c18_i32_436 : i32
    %c0_i32_437 = arith.constant 0 : i32
    %990 = arith.addi %989, %c0_i32_437 : i32
    %c0_i32_438 = arith.constant 0 : i32
    %991 = arith.addi %990, %c0_i32_438 : i32
    %992 = arith.index_cast %991 : i32 to index
    %993 = memref.load %arg3[%992] : memref<108xf32, #tpu.memory_space<smem>>
    %994 = vector.broadcast %993 : f32 to vector<16x64xf32>
    %995 = arith.mulf %987, %994 : vector<16x64xf32>
    %996 = arith.addf %986, %995 : vector<16x64xf32>
    %997 = vector.extract_strided_slice %963 {offsets = [0, 8], sizes = [18, 64], strides = [1, 1]} : vector<18x82xf32> to vector<18x64xf32>
    %998 = vector.extract_strided_slice %997 {offsets = [0, 0], sizes = [16, 64], strides = [1, 1]} : vector<18x64xf32> to vector<16x64xf32>
    %c27_i32_439 = arith.constant 27 : i32
    %999 = arith.muli %953, %c27_i32_439 : i32
    %c0_i32_440 = arith.constant 0 : i32
    %1000 = arith.addi %999, %c0_i32_440 : i32
    %c3_i32_441 = arith.constant 3 : i32
    %1001 = arith.addi %1000, %c3_i32_441 : i32
    %c0_i32_442 = arith.constant 0 : i32
    %1002 = arith.addi %1001, %c0_i32_442 : i32
    %1003 = arith.index_cast %1002 : i32 to index
    %1004 = memref.load %arg3[%1003] : memref<108xf32, #tpu.memory_space<smem>>
    %1005 = vector.broadcast %1004 : f32 to vector<16x64xf32>
    %1006 = arith.mulf %998, %1005 : vector<16x64xf32>
    %1007 = arith.addf %996, %1006 : vector<16x64xf32>
    %1008 = vector.extract_strided_slice %997 {offsets = [1, 0], sizes = [16, 64], strides = [1, 1]} : vector<18x64xf32> to vector<16x64xf32>
    %c27_i32_443 = arith.constant 27 : i32
    %1009 = arith.muli %953, %c27_i32_443 : i32
    %c9_i32_444 = arith.constant 9 : i32
    %1010 = arith.addi %1009, %c9_i32_444 : i32
    %c3_i32_445 = arith.constant 3 : i32
    %1011 = arith.addi %1010, %c3_i32_445 : i32
    %c0_i32_446 = arith.constant 0 : i32
    %1012 = arith.addi %1011, %c0_i32_446 : i32
    %1013 = arith.index_cast %1012 : i32 to index
    %1014 = memref.load %arg3[%1013] : memref<108xf32, #tpu.memory_space<smem>>
    %1015 = vector.broadcast %1014 : f32 to vector<16x64xf32>
    %1016 = arith.mulf %1008, %1015 : vector<16x64xf32>
    %1017 = arith.addf %1007, %1016 : vector<16x64xf32>
    %1018 = vector.extract_strided_slice %997 {offsets = [2, 0], sizes = [16, 64], strides = [1, 1]} : vector<18x64xf32> to vector<16x64xf32>
    %c27_i32_447 = arith.constant 27 : i32
    %1019 = arith.muli %953, %c27_i32_447 : i32
    %c18_i32_448 = arith.constant 18 : i32
    %1020 = arith.addi %1019, %c18_i32_448 : i32
    %c3_i32_449 = arith.constant 3 : i32
    %1021 = arith.addi %1020, %c3_i32_449 : i32
    %c0_i32_450 = arith.constant 0 : i32
    %1022 = arith.addi %1021, %c0_i32_450 : i32
    %1023 = arith.index_cast %1022 : i32 to index
    %1024 = memref.load %arg3[%1023] : memref<108xf32, #tpu.memory_space<smem>>
    %1025 = vector.broadcast %1024 : f32 to vector<16x64xf32>
    %1026 = arith.mulf %1018, %1025 : vector<16x64xf32>
    %1027 = arith.addf %1017, %1026 : vector<16x64xf32>
    %1028 = vector.extract_strided_slice %963 {offsets = [0, 16], sizes = [18, 64], strides = [1, 1]} : vector<18x82xf32> to vector<18x64xf32>
    %1029 = vector.extract_strided_slice %1028 {offsets = [0, 0], sizes = [16, 64], strides = [1, 1]} : vector<18x64xf32> to vector<16x64xf32>
    %c27_i32_451 = arith.constant 27 : i32
    %1030 = arith.muli %953, %c27_i32_451 : i32
    %c0_i32_452 = arith.constant 0 : i32
    %1031 = arith.addi %1030, %c0_i32_452 : i32
    %c6_i32_453 = arith.constant 6 : i32
    %1032 = arith.addi %1031, %c6_i32_453 : i32
    %c0_i32_454 = arith.constant 0 : i32
    %1033 = arith.addi %1032, %c0_i32_454 : i32
    %1034 = arith.index_cast %1033 : i32 to index
    %1035 = memref.load %arg3[%1034] : memref<108xf32, #tpu.memory_space<smem>>
    %1036 = vector.broadcast %1035 : f32 to vector<16x64xf32>
    %1037 = arith.mulf %1029, %1036 : vector<16x64xf32>
    %1038 = arith.addf %1027, %1037 : vector<16x64xf32>
    %1039 = vector.extract_strided_slice %1028 {offsets = [1, 0], sizes = [16, 64], strides = [1, 1]} : vector<18x64xf32> to vector<16x64xf32>
    %c27_i32_455 = arith.constant 27 : i32
    %1040 = arith.muli %953, %c27_i32_455 : i32
    %c9_i32_456 = arith.constant 9 : i32
    %1041 = arith.addi %1040, %c9_i32_456 : i32
    %c6_i32_457 = arith.constant 6 : i32
    %1042 = arith.addi %1041, %c6_i32_457 : i32
    %c0_i32_458 = arith.constant 0 : i32
    %1043 = arith.addi %1042, %c0_i32_458 : i32
    %1044 = arith.index_cast %1043 : i32 to index
    %1045 = memref.load %arg3[%1044] : memref<108xf32, #tpu.memory_space<smem>>
    %1046 = vector.broadcast %1045 : f32 to vector<16x64xf32>
    %1047 = arith.mulf %1039, %1046 : vector<16x64xf32>
    %1048 = arith.addf %1038, %1047 : vector<16x64xf32>
    %1049 = vector.extract_strided_slice %1028 {offsets = [2, 0], sizes = [16, 64], strides = [1, 1]} : vector<18x64xf32> to vector<16x64xf32>
    %c27_i32_459 = arith.constant 27 : i32
    %1050 = arith.muli %953, %c27_i32_459 : i32
    %c18_i32_460 = arith.constant 18 : i32
    %1051 = arith.addi %1050, %c18_i32_460 : i32
    %c6_i32_461 = arith.constant 6 : i32
    %1052 = arith.addi %1051, %c6_i32_461 : i32
    %c0_i32_462 = arith.constant 0 : i32
    %1053 = arith.addi %1052, %c0_i32_462 : i32
    %1054 = arith.index_cast %1053 : i32 to index
    %1055 = memref.load %arg3[%1054] : memref<108xf32, #tpu.memory_space<smem>>
    %1056 = vector.broadcast %1055 : f32 to vector<16x64xf32>
    %1057 = arith.mulf %1049, %1056 : vector<16x64xf32>
    %1058 = arith.addf %1048, %1057 : vector<16x64xf32>
    %1059 = vector.broadcast %5 : vector<1x64xf32> to vector<16x64xf32>
    %1060 = arith.mulf %1058, %1059 : vector<16x64xf32>
    %1061 = arith.addf %964, %1060 : vector<16x64xf32>
    %cst_463 = arith.constant 0.000000e+00 : f32
    %1062 = vector.broadcast %cst_463 : f32 to vector<16x64xf32>
    %1063 = vector.extract_strided_slice %963 {offsets = [0, 1], sizes = [18, 64], strides = [1, 1]} : vector<18x82xf32> to vector<18x64xf32>
    %1064 = vector.extract_strided_slice %1063 {offsets = [0, 0], sizes = [16, 64], strides = [1, 1]} : vector<18x64xf32> to vector<16x64xf32>
    %c27_i32_464 = arith.constant 27 : i32
    %1065 = arith.muli %953, %c27_i32_464 : i32
    %c0_i32_465 = arith.constant 0 : i32
    %1066 = arith.addi %1065, %c0_i32_465 : i32
    %c0_i32_466 = arith.constant 0 : i32
    %1067 = arith.addi %1066, %c0_i32_466 : i32
    %c1_i32_467 = arith.constant 1 : i32
    %1068 = arith.addi %1067, %c1_i32_467 : i32
    %1069 = arith.index_cast %1068 : i32 to index
    %1070 = memref.load %arg3[%1069] : memref<108xf32, #tpu.memory_space<smem>>
    %1071 = vector.broadcast %1070 : f32 to vector<16x64xf32>
    %1072 = arith.mulf %1064, %1071 : vector<16x64xf32>
    %1073 = arith.addf %1062, %1072 : vector<16x64xf32>
    %1074 = vector.extract_strided_slice %1063 {offsets = [1, 0], sizes = [16, 64], strides = [1, 1]} : vector<18x64xf32> to vector<16x64xf32>
    %c27_i32_468 = arith.constant 27 : i32
    %1075 = arith.muli %953, %c27_i32_468 : i32
    %c9_i32_469 = arith.constant 9 : i32
    %1076 = arith.addi %1075, %c9_i32_469 : i32
    %c0_i32_470 = arith.constant 0 : i32
    %1077 = arith.addi %1076, %c0_i32_470 : i32
    %c1_i32_471 = arith.constant 1 : i32
    %1078 = arith.addi %1077, %c1_i32_471 : i32
    %1079 = arith.index_cast %1078 : i32 to index
    %1080 = memref.load %arg3[%1079] : memref<108xf32, #tpu.memory_space<smem>>
    %1081 = vector.broadcast %1080 : f32 to vector<16x64xf32>
    %1082 = arith.mulf %1074, %1081 : vector<16x64xf32>
    %1083 = arith.addf %1073, %1082 : vector<16x64xf32>
    %1084 = vector.extract_strided_slice %1063 {offsets = [2, 0], sizes = [16, 64], strides = [1, 1]} : vector<18x64xf32> to vector<16x64xf32>
    %c27_i32_472 = arith.constant 27 : i32
    %1085 = arith.muli %953, %c27_i32_472 : i32
    %c18_i32_473 = arith.constant 18 : i32
    %1086 = arith.addi %1085, %c18_i32_473 : i32
    %c0_i32_474 = arith.constant 0 : i32
    %1087 = arith.addi %1086, %c0_i32_474 : i32
    %c1_i32_475 = arith.constant 1 : i32
    %1088 = arith.addi %1087, %c1_i32_475 : i32
    %1089 = arith.index_cast %1088 : i32 to index
    %1090 = memref.load %arg3[%1089] : memref<108xf32, #tpu.memory_space<smem>>
    %1091 = vector.broadcast %1090 : f32 to vector<16x64xf32>
    %1092 = arith.mulf %1084, %1091 : vector<16x64xf32>
    %1093 = arith.addf %1083, %1092 : vector<16x64xf32>
    %1094 = vector.extract_strided_slice %963 {offsets = [0, 9], sizes = [18, 64], strides = [1, 1]} : vector<18x82xf32> to vector<18x64xf32>
    %1095 = vector.extract_strided_slice %1094 {offsets = [0, 0], sizes = [16, 64], strides = [1, 1]} : vector<18x64xf32> to vector<16x64xf32>
    %c27_i32_476 = arith.constant 27 : i32
    %1096 = arith.muli %953, %c27_i32_476 : i32
    %c0_i32_477 = arith.constant 0 : i32
    %1097 = arith.addi %1096, %c0_i32_477 : i32
    %c3_i32_478 = arith.constant 3 : i32
    %1098 = arith.addi %1097, %c3_i32_478 : i32
    %c1_i32_479 = arith.constant 1 : i32
    %1099 = arith.addi %1098, %c1_i32_479 : i32
    %1100 = arith.index_cast %1099 : i32 to index
    %1101 = memref.load %arg3[%1100] : memref<108xf32, #tpu.memory_space<smem>>
    %1102 = vector.broadcast %1101 : f32 to vector<16x64xf32>
    %1103 = arith.mulf %1095, %1102 : vector<16x64xf32>
    %1104 = arith.addf %1093, %1103 : vector<16x64xf32>
    %1105 = vector.extract_strided_slice %1094 {offsets = [1, 0], sizes = [16, 64], strides = [1, 1]} : vector<18x64xf32> to vector<16x64xf32>
    %c27_i32_480 = arith.constant 27 : i32
    %1106 = arith.muli %953, %c27_i32_480 : i32
    %c9_i32_481 = arith.constant 9 : i32
    %1107 = arith.addi %1106, %c9_i32_481 : i32
    %c3_i32_482 = arith.constant 3 : i32
    %1108 = arith.addi %1107, %c3_i32_482 : i32
    %c1_i32_483 = arith.constant 1 : i32
    %1109 = arith.addi %1108, %c1_i32_483 : i32
    %1110 = arith.index_cast %1109 : i32 to index
    %1111 = memref.load %arg3[%1110] : memref<108xf32, #tpu.memory_space<smem>>
    %1112 = vector.broadcast %1111 : f32 to vector<16x64xf32>
    %1113 = arith.mulf %1105, %1112 : vector<16x64xf32>
    %1114 = arith.addf %1104, %1113 : vector<16x64xf32>
    %1115 = vector.extract_strided_slice %1094 {offsets = [2, 0], sizes = [16, 64], strides = [1, 1]} : vector<18x64xf32> to vector<16x64xf32>
    %c27_i32_484 = arith.constant 27 : i32
    %1116 = arith.muli %953, %c27_i32_484 : i32
    %c18_i32_485 = arith.constant 18 : i32
    %1117 = arith.addi %1116, %c18_i32_485 : i32
    %c3_i32_486 = arith.constant 3 : i32
    %1118 = arith.addi %1117, %c3_i32_486 : i32
    %c1_i32_487 = arith.constant 1 : i32
    %1119 = arith.addi %1118, %c1_i32_487 : i32
    %1120 = arith.index_cast %1119 : i32 to index
    %1121 = memref.load %arg3[%1120] : memref<108xf32, #tpu.memory_space<smem>>
    %1122 = vector.broadcast %1121 : f32 to vector<16x64xf32>
    %1123 = arith.mulf %1115, %1122 : vector<16x64xf32>
    %1124 = arith.addf %1114, %1123 : vector<16x64xf32>
    %1125 = vector.extract_strided_slice %963 {offsets = [0, 17], sizes = [18, 64], strides = [1, 1]} : vector<18x82xf32> to vector<18x64xf32>
    %1126 = vector.extract_strided_slice %1125 {offsets = [0, 0], sizes = [16, 64], strides = [1, 1]} : vector<18x64xf32> to vector<16x64xf32>
    %c27_i32_488 = arith.constant 27 : i32
    %1127 = arith.muli %953, %c27_i32_488 : i32
    %c0_i32_489 = arith.constant 0 : i32
    %1128 = arith.addi %1127, %c0_i32_489 : i32
    %c6_i32_490 = arith.constant 6 : i32
    %1129 = arith.addi %1128, %c6_i32_490 : i32
    %c1_i32_491 = arith.constant 1 : i32
    %1130 = arith.addi %1129, %c1_i32_491 : i32
    %1131 = arith.index_cast %1130 : i32 to index
    %1132 = memref.load %arg3[%1131] : memref<108xf32, #tpu.memory_space<smem>>
    %1133 = vector.broadcast %1132 : f32 to vector<16x64xf32>
    %1134 = arith.mulf %1126, %1133 : vector<16x64xf32>
    %1135 = arith.addf %1124, %1134 : vector<16x64xf32>
    %1136 = vector.extract_strided_slice %1125 {offsets = [1, 0], sizes = [16, 64], strides = [1, 1]} : vector<18x64xf32> to vector<16x64xf32>
    %c27_i32_492 = arith.constant 27 : i32
    %1137 = arith.muli %953, %c27_i32_492 : i32
    %c9_i32_493 = arith.constant 9 : i32
    %1138 = arith.addi %1137, %c9_i32_493 : i32
    %c6_i32_494 = arith.constant 6 : i32
    %1139 = arith.addi %1138, %c6_i32_494 : i32
    %c1_i32_495 = arith.constant 1 : i32
    %1140 = arith.addi %1139, %c1_i32_495 : i32
    %1141 = arith.index_cast %1140 : i32 to index
    %1142 = memref.load %arg3[%1141] : memref<108xf32, #tpu.memory_space<smem>>
    %1143 = vector.broadcast %1142 : f32 to vector<16x64xf32>
    %1144 = arith.mulf %1136, %1143 : vector<16x64xf32>
    %1145 = arith.addf %1135, %1144 : vector<16x64xf32>
    %1146 = vector.extract_strided_slice %1125 {offsets = [2, 0], sizes = [16, 64], strides = [1, 1]} : vector<18x64xf32> to vector<16x64xf32>
    %c27_i32_496 = arith.constant 27 : i32
    %1147 = arith.muli %953, %c27_i32_496 : i32
    %c18_i32_497 = arith.constant 18 : i32
    %1148 = arith.addi %1147, %c18_i32_497 : i32
    %c6_i32_498 = arith.constant 6 : i32
    %1149 = arith.addi %1148, %c6_i32_498 : i32
    %c1_i32_499 = arith.constant 1 : i32
    %1150 = arith.addi %1149, %c1_i32_499 : i32
    %1151 = arith.index_cast %1150 : i32 to index
    %1152 = memref.load %arg3[%1151] : memref<108xf32, #tpu.memory_space<smem>>
    %1153 = vector.broadcast %1152 : f32 to vector<16x64xf32>
    %1154 = arith.mulf %1146, %1153 : vector<16x64xf32>
    %1155 = arith.addf %1145, %1154 : vector<16x64xf32>
    %1156 = arith.addf %1061, %1155 : vector<16x64xf32>
    %cst_500 = arith.constant 0.000000e+00 : f32
    %1157 = vector.broadcast %cst_500 : f32 to vector<16x64xf32>
    %1158 = vector.extract_strided_slice %963 {offsets = [0, 2], sizes = [18, 64], strides = [1, 1]} : vector<18x82xf32> to vector<18x64xf32>
    %1159 = vector.extract_strided_slice %1158 {offsets = [0, 0], sizes = [16, 64], strides = [1, 1]} : vector<18x64xf32> to vector<16x64xf32>
    %c27_i32_501 = arith.constant 27 : i32
    %1160 = arith.muli %953, %c27_i32_501 : i32
    %c0_i32_502 = arith.constant 0 : i32
    %1161 = arith.addi %1160, %c0_i32_502 : i32
    %c0_i32_503 = arith.constant 0 : i32
    %1162 = arith.addi %1161, %c0_i32_503 : i32
    %c2_i32_504 = arith.constant 2 : i32
    %1163 = arith.addi %1162, %c2_i32_504 : i32
    %1164 = arith.index_cast %1163 : i32 to index
    %1165 = memref.load %arg3[%1164] : memref<108xf32, #tpu.memory_space<smem>>
    %1166 = vector.broadcast %1165 : f32 to vector<16x64xf32>
    %1167 = arith.mulf %1159, %1166 : vector<16x64xf32>
    %1168 = arith.addf %1157, %1167 : vector<16x64xf32>
    %1169 = vector.extract_strided_slice %1158 {offsets = [1, 0], sizes = [16, 64], strides = [1, 1]} : vector<18x64xf32> to vector<16x64xf32>
    %c27_i32_505 = arith.constant 27 : i32
    %1170 = arith.muli %953, %c27_i32_505 : i32
    %c9_i32_506 = arith.constant 9 : i32
    %1171 = arith.addi %1170, %c9_i32_506 : i32
    %c0_i32_507 = arith.constant 0 : i32
    %1172 = arith.addi %1171, %c0_i32_507 : i32
    %c2_i32_508 = arith.constant 2 : i32
    %1173 = arith.addi %1172, %c2_i32_508 : i32
    %1174 = arith.index_cast %1173 : i32 to index
    %1175 = memref.load %arg3[%1174] : memref<108xf32, #tpu.memory_space<smem>>
    %1176 = vector.broadcast %1175 : f32 to vector<16x64xf32>
    %1177 = arith.mulf %1169, %1176 : vector<16x64xf32>
    %1178 = arith.addf %1168, %1177 : vector<16x64xf32>
    %1179 = vector.extract_strided_slice %1158 {offsets = [2, 0], sizes = [16, 64], strides = [1, 1]} : vector<18x64xf32> to vector<16x64xf32>
    %c27_i32_509 = arith.constant 27 : i32
    %1180 = arith.muli %953, %c27_i32_509 : i32
    %c18_i32_510 = arith.constant 18 : i32
    %1181 = arith.addi %1180, %c18_i32_510 : i32
    %c0_i32_511 = arith.constant 0 : i32
    %1182 = arith.addi %1181, %c0_i32_511 : i32
    %c2_i32_512 = arith.constant 2 : i32
    %1183 = arith.addi %1182, %c2_i32_512 : i32
    %1184 = arith.index_cast %1183 : i32 to index
    %1185 = memref.load %arg3[%1184] : memref<108xf32, #tpu.memory_space<smem>>
    %1186 = vector.broadcast %1185 : f32 to vector<16x64xf32>
    %1187 = arith.mulf %1179, %1186 : vector<16x64xf32>
    %1188 = arith.addf %1178, %1187 : vector<16x64xf32>
    %1189 = vector.extract_strided_slice %963 {offsets = [0, 10], sizes = [18, 64], strides = [1, 1]} : vector<18x82xf32> to vector<18x64xf32>
    %1190 = vector.extract_strided_slice %1189 {offsets = [0, 0], sizes = [16, 64], strides = [1, 1]} : vector<18x64xf32> to vector<16x64xf32>
    %c27_i32_513 = arith.constant 27 : i32
    %1191 = arith.muli %953, %c27_i32_513 : i32
    %c0_i32_514 = arith.constant 0 : i32
    %1192 = arith.addi %1191, %c0_i32_514 : i32
    %c3_i32_515 = arith.constant 3 : i32
    %1193 = arith.addi %1192, %c3_i32_515 : i32
    %c2_i32_516 = arith.constant 2 : i32
    %1194 = arith.addi %1193, %c2_i32_516 : i32
    %1195 = arith.index_cast %1194 : i32 to index
    %1196 = memref.load %arg3[%1195] : memref<108xf32, #tpu.memory_space<smem>>
    %1197 = vector.broadcast %1196 : f32 to vector<16x64xf32>
    %1198 = arith.mulf %1190, %1197 : vector<16x64xf32>
    %1199 = arith.addf %1188, %1198 : vector<16x64xf32>
    %1200 = vector.extract_strided_slice %1189 {offsets = [1, 0], sizes = [16, 64], strides = [1, 1]} : vector<18x64xf32> to vector<16x64xf32>
    %c27_i32_517 = arith.constant 27 : i32
    %1201 = arith.muli %953, %c27_i32_517 : i32
    %c9_i32_518 = arith.constant 9 : i32
    %1202 = arith.addi %1201, %c9_i32_518 : i32
    %c3_i32_519 = arith.constant 3 : i32
    %1203 = arith.addi %1202, %c3_i32_519 : i32
    %c2_i32_520 = arith.constant 2 : i32
    %1204 = arith.addi %1203, %c2_i32_520 : i32
    %1205 = arith.index_cast %1204 : i32 to index
    %1206 = memref.load %arg3[%1205] : memref<108xf32, #tpu.memory_space<smem>>
    %1207 = vector.broadcast %1206 : f32 to vector<16x64xf32>
    %1208 = arith.mulf %1200, %1207 : vector<16x64xf32>
    %1209 = arith.addf %1199, %1208 : vector<16x64xf32>
    %1210 = vector.extract_strided_slice %1189 {offsets = [2, 0], sizes = [16, 64], strides = [1, 1]} : vector<18x64xf32> to vector<16x64xf32>
    %c27_i32_521 = arith.constant 27 : i32
    %1211 = arith.muli %953, %c27_i32_521 : i32
    %c18_i32_522 = arith.constant 18 : i32
    %1212 = arith.addi %1211, %c18_i32_522 : i32
    %c3_i32_523 = arith.constant 3 : i32
    %1213 = arith.addi %1212, %c3_i32_523 : i32
    %c2_i32_524 = arith.constant 2 : i32
    %1214 = arith.addi %1213, %c2_i32_524 : i32
    %1215 = arith.index_cast %1214 : i32 to index
    %1216 = memref.load %arg3[%1215] : memref<108xf32, #tpu.memory_space<smem>>
    %1217 = vector.broadcast %1216 : f32 to vector<16x64xf32>
    %1218 = arith.mulf %1210, %1217 : vector<16x64xf32>
    %1219 = arith.addf %1209, %1218 : vector<16x64xf32>
    %1220 = vector.extract_strided_slice %963 {offsets = [0, 18], sizes = [18, 64], strides = [1, 1]} : vector<18x82xf32> to vector<18x64xf32>
    %1221 = vector.extract_strided_slice %1220 {offsets = [0, 0], sizes = [16, 64], strides = [1, 1]} : vector<18x64xf32> to vector<16x64xf32>
    %c27_i32_525 = arith.constant 27 : i32
    %1222 = arith.muli %953, %c27_i32_525 : i32
    %c0_i32_526 = arith.constant 0 : i32
    %1223 = arith.addi %1222, %c0_i32_526 : i32
    %c6_i32_527 = arith.constant 6 : i32
    %1224 = arith.addi %1223, %c6_i32_527 : i32
    %c2_i32_528 = arith.constant 2 : i32
    %1225 = arith.addi %1224, %c2_i32_528 : i32
    %1226 = arith.index_cast %1225 : i32 to index
    %1227 = memref.load %arg3[%1226] : memref<108xf32, #tpu.memory_space<smem>>
    %1228 = vector.broadcast %1227 : f32 to vector<16x64xf32>
    %1229 = arith.mulf %1221, %1228 : vector<16x64xf32>
    %1230 = arith.addf %1219, %1229 : vector<16x64xf32>
    %1231 = vector.extract_strided_slice %1220 {offsets = [1, 0], sizes = [16, 64], strides = [1, 1]} : vector<18x64xf32> to vector<16x64xf32>
    %c27_i32_529 = arith.constant 27 : i32
    %1232 = arith.muli %953, %c27_i32_529 : i32
    %c9_i32_530 = arith.constant 9 : i32
    %1233 = arith.addi %1232, %c9_i32_530 : i32
    %c6_i32_531 = arith.constant 6 : i32
    %1234 = arith.addi %1233, %c6_i32_531 : i32
    %c2_i32_532 = arith.constant 2 : i32
    %1235 = arith.addi %1234, %c2_i32_532 : i32
    %1236 = arith.index_cast %1235 : i32 to index
    %1237 = memref.load %arg3[%1236] : memref<108xf32, #tpu.memory_space<smem>>
    %1238 = vector.broadcast %1237 : f32 to vector<16x64xf32>
    %1239 = arith.mulf %1231, %1238 : vector<16x64xf32>
    %1240 = arith.addf %1230, %1239 : vector<16x64xf32>
    %1241 = vector.extract_strided_slice %1220 {offsets = [2, 0], sizes = [16, 64], strides = [1, 1]} : vector<18x64xf32> to vector<16x64xf32>
    %c27_i32_533 = arith.constant 27 : i32
    %1242 = arith.muli %953, %c27_i32_533 : i32
    %c18_i32_534 = arith.constant 18 : i32
    %1243 = arith.addi %1242, %c18_i32_534 : i32
    %c6_i32_535 = arith.constant 6 : i32
    %1244 = arith.addi %1243, %c6_i32_535 : i32
    %c2_i32_536 = arith.constant 2 : i32
    %1245 = arith.addi %1244, %c2_i32_536 : i32
    %1246 = arith.index_cast %1245 : i32 to index
    %1247 = memref.load %arg3[%1246] : memref<108xf32, #tpu.memory_space<smem>>
    %1248 = vector.broadcast %1247 : f32 to vector<16x64xf32>
    %1249 = arith.mulf %1241, %1248 : vector<16x64xf32>
    %1250 = arith.addf %1240, %1249 : vector<16x64xf32>
    %1251 = vector.broadcast %6 : vector<1x64xf32> to vector<16x64xf32>
    %1252 = arith.mulf %1250, %1251 : vector<16x64xf32>
    %1253 = arith.addf %1156, %1252 : vector<16x64xf32>
    %1254 = arith.index_cast %953 : i32 to index
    %1255 = memref.load %arg4[%1254] : memref<4xf32, #tpu.memory_space<smem>>
    %1256 = vector.broadcast %1255 : f32 to vector<16x64xf32>
    %1257 = arith.addf %1253, %1256 : vector<16x64xf32>
    %1258 = arith.negf %1257 : vector<16x64xf32>
    %1259 = math.exp %1258 : vector<16x64xf32>
    %cst_537 = arith.constant 1.000000e+00 : f32
    %1260 = vector.broadcast %cst_537 : f32 to vector<16x64xf32>
    %1261 = arith.addf %1260, %1259 : vector<16x64xf32>
    %1262 = arith.divf %1260, %1261 : vector<16x64xf32>
    %1263 = arith.mulf %955, %1262 : vector<16x64xf32>
    %c0_538 = arith.constant 0 : index
    %c3_539 = arith.constant 3 : index
    %c0_540 = arith.constant 0 : index
    %c0_541 = arith.constant 0 : index
    %c0_542 = arith.constant 0 : index
    %1264 = vector.load %arg8[%c0_538, %c3_539, %c0_540, %c0_541, %c0_542] : memref<1x4x1x16x64xf32, #tpu.memory_space<vmem>>, vector<1x1x1x16x64xf32>
    %1265 = vector.shape_cast %1264 : vector<1x1x1x16x64xf32> to vector<16x64xf32>
    %1266 = vector.shape_cast %1263 : vector<16x64xf32> to vector<1x1x1x16x64xf32>
    tpu.vector_store %arg8[%c0_538, %c3_539, %c0_540, %c0_541, %c0_542], %1266 {strides = array<i32>} : memref<1x4x1x16x64xf32, #tpu.memory_space<vmem>>, vector<1x1x1x16x64xf32>,
    return
  }
  func.func @transform_0(%arg0: i32, %arg1: i32, %arg2: i32, %arg3: memref<108xf32, #tpu.memory_space<smem>>, %arg4: memref<4xf32, #tpu.memory_space<smem>>) -> (i32, i32, i32, i32, i32) {
    %c0_i32 = arith.constant 0 : i32
    %c0_i32_0 = arith.constant 0 : i32
    %c0_i32_1 = arith.constant 0 : i32
    return %arg0, %arg1, %arg2, %c0_i32, %c0_i32_0 : i32, i32, i32, i32, i32
  }
  func.func @transform_1(%arg0: i32, %arg1: i32, %arg2: i32, %arg3: memref<108xf32, #tpu.memory_space<smem>>, %arg4: memref<4xf32, #tpu.memory_space<smem>>) -> (i32, i32, i32, i32, i32) {
    %c0_i32 = arith.constant 0 : i32
    %c0_i32_0 = arith.constant 0 : i32
    %c0_i32_1 = arith.constant 0 : i32
    %c0_i32_2 = arith.constant 0 : i32
    %c0_i32_3 = arith.constant 0 : i32
    %c0_i32_4 = arith.constant 0 : i32
    return %c0_i32, %c0_i32_0, %c0_i32_1, %c0_i32_2, %c0_i32_3 : i32, i32, i32, i32, i32
  }
  func.func @transform_2(%arg0: i32, %arg1: i32, %arg2: i32, %arg3: memref<108xf32, #tpu.memory_space<smem>>, %arg4: memref<4xf32, #tpu.memory_space<smem>>) -> (i32, i32) {
    %c0_i32 = arith.constant 0 : i32
    %c0_i32_0 = arith.constant 0 : i32
    %c0_i32_1 = arith.constant 0 : i32
    return %c0_i32, %c0_i32_0 : i32, i32
  }
  func.func @transform_3(%arg0: i32, %arg1: i32, %arg2: i32, %arg3: memref<108xf32, #tpu.memory_space<smem>>, %arg4: memref<4xf32, #tpu.memory_space<smem>>) -> (i32, i32, i32, i32, i32) {
    %c0_i32 = arith.constant 0 : i32
    %c0_i32_0 = arith.constant 0 : i32
    %c0_i32_1 = arith.constant 0 : i32
    return %arg0, %arg1, %arg2, %c0_i32, %c0_i32_0 : i32, i32, i32, i32, i32
  }
}

</mosaic_0001>

<bundles_post_ra>
// kernel: tpu_custom_call.1
= control target key start
LH: loop header
LB: loop body
LE: loop exit
PB: predicated region body
PF: predicated region fallthrough
CT: control target
= control target key end

     0   :  { %s3059_s18 = smov [#allocation4]   ;;  %s4740_s0 = inlined_call_operand.hbm [shape: f32[108], index: 0, kind: input, shape index: {}]   ;;  %s4741_s2 = inlined_call_operand.hbm [shape: f32[2,4,1,16,64], index: 2, kind: input, shape index: {}]   ;;  %s4742_s3 = inlined_call_operand.hbm [shape: f32[1,4,1,2,64], index: 3, kind: input, shape index: {}]   ;;  %s4743_s4 = inlined_call_operand.vmem [shape: f32[2,64], index: 4, kind: input, shape index: {}]   ;;  %s4744_s5 = inlined_call_operand.hbm [shape: f32[2,4,1,16,64], index: 5, kind: output, shape index: {}]   ;;  %s4745_s1 = inlined_call_operand.vmem [shape: f32[4], index: 1, kind: input, shape index: {}]  }
   0x1   :  { %4753 = sst [smem:[#allocation50_spill]] %s4741_s2  ;;  %s12_s23 = sshll.u32 %s4745_s1, 4  ;;  %s13_s23 = int_to_ptr.vmem [resolvable:$true] %s12_s23 }
   0x2   :  { %4754 = sst [smem:[#allocation51_spill]] %s4742_s3  ;;  %s2905_s24 = scalar_lea.vmem %s13_s23, 16 }
   0x3   :  { %11 = dma.hbm_to_smem %s4740_s0, 16, %s3059_s18, [#allocation3] }
   0x4   :  { %p2906_p0 = scmp.ne.s32.totalorder %s13_s23, %s2905_s24  ;;  %p2910_p1 = scmp.lt.s32.totalorder %s13_s23, %s13_s23 }
   0x5   :  { %p2911_p2 = scmp.lt.s32.totalorder %s2905_s24, %s2905_s24 }
   0x7   :  { %p2912_p3 = por %p2911_p2, %p2910_p1 }
   0x9   :  { %p2913_p4 = pnand %p2912_p3, %p2906_p0 }
   0xb   :  { %2916 = shalt.err (!%p2913_p4)  }
   0xc   :  { %s3060_s25 = smov [#allocation5]  }
   0xd   :  { %15 = dma.vmem_to_smem %s13_s23, 16, %s3060_s25, [#allocation3] }
   0xe   :  { %3021 = dma.done.wait [#allocation3], 32 }
   0xf   :  { %3022 = vsyncadd [#allocation3], 4294967264 }
  0x10   :  { %17 = sfence }
  0x11   :  { %18 = vsyncpa [#allocation7], 0 }
  0x12   :  { %20 = vsyncpa [#allocation7 + $0x1], 0 }
  0x13   :  { %21 = vsyncpa [#allocation10], 0 }
  0x14   :  { %22 = vsyncpa [#allocation8], 0 }
  0x15   :  { %24 = vsyncpa [#allocation8 + $0x1], 0  ;;  %s3113_s0 = smov 0   ;;  %s3115_s1 = smov 0  }
  0x16   :  { %s3117_s26 = smov 0   ;;  %s3119_s27 = smov 0  }
  0x17   :  { %s3121_s28 = smov 0   ;;  %s3123_s29 = smov 0  }
  0x18 LB: > { %s2617_s30 = sadd.s32 4294967295, %s3057_s29   ;;  %s2618_s6 = sadd.s32 4294967294, %s3057_s29   ;;  %s3057_s29 = sphi %s3123_s29, %s30_s29   ;;  %s3053_s28 = sphi %s3121_s28, %s4846_s28   ;;  %s3049_s27 = sphi %s3119_s27, %s4845_s27   ;;  %s3045_s26 = sphi %s3117_s26, %s4844_s26   ;;  %s3041_s1 = sphi %s3115_s1, %s4843_s1   ;;  %s3037_s0 = sphi %s3113_s0, %s4842_s0  }
  0x19   : > { %p73_p5 = scmp.ne.s32.totalorder %s3041_s1, %s3037_s0  ;;  %p3147_p6 = scmp.eq.s32.totalorder %s2617_s30, 0 }
  0x1a   : > { %p3151_p7 = scmp.eq.s32.totalorder %s2617_s30, 1  ;;  %p149_p8 = scmp.eq.s32.totalorder %s2618_s6, 1 }
  0x1b   : > { %p3157_p9 = por %p3147_p6, %p73_p5  ;;  %p2619_p10 = scmp.ge.s32.totalorder %s3057_s29, 1 }
  0x1c   : > { %p3162_p11 = por %p149_p8, %p73_p5  ;;  %p156_p12 = scmp.lt.s32.totalorder %s3057_s29, 3 }
  0x1d   : > { %s4757_s9 = scalar_select %p3157_p9, 1, 0 }
  0x1e   : > { %s4758_s10 = scalar_select %p3162_p11, 1, 0 }
  0x1f   : > { %p3167_p13 = pnand %p2619_p10, %p156_p12  ;;  %s3061_s12 = smov [#allocation9]  }
  0x20   : > { %s168_s13 = sshll.u32 %s3061_s12, 4  ;;  %s49_s15 = sadd.s32 1, %s3053_s28  ;;  %s169_s13 = int_to_ptr.vmem [resolvable:$true] %s168_s13 }
  0x21   : > { %p2774_p0 = pneg %p3167_p13  ;;  %s2928_s16 = scalar_lea.vmem %s169_s13, 128 }
  0x22   : > { %p2929_p4 = scmp.ne.s32.totalorder %s169_s13, %s2928_s16  ;;  %p2936_p10 = scmp.lt.s32.totalorder %s169_s13, %s169_s13 }
  0x23   : > { %p3176_p2 = pnand %p2774_p0, %p3147_p6  ;;  %p2937_p12 = scmp.lt.s32.totalorder %s2928_s16, %s2928_s16 }
  0x25   : > { %p2919_p3 = pneg %p3176_p2  ;;  %p2938_p11 = por %p2937_p12, %p2936_p10 }
  0x27   : > { %p2931_p5 = pnand %p2929_p4, %p2919_p3 }
  0x29   : > { %p2932_p8 = pneg %p2931_p5 }
  0x2b   : > { %p2939_p9 = pnand %p2938_p11, %p2932_p8 }
  0x2d   : > { %2942 = shalt.err (!%p2939_p9)
}
  0x2e   : > { %s3062_s17 = smov 32   ;;  %s3063_s18 = smov 2  }
  0x2f   : > { %s4761_s3 = sld [smem:[#allocation51_spill]]  ;;  %p51_p11 = scmp.ge.s32.totalorder %s49_s15, 2 }
  0x30   : > { %s60_s21 = sadd.s32 1, %s3045_s26  ;;  %p67_p9 = scmp.ne.s32.totalorder %s3045_s26, %s3041_s1 }
  0x31   : > { %p68_p0 = scmp.eq.s32.totalorder %s3057_s29, 0  ;;  %s4848_s15 = smov (%p51_p11, %s49_s15), 0 }
  0x32   : > { %p3200_p4 = por %p3151_p7, %p67_p9  ;;  %s53_s24 = ssub.s32 %s3053_s28, %s4848_s15 }
  0x33   : > { %p3194_p3 = por %p68_p0, %p67_p9  ;;  %p2787_p5 = scmp.lt.s32.totalorder %s3057_s29, 2 }
  0x34   : > { %s185_s25 = sand.u32 1, %s3045_s26   ;;  %s2764_s12 = sshll.u32 %s3053_s28, 10 }
  0x35   : > { %2777 = dma.hbm_to_vmem [thread:$0]  (!%p3176_p2), %s4761_s3, 128, %s169_s13, [#allocation10], %s3062_s17, %s3062_s17, %s3063_s18  }
  0x36   : > { %p58_p2 = scmp.eq.s32.totalorder %s53_s24, 0  ;;  %s2622_s30 = sshll.u32 %s185_s25, 6 }
  0x37   : > { %s4764_s2 = sld [smem:[#allocation50_spill]]  ;;  %s189_s17 = scalar_lea.vmem [#allocation6], %s2622_s30 }
  0x38   : > { %s3209_s6 = scalar_select %p58_p2, %s3045_s26, %s60_s21  }
  0x39   : > { %s201_s18 = sshll.u32 %s189_s17, 4  ;;  %p3217_p7 = pnand %p2787_p5, %p3194_p3  ;;  %s202_s18 = int_to_ptr.vmem [resolvable:$true] %s201_s18 }
  0x3a   : > { %s186_s19 = scalar_lea.sflag [#allocation7], %s185_s25  ;;  %s2956_s20 = scalar_lea.vmem %s202_s18, 1024 }
  0x3b   : > { %p2945_p8 = pneg %p3217_p7  ;;  %p2957_p10 = scmp.ne.s32.totalorder %s202_s18, %s2956_s20 }
  0x3c   : > { %s3064_s21 = smov [#allocation6]  }
  0x3d   : > { %s200_s16 = scalar_lea.hbm %s4764_s2, %s2764_s12  ;;  %p2959_p12 = pnand %p2957_p10, %p2945_p8 }
  0x3e   : > { %s2961_s24 = sshll.u32 %s3064_s21, 4  ;;  %s2962_s24 = int_to_ptr.vmem [resolvable:$false] %s2961_s24 }
  0x3f   : > { %p2960_p11 = pneg %p2959_p12  ;;  %s2963_s12 = scalar_lea.vmem %s2962_s24, 2048 }
  0x40   : > { %p2964_p9 = scmp.lt.s32.totalorder %s202_s18, %s2962_s24  ;;  %p2965_p0 = scmp.lt.s32.totalorder %s2963_s12, %s2956_s20 }
  0x42   : > { %p2966_p2 = por %p2965_p0, %p2964_p9 }
  0x44   : > { %p2967_p1 = pnand %p2966_p2, %p2960_p11 }
  0x46   : > { %2970 = shalt.err (!%p2967_p1)
}
  0x47   : > { %s3065_s22 = smov 128   ;;  %s3066_s30 = smov 8  }
  0x48   : > { %2781 = dma.hbm_to_vmem [thread:$0]  (!%p3217_p7), %s200_s16, 1024, %s202_s18, %s186_s19, %s3065_s22, %s3065_s22, %s3066_s30  }
  0x49   : > { %213 = sbr.rel (%p3167_p13) target bundleno = 753 (0x2f1), region = 32 }
  0x4e   : > { %s3228_s25 = sand.u32 1, %s3041_s1   ;;  %p4766_p1 = scmp.ne.s32.totalorder %s4757_s9, 0 }
  0x4f   : > { %s4747_s13 = sshll.u32 %s3228_s25, 6  ;;  %s216_s14 = scalar_lea.sflag [#allocation7], %s3228_s25 }
  0x50   : > { %s3234_s17 = scalar_lea.vmem [#allocation6], %s4747_s13 }
  0x51   : > { %3024 = dma.done.wait (%p4766_p1), %s216_s14, 1024  }
  0x52   : > { %3026 = vsyncadd (%p4766_p1), %s216_s14, 4294966272 }
  0x53   : > { %3028 = dma.done.wait (%p3147_p6), [#allocation10], 128  }
  0x54   : > { %3030 = vsyncadd (%p3147_p6), [#allocation10], 4294967168  ;;  %v448_v0 = vlaneseq  ;;  %vm248_vm0 = vcmask 72704   ;;  %vm251_vm1 = vcmask 66560   ;;  %vm253_vm2 = vcmask 671304   ;;  %v260_v5 = vld [vmem:[%s3234_s17] sm:$0xff] }
  0x55   : > { %vm256_vm3 = vcmask 665160   ;;  %v3067_v1 = vmov 0.0   ;;  %v262_v4 = vld [vmem:[#allocation9] sm:$0x3]  ;;  %s3068_s7 = smov 9   ;;  %v261_v7 = vld [vmem:[%s3234_s17 + $0x8] sm:$0xff] }
  0x56   : > { %249 = vst.msk [vmem:[#allocation2] sm:$0xff] %vm248_vm0, %v3067_v1  ;;  %250 = vst.msk [vmem:[#allocation2 + $0x8] sm:$0xff] %vm248_vm0, %v3067_v1  ;;  %v449_v2 = vshrl.u32 %v448_v0, 7  ;;  %275 = vrot.lane.b32.xlu1 %v262_v4, %s3068_s7  ;;  %265 = vrot.lane.b32.xlu0 %v260_v5, %s3068_s7  ;;  %v2658_v8 = vld [vmem:[%s3234_s17 + $0x18] sm:$0xff]  ;;  %v258_v9 = vld [vmem:[%s4743_s4] sm:$0x3] }
  0x57   : > { %252 = vst.msk [vmem:[#allocation2 + $0x10] sm:$0x3] %vm251_vm1, %v3067_v1  ;;  %v2657_v12 = vld [vmem:[%s3234_s17 + $0x10] sm:$0xff]  ;;  %s3069_s16 = smov 2   ;;  %v834_v13 = vld [vmem:[#allocation9 + $0x2] sm:$0x3] }
  0x58   : > { %254 = vst.msk [vmem:[#allocation2] sm:$0xff] %vm253_vm2, %v3067_v1  ;;  %255 = vst.msk [vmem:[#allocation2 + $0x8] sm:$0xff] %vm253_vm2, %v3067_v1  ;;  %v450_v3 = vsub.s32 0, %v449_v2  ;;  %v790_v6 = vsub.s32 1, %v449_v2  ;;  %v2692_v14 = vld [vmem:[%s3234_s17 + $0x28] sm:$0xff]  ;;  %v2691_v15 = vld [vmem:[%s3234_s17 + $0x20] sm:$0xff] }
  0x59   : > { %257 = vst.msk [vmem:[#allocation2 + $0x10] sm:$0x3] %vm256_vm3, %v3067_v1  ;;  %v2726_v16 = vld [vmem:[%s3234_s17 + $0x38] sm:$0xff]  ;;  %v1389_v17 = vld [vmem:[#allocation9 + $0x4] sm:$0x3]  ;;  %v2725_v18 = vld [vmem:[%s3234_s17 + $0x30] sm:$0xff] }
  0x5a   : > { %v3250_v10 = vrot.slane %v258_v9, %v450_v3  ;;  %267 = vrot.lane.b32.xlu0 %v261_v7, %s3068_s7  ;;  %839 = vrot.lane.b32.xlu1 %v2658_v8, %s3068_s7  ;;  %v791_v11 = vrot.slane %v258_v9, %v790_v6  ;;  %v1944_v19 = vld [vmem:[#allocation9 + $0x6] sm:$0x3]  ;;  %vm278_vm4 = vcmask 589896   ;;  %vm280_vm5 = vcmask 590921   ;;  %s2631_s18 = sld [smem:[#allocation4 + $0x3]]  ;;  %s4748_s21 = smov 120  }
  0x5b   : > { %vm271_vm6 = vcmask 597064   ;;  %s2634_s8 = sld [smem:[#allocation4 + $0x6]]  ;;  %s4750_s12 = smov 112   ;;  %vm301_vm7 = vcmask 1046528   ;;  %vm320_vm8 = vcmask 1045504   ;;  %vm826_vm9 = vcmask 523264  }
  0x5c   : > { %4767 = vst [vmem:[#allocation16_spill] sm:$0xff] %v3250_v10  ;;  %s3261_s19 = sld [smem:[#allocation4 + $0x4]]  ;;  %s4768_s2 = smov 112  }
  0x5d   : > { %s3266_s20 = sld [smem:[#allocation4 + $0x7]]  ;;  %s4769_s3 = smov 120  }
  0x5e   : > { %837 = vrot.lane.b32.xlu0 %v2657_v12, %s3068_s7  ;;  %793 = vrot.lane.b32.xlu1 %v791_v11, %s3069_s16  ;;  %s3282_s24 = sld [smem:[#allocation4 + $0x5]] }
  0x5f   : > { %s2632_s22 = sld [smem:[#allocation4 + $0xc]] }
  0x60   : > { %v332_v23 = vstv %s2631_s18  ;;  %s3289_s30 = sld [smem:[#allocation4 + $0x8]] }
  0x61   : > { %v391_v28 = vstv %s2634_s8  ;;  %s3293_s14 = sld [smem:[#allocation4 + $0x15]] }
  0x62   : > { %846 = vrot.lane.b32.xlu0 %v834_v13, %s3068_s7  ;;  %1394 = vrot.lane.b32.xlu1 %v2692_v14, %s3068_s7  ;;  %v501_v35 = vstv %s3261_s19  ;;  %s3305_s9 = sld [smem:[#allocation4 + $0x18]] }
  0x63   : > { %v560_v39 = vstv %s3266_s20  ;;  %s3312_s11 = sld [smem:[#allocation4 + $0xd]] }
  0x64   : > { %v672_v47 = vstv %s3282_s24  ;;  %s3316_s16 = sld [smem:[#allocation4 + $0x16]] }
  0x65   : > { %s3318_s18 = sld [smem:[#allocation4 + $0x10]]  ;;  %v347_v51 = vstv %s2632_s22 }
  0x66   : > { %1392 = vrot.lane.b32.xlu0 %v2691_v15, %s3068_s7  ;;  %1949 = vrot.lane.b32.xlu1 %v2726_v16, %s3068_s7  ;;  %s3322_s8 = sld [smem:[#allocation4 + $0x19]]  ;;  %v731_v52 = vstv %s3289_s30 }
  0x67   : > { %s3326_s19 = sld [smem:[#allocation4 + $0xe]]  ;;  %v369_v62 = vstv %s3293_s14 }
  0x68   : > { %s3330_s20 = sld [smem:[#allocation4 + $0x17]]  ;;  %v428_v7 = vstv %s3305_s9 }
  0x69   : > { %s3333_s24 = sld [smem:[#allocation4 + $0x11]]  ;;  %v516_v13 = vstv %s3312_s11 }
  0x6a   : > { %1401 = vrot.lane.b32.xlu0 %v1389_v17, %s3068_s7  ;;  %s3344_s22 = sld [smem:[#allocation4 + $0x1a]]  ;;  %v538_v14 = vstv %s3316_s16 }
  0x6b   : > { %s3352_s30 = sld [smem:[#allocation4]]  ;;  %v575_v17 = vstv %s3318_s18 }
  0x6c   : > { %s3356_s14 = sld [smem:[#allocation4 + $0x9]] }
  0x6d   : > { %s3359_s13 = sld [smem:[#allocation4 + $0x12]] }
  0x6e   : > { %1947 = vrot.lane.b32.xlu0 %v2725_v18, %s3068_s7  ;;  %v3380_v18 = vstv %s3322_s8  ;;  %s3390_s9 = sld [smem:[#allocation4 + $0x2]] }
  0x6f   : > { %s3394_s11 = sld [smem:[#allocation4 + $0xb]] }
  0x70   : > { %s3404_s16 = sld [smem:[#allocation4 + $0x14]] }
  0x71   : > { %s3585_s18 = sld [smem:[#allocation4 + $0x22]] }
  0x72   : > { %1956 = vrot.lane.b32.xlu0 %v1944_v19, %s3068_s7  ;;  %s3295_s7 = sld [smem:[#allocation4 + $0xf]] }
  0x73   : > { %s2664_s8 = sld [smem:[#allocation4 + $0x30]] }
  0x78   : > { %v406_v6 = vstv %s3295_s7  ;;  %s3375_s7 = sld [smem:[#allocation4 + $0x13]] }
  0xc8   : > { %v276_v20 = vpop.permute.xlu1 %275  ;;  %v266_v21 = vpop.permute.xlu0 %265 }
  0xc9   : > { %279 = vst.msk [vmem:[#allocation2] sm:$0x1] %vm278_vm4, %v276_v20 }
  0xca   : > { %281 = vst.msk [vmem:[#allocation2 + $0x10] sm:$0x2] %vm280_vm5, %v276_v20 }
  0xcb   : > { %272 = vst.msk [vmem:[#allocation2 + $0x1] sm:$0xff] %vm271_vm6, %v266_v21  ;;  %v3385_v21 = vstv %s3326_s19  ;;  %s2663_s19 = sld [smem:[#allocation4 + $0x27]] }
  0xcc   : > { %v268_v22 = vpop.permute.xlu0 %267  ;;  %v840_v26 = vpop.permute.xlu1 %839 }
  0xcd   : > { %273 = vst.msk [vmem:[#allocation2 + $0x9] sm:$0xff] %vm271_vm6, %v268_v22  ;;  %v3388_v22 = vstv %s3330_s20  ;;  %s3591_s20 = sld [smem:[#allocation4 + $0x20]] }
  0xd0   : > { %v838_v25 = vpop.permute.xlu0 %837  ;;  %v3273_v32 = vpop.permute.xlu1 %793 }
  0xd2   : > { %v3263_v24 = vld [vmem:[#allocation2] sm:$0xff] }
  0xd3   : > { %v333_v27 = vmul.f32 %v332_v23, %v3263_v24  ;;  %v392_v34 = vmul.f32 %v391_v28, %v3263_v24  ;;  %v502_v38 = vmul.f32 %v501_v35, %v3263_v24  ;;  %v561_v46 = vmul.f32 %v560_v39, %v3263_v24 }
  0xd4   : > { %v3269_v29 = vld [vmem:[#allocation2 + $0x8] sm:$0xff]  ;;  %v3271_v30 = vld [vmem:[#allocation2 + $0x10] sm:$0x3]  ;;  %v847_v31 = vpop.permute.xlu0 %846  ;;  %v1395_v40 = vpop.permute.xlu1 %1394  ;;  %v673_v50 = vmul.f32 %v672_v47, %v3263_v24  ;;  %v348_v55 = vmul.f32 %v347_v51, %v3263_v24  ;;  %v732_v61 = vmul.f32 %v731_v52, %v3263_v24  ;;  %v370_v3 = vmul.f32 %v369_v62, %v3263_v24 }
  0xd5   : > { %337 = vrot.lane.b32.xlu1 %v333_v27, %s4748_s21  ;;  %v334_v33 = vmul.f32 %v332_v23, %v3269_v29  ;;  %843 = vst.msk [vmem:[#allocation2 + $0x1] sm:$0xff] %vm271_vm6, %v838_v25  ;;  %844 = vst.msk [vmem:[#allocation2 + $0x9] sm:$0xff] %vm271_vm6, %v840_v26  ;;  %v393_v37 = vmul.f32 %v391_v28, %v3269_v29  ;;  %v503_v45 = vmul.f32 %v501_v35, %v3269_v29 }
  0xd6   : > { %849 = vst.msk [vmem:[#allocation2] sm:$0x1] %vm278_vm4, %v847_v31  ;;  %v562_v49 = vmul.f32 %v560_v39, %v3269_v29  ;;  %v349_v53 = vmul.f32 %v347_v51, %v3269_v29  ;;  %v674_v60 = vmul.f32 %v672_v47, %v3269_v29  ;;  %v350_v0 = vmul.f32 %v347_v51, %v3271_v30 }
  0xd7   : > { %850 = vst.msk [vmem:[#allocation2 + $0x10] sm:$0x2] %vm280_vm5, %v847_v31  ;;  %339 = vrot.lane.b32.xlu0 %v334_v33, %s4748_s21  ;;  %v371_v1 = vmul.f32 %v369_v62, %v3269_v29  ;;  %v354_v2 = vrot.slane %v348_v55, 1  ;;  %v733_v4 = vmul.f32 %v731_v52, %v3269_v29  ;;  %v372_v5 = vmul.f32 %v369_v62, %v3271_v30 }
  0xd8   : > { %v1393_v36 = vpop.permute.xlu0 %1392  ;;  %v1950_v54 = vpop.permute.xlu1 %1949  ;;  %v355_v63 = vrot.slane %v349_v53, 1  ;;  %v357_v9 = vrot.slane %v350_v0, 1  ;;  %v408_v12 = vmul.f32 %v406_v6, %v3269_v29  ;;  %v376_v15 = vrot.slane %v370_v3, 2 }
  0xd9   : > { %396 = vrot.lane.b32.xlu1 %v392_v34, %s4750_s12  ;;  %v377_v11 = vrot.slane %v371_v1, 2  ;;  %v407_v16 = vmul.f32 %v406_v6, %v3263_v24  ;;  %v409_v19 = vmul.f32 %v406_v6, %v3271_v30  ;;  %v430_v20 = vmul.f32 %v428_v7, %v3269_v29 }
  0xda   : > { %v356_v8 = vsel %vm301_vm7, %v354_v2, %v355_v63  ;;  %v358_v23 = vsel %vm301_vm7, %v355_v63, %v357_v9  ;;  %v379_v26 = vrot.slane %v372_v5, 2  ;;  %v414_v27 = vrot.slane %v408_v12, 1 }
  0xdb   : > { %398 = vrot.lane.b32.xlu0 %v393_v37, %s4750_s12  ;;  %v378_v25 = vsel %vm320_vm8, %v376_v15, %v377_v11  ;;  %v3399_v28 = vstv %s3333_s24  ;;  %v3402_v31 = vstv %s3344_s22  ;;  %v413_v33 = vrot.slane %v407_v16, 1  ;;  %s2666_s24 = sld [smem:[#allocation4 + $0x2a]] }
  0xdc   : > { %v3297_v41 = vld [vmem:[#allocation2 + $0x8] sm:$0xff]  ;;  %v1402_v44 = vpop.permute.xlu0 %1401  ;;  %v429_v34 = vmul.f32 %v428_v7, %v3263_v24  ;;  %v287_v35 = vstv %s3352_s30  ;;  %v416_v37 = vrot.slane %v409_v19, 1  ;;  %v313_v39 = vstv %s3359_s13  ;;  %s3545_s13 = sld [smem:[#allocation4 + $0x1e]] }
  0xdd   : > { %506 = vrot.lane.b32.xlu1 %v502_v38, %s4748_s21  ;;  %v3299_v42 = vld [vmem:[#allocation2] sm:$0xff]  ;;  %v436_v38 = vrot.slane %v430_v20, 2  ;;  %v518_v47 = vmul.f32 %v516_v13, %v3269_v29  ;;  %v517_v52 = vmul.f32 %v516_v13, %v3263_v24  ;;  %v540_v53 = vmul.f32 %v538_v14, %v3269_v29  ;;  %s2667_s22 = sld [smem:[#allocation4 + $0x33]] }
  0xde   : > { %v3301_v43 = vld [vmem:[#allocation2 + $0x10] sm:$0x3]  ;;  %1398 = vst.msk [vmem:[#allocation2 + $0x1] sm:$0xff] %vm271_vm6, %v1393_v36  ;;  %v294_v36 = vstv %s3356_s14  ;;  %v435_v51 = vrot.slane %v429_v34, 2  ;;  %v539_v55 = vmul.f32 %v538_v14, %v3263_v24  ;;  %v417_v62 = vsel %vm301_vm7, %v414_v27, %v416_v37  ;;  %s2672_s30 = sld [smem:[#allocation4 + $0x28]] }
  0xdf   : > { %1404 = vst.msk [vmem:[#allocation2] sm:$0x1] %vm278_vm4, %v1402_v44  ;;  %508 = vrot.lane.b32.xlu0 %v503_v45, %s4748_s21  ;;  %v415_v45 = vsel %vm301_vm7, %v413_v33, %v414_v27  ;;  %v524_v1 = vrot.slane %v518_v47, 1  ;;  %v578_v3 = vmul.f32 %v575_v17, %v3271_v30  ;;  %v3440_v5 = vstv %s3404_s16  ;;  %s2673_s14 = sld [smem:[#allocation4 + $0x31]] }
  0xe0   : > { %1405 = vst.msk [vmem:[#allocation2 + $0x10] sm:$0x2] %vm280_vm5, %v1402_v44  ;;  %v1948_v48 = vpop.permute.xlu0 %1947  ;;  %v380_v44 = vsel %vm320_vm8, %v377_v11, %v379_v26  ;;  %v437_v63 = vsel %vm320_vm8, %v435_v51, %v436_v38  ;;  %v523_v6 = vrot.slane %v517_v52, 1  ;;  %v598_v9 = vmul.f32 %v3380_v18, %v3263_v24  ;;  %s2682_s16 = sld [smem:[#allocation4 + $0x32]] }
  0xe1   : > { %1399 = vst.msk [vmem:[#allocation2 + $0x9] sm:$0xff] %vm271_vm6, %v1395_v40  ;;  %565 = vrot.lane.b32.xlu1 %v561_v46, %s4750_s12  ;;  %v431_v46 = vmul.f32 %v428_v7, %v3271_v30  ;;  %v546_v7 = vrot.slane %v540_v53, 2  ;;  %v545_v11 = vrot.slane %v539_v55, 2  ;;  %v315_v19 = vmul.f32 %v313_v39, %v3269_v29 }
  0xe2   : > { %v525_v16 = vsel %vm301_vm7, %v523_v6, %v524_v1  ;;  %v295_v26 = vmul.f32 %v294_v36, %v3263_v24  ;;  %v314_v37 = vmul.f32 %v313_v39, %v3263_v24  ;;  %v288_v47 = vmul.f32 %v287_v35, %v3263_v24 }
  0xe3   : > { %567 = vrot.lane.b32.xlu0 %v562_v49, %s4750_s12  ;;  %v438_v0 = vrot.slane %v431_v46, 2  ;;  %v547_v27 = vsel %vm320_vm8, %v545_v11, %v546_v7  ;;  %v322_v34 = vrot.slane %v315_v19, 2  ;;  %v297_v51 = vmul.f32 %v294_v36, %v3271_v30 }
  0xe4   : > { %v1957_v59 = vpop.permute.xlu0 %1956  ;;  %v302_v46 = vrot.slane %v295_v26, 1  ;;  %v316_v52 = vmul.f32 %v313_v39, %v3271_v30  ;;  %v688_v39 = vmul.f32 %v3385_v21, %v3263_v24 }
  0xe5   : > { %677 = vrot.lane.b32.xlu1 %v673_v50, %s4748_s21  ;;  %v3422_v50 = vstv %s3375_s7  ;;  %v439_v15 = vsel %vm320_vm8, %v436_v38, %v438_v0  ;;  %v690_v0 = vmul.f32 %v3385_v21, %v3271_v30  ;;  %s2675_s7 = sld [smem:[#allocation4 + $0x2b]] }
  0xe6   : > { %v3335_v56 = vld [vmem:[#allocation2] sm:$0xff] }
  0xe7   : > { %1959 = vst.msk [vmem:[#allocation2] sm:$0x1] %vm278_vm4, %v1957_v59  ;;  %679 = vrot.lane.b32.xlu0 %v674_v60, %s4748_s21  ;;  %s3365_s21 = sld [smem:[#allocation4 + $0x1]]  ;;  %v577_v60 = vmul.f32 %v575_v17, %v3269_v29 }
  0xe8   : > { %v3337_v57 = vld [vmem:[#allocation2 + $0x8] sm:$0xff]  ;;  %v3339_v58 = vld [vmem:[#allocation2 + $0x10] sm:$0x3] }
  0xe9   : > { %1953 = vst.msk [vmem:[#allocation2 + $0x1] sm:$0xff] %vm271_vm6, %v1948_v48  ;;  %1954 = vst.msk [vmem:[#allocation2 + $0x9] sm:$0xff] %vm271_vm6, %v1950_v54  ;;  %736 = vrot.lane.b32.xlu1 %v732_v61, %s4750_s12  ;;  %s3369_s12 = sld [smem:[#allocation4 + $0xa]]  ;;  %v519_v48 = vmul.f32 %v516_v13, %v3271_v30  ;;  %v541_v54 = vmul.f32 %v538_v14, %v3271_v30  ;;  %v629_v61 = vstv %s3390_s9  ;;  %v583_v12 = vrot.slane %v577_v60, 1 }
  0xea   : > { %1960 = vst.msk [vmem:[#allocation2 + $0x10] sm:$0x2] %vm280_vm5, %v1957_v59  ;;  %v576_v59 = vmul.f32 %v575_v17, %v3263_v24  ;;  %v3446_v13 = vmul.f32 %v3380_v18, %v3269_v29  ;;  %v296_v14 = vmul.f32 %v294_v36, %v3269_v29  ;;  %s2676_s9 = sld [smem:[#allocation4 + $0x34]] }
  0xeb   : > { %738 = vrot.lane.b32.xlu0 %v733_v4, %s4768_s2  ;;  %v526_v2 = vrot.slane %v519_v48, 1  ;;  %v3437_v4 = vstv %s3394_s11  ;;  %v321_v48 = vrot.slane %v314_v37, 2  ;;  %s2681_s11 = sld [smem:[#allocation4 + $0x29]] }
  0xec   : > { %v582_v17 = vrot.slane %v576_v59, 1 }
  0xed   : > { %359 = vrot.lane.b32.xlu1 %v356_v8, %s4769_s3  ;;  %v458_v40 = vstv %s3365_s21  ;;  %v548_v8 = vrot.slane %v541_v54, 2  ;;  %v527_v20 = vsel %vm301_vm7, %v524_v1, %v526_v2  ;;  %v604_v54 = vrot.slane %v598_v9, 2  ;;  %s3565_s21 = sld [smem:[#allocation4 + $0x21]] }
  0xee   : > { %v584_v38 = vsel %vm301_vm7, %v582_v17, %v583_v12  ;;  %v323_v60 = vsel %vm320_vm8, %v321_v48, %v322_v34  ;;  %v289_v1 = vmul.f32 %v287_v35, %v3269_v29  ;;  %v710_v2 = vmul.f32 %v3388_v22, %v3263_v24 }
  0xef   : > { %361 = vrot.lane.b32.xlu0 %v358_v23, %s4769_s3  ;;  %v3419_v49 = vstv %s3369_s12  ;;  %v585_v23 = vrot.slane %v578_v3, 1  ;;  %v549_v33 = vsel %vm320_vm8, %v546_v7, %v548_v8  ;;  %v747_v48 = vmul.f32 %v3399_v28, %v3263_v24  ;;  %s2671_s12 = sld [smem:[#allocation4 + $0x1f]] }
  0xf0   : > { %v467_v35 = vmul.f32 %v3419_v49, %v3269_v29 }
  0xf1   : > { %381 = vrot.lane.b32.xlu1 %v378_v25, %s4769_s3  ;;  %v303_v25 = vrot.slane %v296_v14, 1  ;;  %v586_v53 = vsel %vm301_vm7, %v583_v12, %v585_v23  ;;  %v711_v12 = vmul.f32 %v3388_v22, %v3269_v29  ;;  %v485_v14 = vmul.f32 %v3422_v50, %v3269_v29 }
  0xf2   : > { %v473_v19 = vrot.slane %v467_v35, 1  ;;  %v459_v23 = vmul.f32 %v458_v40, %v3263_v24  ;;  %v630_v35 = vmul.f32 %v629_v61, %v3263_v24 }
  0xf3   : > { %383 = vrot.lane.b32.xlu0 %v380_v44, %s4769_s3  ;;  %v605_v44 = vrot.slane %v3446_v13, 2  ;;  %v304_v55 = vsel %vm301_vm7, %v302_v46, %v303_v25  ;;  %v484_v13 = vmul.f32 %v3422_v50, %v3263_v24  ;;  %v491_v26 = vrot.slane %v485_v14, 2 }
  0xf4   : > { %v309_v59 = vadd.f32 %v304_v55, %v288_v47  ;;  %v717_v37 = vrot.slane %v711_v12, 2  ;;  %v468_v46 = vmul.f32 %v3419_v49, %v3271_v30  ;;  %v769_v55 = vmul.f32 %v3402_v31, %v3263_v24 }
  0xf5   : > { %418 = vrot.lane.b32.xlu1 %v415_v45, %s4768_s2  ;;  %v600_v45 = vmul.f32 %v3380_v18, %v3271_v30  ;;  %v689_v18 = vmul.f32 %v3385_v21, %v3269_v29  ;;  %v606_v36 = vsel %vm320_vm8, %v604_v54, %v605_v44  ;;  %v466_v21 = vmul.f32 %v3419_v49, %v3263_v24 }
  0xf6   : > { %v3485_v3 = vadd.f32 %v323_v60, %v309_v59  ;;  %v749_v49 = vmul.f32 %v3399_v28, %v3271_v30  ;;  %v460_v59 = vmul.f32 %v458_v40, %v3269_v29  ;;  %v770_v40 = vmul.f32 %v3402_v31, %v3269_v29 }
  0xf7   : > { %420 = vrot.lane.b32.xlu0 %v417_v62, %s4768_s2  ;;  %v305_v62 = vrot.slane %v297_v51, 1  ;;  %v607_v8 = vrot.slane %v600_v45, 2  ;;  %v695_v11 = vrot.slane %v689_v18, 1  ;;  %v472_v17 = vrot.slane %v466_v21, 1 }
  0xf8   : > { %4770 = vst [vmem:[#allocation17_spill] sm:$0xff] %v3485_v3  ;;  %v486_v51 = vmul.f32 %v3422_v50, %v3271_v30  ;;  %v475_v18 = vrot.slane %v468_v46, 1  ;;  %v639_v14 = vmul.f32 %v3437_v4, %v3271_v30 }
  0xf9   : > { %440 = vrot.lane.b32.xlu1 %v437_v63, %s4768_s2  ;;  %v324_v63 = vrot.slane %v316_v52, 2  ;;  %v306_v6 = vsel %vm301_vm7, %v303_v25, %v305_v62  ;;  %v490_v25 = vrot.slane %v484_v13, 2 }
  0xfa   : > { %v310_v9 = vadd.f32 %v306_v6, %v289_v1  ;;  %v493_v50 = vrot.slane %v486_v51, 2  ;;  %v476_v62 = vsel %vm301_vm7, %v473_v19, %v475_v18  ;;  %v655_v1 = vmul.f32 %v3440_v5, %v3263_v24 }
  0xfb   : > { %442 = vrot.lane.b32.xlu0 %v439_v15, %s4768_s2  ;;  %v325_v7 = vsel %vm320_vm8, %v322_v34, %v324_v63  ;;  %v712_v15 = vmul.f32 %v3388_v22, %v3271_v30  ;;  %v716_v34 = vrot.slane %v710_v2, 2  ;;  %v474_v22 = vsel %vm301_vm7, %v472_v17, %v473_v19 }
  0xfc   : > { %v492_v45 = vsel %vm320_vm8, %v490_v25, %v491_v26  ;;  %v637_v63 = vmul.f32 %v3437_v4, %v3263_v24  ;;  %v661_v12 = vrot.slane %v655_v1, 2  ;;  %v771_v17 = vmul.f32 %v3402_v31, %v3271_v30 }
  0xfd   : > { %528 = vrot.lane.b32.xlu1 %v525_v16, %s4769_s3  ;;  %v3503_v16 = vadd.f32 %v325_v7, %v310_v9  ;;  %v718_v60 = vsel %vm320_vm8, %v716_v34, %v717_v37  ;;  %v656_v7 = vmul.f32 %v3440_v5, %v3269_v29  ;;  %v753_v9 = vrot.slane %v747_v48, 1 }
  0xfe   : > { %v643_v2 = vrot.slane %v637_v63, 1  ;;  %v776_v25 = vrot.slane %v770_v40, 2  ;;  %v631_v31 = vmul.f32 %v629_v61, %v3269_v29  ;;  %v1064_v51 = vstv %s2671_s12  ;;  %s3702_s12 = sld [smem:[#allocation4 + $0x3a]] }
  0xff   : > { %530 = vrot.lane.b32.xlu0 %v527_v20, %s4769_s3  ;;  %4771 = vst [vmem:[#allocation18_spill] sm:$0xff] %v3503_v16  ;;  %v697_v20 = vrot.slane %v690_v0, 1  ;;  %v494_v0 = vsel %vm320_vm8, %v491_v26, %v493_v50  ;;  %v662_v13 = vrot.slane %v656_v7, 2  ;;  %v646_v26 = vrot.slane %v639_v14, 1 }
 0x100   : > { %v1123_v18 = vstv %s3585_s18  ;;  %v1066_v50 = vmul.f32 %v1064_v51, %v3297_v41  ;;  %s3713_s18 = sld [smem:[#allocation4 + $0x3b]] }
 0x101   : > { %550 = vrot.lane.b32.xlu1 %v547_v27, %s4769_s3  ;;  %v608_v27 = vsel %vm320_vm8, %v605_v44, %v607_v8  ;;  %v748_v44 = vmul.f32 %v3399_v28, %v3269_v29  ;;  %v698_v52 = vsel %vm301_vm7, %v695_v11, %v697_v20  ;;  %v480_v28 = vadd.f32 %v476_v62, %v460_v59 }
 0x102   : > { %v657_v20 = vmul.f32 %v3440_v5, %v3271_v30  ;;  %v663_v24 = vsel %vm320_vm8, %v661_v12, %v662_v13  ;;  %v775_v30 = vrot.slane %v769_v55, 2  ;;  %v914_v55 = vstv %s2663_s19  ;;  %s2706_s19 = sld [smem:[#allocation4 + $0x43]] }
 0x103   : > { %552 = vrot.lane.b32.xlu0 %v549_v33, %s4769_s3  ;;  %v694_v33 = vrot.slane %v688_v39, 1  ;;  %v754_v39 = vrot.slane %v748_v44, 1  ;;  %v3552_v21 = vadd.f32 %v494_v0, %v480_v28  ;;  %v1235_v59 = vstv %s3591_s20  ;;  %s3733_s20 = sld [smem:[#allocation4 + $0x56]] }
 0x104   : > { %v973_v28 = vstv %s2666_s24  ;;  %v1125_v0 = vmul.f32 %v1123_v18, %v3297_v41  ;;  %v1236_v1 = vmul.f32 %v1235_v59, %v3299_v42  ;;  %v1079_v12 = vstv %s2672_s30  ;;  %s2715_s24 = sld [smem:[#allocation4 + $0x44]] }
 0x105   : > { %587 = vrot.lane.b32.xlu1 %v584_v38, %s4768_s2  ;;  %v479_v38 = vadd.f32 %v474_v22, %v459_v23  ;;  %v696_v47 = vsel %vm301_vm7, %v694_v33, %v695_v11  ;;  %v755_v23 = vsel %vm301_vm7, %v753_v9, %v754_v39  ;;  %v976_v7 = vmul.f32 %v973_v28, %v3301_v43  ;;  %s2749_s30 = sld [smem:[#allocation4 + $0x5f]] }
 0x107   : > { %589 = vrot.lane.b32.xlu0 %v586_v53, %s4768_s2  ;;  %v719_v53 = vrot.slane %v712_v15, 2  ;;  %v3523_v54 = vadd.f32 %v492_v45, %v479_v38  ;;  %v756_v15 = vrot.slane %v749_v49, 1  ;;  %v778_v38 = vrot.slane %v771_v17, 2 }
 0x108   : > { %v899_v45 = vstv %s3545_s13  ;;  %v936_v49 = vstv %s2664_s8  ;;  %s2684_s13 = sld [smem:[#allocation4 + $0x2c]] }
 0x109   : > { %609 = vrot.lane.b32.xlu1 %v606_v36, %s4768_s2  ;;  %v638_v36 = vmul.f32 %v3437_v4, %v3269_v29  ;;  %v720_v8 = vsel %vm320_vm8, %v717_v37, %v719_v53  ;;  %v757_v22 = vsel %vm301_vm7, %v754_v39, %v756_v15  ;;  %v777_v37 = vsel %vm320_vm8, %v775_v30, %v776_v25  ;;  %s3724_s8 = sld [smem:[#allocation4 + $0x55]] }
 0x10a   : > { %v900_v61 = vmul.f32 %v899_v45, %v3299_v42  ;;  %v779_v46 = vsel %vm320_vm8, %v776_v25, %v778_v38  ;;  %v901_v48 = vmul.f32 %v899_v45, %v3297_v41  ;;  %v1065_v53 = vmul.f32 %v1064_v51, %v3299_v42 }
 0x10b   : > { %611 = vrot.lane.b32.xlu0 %v608_v27, %s4768_s2  ;;  %v644_v6 = vrot.slane %v638_v36, 1  ;;  %v664_v27 = vrot.slane %v657_v20, 2  ;;  %v938_v62 = vmul.f32 %v936_v49, %v3297_v41  ;;  %v939_v63 = vmul.f32 %v936_v49, %v3301_v43 }
 0x10c   : > { %v915_v36 = vmul.f32 %v914_v55, %v3299_v42  ;;  %v916_v39 = vmul.f32 %v914_v55, %v3297_v41  ;;  %v983_v15 = vrot.slane %v976_v7, 1  ;;  %v937_v25 = vmul.f32 %v936_v49, %v3299_v42 }
 0x10d   : > { %699 = vrot.lane.b32.xlu1 %v696_v47, %s4769_s3  ;;  %v645_v11 = vsel %vm301_vm7, %v643_v2, %v644_v6  ;;  %v647_v5 = vsel %vm301_vm7, %v644_v6, %v646_v26  ;;  %v665_v34 = vsel %vm320_vm8, %v662_v13, %v664_v27  ;;  %v958_v47 = vstv %s3565_s21  ;;  %s3679_s21 = sld [smem:[#allocation4 + $0x23]] }
 0x10e   : > { %v650_v19 = vadd.f32 %v645_v11, %v630_v35  ;;  %v651_v33 = vadd.f32 %v647_v5, %v631_v31  ;;  %v959_v44 = vmul.f32 %v958_v47, %v3299_v42  ;;  %v944_v40 = vrot.slane %v938_v62, 2 }
 0x10f   : > { %701 = vrot.lane.b32.xlu0 %v698_v52, %s4769_s3  ;;  %v960_v52 = vmul.f32 %v958_v47, %v3297_v41  ;;  %v946_v2 = vrot.slane %v939_v63, 2  ;;  %v975_v6 = vmul.f32 %v973_v28, %v3297_v41  ;;  %v922_v9 = vrot.slane %v916_v39, 1 }
 0x110   : > { %v3570_v4 = vadd.f32 %v663_v24, %v650_v19  ;;  %v3582_v29 = vadd.f32 %v665_v34, %v651_v33  ;;  %v917_v35 = vmul.f32 %v914_v55, %v3301_v43  ;;  %v995_v11 = vstv %s2667_s22  ;;  %s2740_s22 = sld [smem:[#allocation4 + $0x5e]] }
 0x111   : > { %721 = vrot.lane.b32.xlu1 %v718_v60, %s4769_s3  ;;  %v1124_v60 = vmul.f32 %v1123_v18, %v3299_v42  ;;  %v947_v13 = vsel %vm320_vm8, %v944_v40, %v946_v2  ;;  %v981_v14 = vrot.slane %v975_v6, 1  ;;  %v997_v17 = vmul.f32 %v995_v11, %v3297_v41 }
 0x112   : > { %v924_v20 = vrot.slane %v917_v35, 1  ;;  %v1101_v24 = vstv %s2673_s14  ;;  %v1081_v27 = vmul.f32 %v1079_v12, %v3297_v41  ;;  %v1082_v30 = vmul.f32 %v1079_v12, %v3301_v43  ;;  %s2707_s14 = sld [smem:[#allocation4 + $0x4c]] }
 0x113   : > { %723 = vrot.lane.b32.xlu0 %v720_v8, %s4769_s3  ;;  %v921_v8 = vrot.slane %v915_v36, 1  ;;  %v984_v26 = vsel %vm301_vm7, %v981_v14, %v983_v15  ;;  %v1003_v31 = vrot.slane %v997_v17, 2  ;;  %v943_v34 = vrot.slane %v937_v25, 2 }
 0x114   : > { %v925_v5 = vsel %vm301_vm7, %v922_v9, %v924_v20  ;;  %v1087_v38 = vrot.slane %v1081_v27, 1  ;;  %v1089_v45 = vrot.slane %v1082_v30, 1  ;;  %v996_v51 = vmul.f32 %v995_v11, %v3299_v42 }
 0x115   : > { %758 = vrot.lane.b32.xlu1 %v755_v23, %s4768_s2  ;;  %v923_v19 = vsel %vm301_vm7, %v921_v8, %v922_v9  ;;  %v998_v23 = vmul.f32 %v995_v11, %v3301_v43  ;;  %v1080_v63 = vmul.f32 %v1079_v12, %v3299_v42  ;;  %v1102_v6 = vmul.f32 %v1101_v24, %v3299_v42 }
 0x116   : > { %v1237_v27 = vmul.f32 %v1235_v59, %v3297_v41 }
 0x117   : > { %760 = vrot.lane.b32.xlu0 %v757_v22, %s4768_s2  ;;  %v1005_v33 = vrot.slane %v998_v23, 2  ;;  %v974_v22 = vmul.f32 %v973_v28, %v3299_v42  ;;  %v1086_v2 = vrot.slane %v1080_v63, 1  ;;  %v1108_v12 = vrot.slane %v1102_v6, 2 }
 0x119   : > { %780 = vrot.lane.b32.xlu1 %v777_v37, %s4768_s2  ;;  %v1138_v37 = vstv %s2675_s7  ;;  %v1006_v47 = vsel %vm320_vm8, %v1003_v31, %v1005_v33  ;;  %v1088_v11 = vsel %vm301_vm7, %v1086_v2, %v1087_v38  ;;  %s2716_s7 = sld [smem:[#allocation4 + $0x4d]] }
 0x11a   : > { %v1140_v55 = vmul.f32 %v1138_v37, %v3297_v41  ;;  %v1141_v62 = vmul.f32 %v1138_v37, %v3301_v43  ;;  %v1139_v9 = vmul.f32 %v1138_v37, %v3299_v42 }
 0x11b   : > { %782 = vrot.lane.b32.xlu0 %v779_v46, %s4768_s2  ;;  %v1104_v46 = vmul.f32 %v1101_v24, %v3301_v43 }
 0x11c   : > { %v1146_v39 = vrot.slane %v1140_v55, 1  ;;  %v1145_v17 = vrot.slane %v1139_v9, 1  ;;  %v1294_v55 = vstv %s3679_s21  ;;  %s3862_s21 = sld [smem:[#allocation4 + $0x58]] }
 0x11d   : > { %904 = vrot.lane.b32.xlu1 %v900_v61, %s4769_s3  ;;  %v1103_v61 = vmul.f32 %v1101_v24, %v3297_v41  ;;  %v1111_v49 = vrot.slane %v1104_v46, 2 }
 0x11e   : > { %v1147_v30 = vsel %vm301_vm7, %v1145_v17, %v1146_v39 }
 0x11f   : > { %906 = vrot.lane.b32.xlu0 %v901_v48, %s4769_s3  ;;  %v945_v48 = vsel %vm320_vm8, %v943_v34, %v944_v40  ;;  %v1109_v18 = vrot.slane %v1103_v61, 2  ;;  %v1148_v40 = vrot.slane %v1141_v62, 1 }
 0x121   : > { %963 = vrot.lane.b32.xlu1 %v959_v44, %s4768_s2  ;;  %v980_v44 = vrot.slane %v974_v22, 1  ;;  %v1112_v36 = vsel %vm320_vm8, %v1109_v18, %v1111_v49  ;;  %v1149_v35 = vsel %vm301_vm7, %v1146_v39, %v1148_v40  ;;  %v1110_v20 = vsel %vm320_vm8, %v1108_v12, %v1109_v18 }
 0x123   : > { %965 = vrot.lane.b32.xlu0 %v960_v52, %s4768_s2  ;;  %v1160_v52 = vstv %s2676_s9  ;;  %s2741_s9 = sld [smem:[#allocation4 + $0x67]] }
 0x124   : > { %v1162_v28 = vmul.f32 %v1160_v52, %v3297_v41  ;;  %v1161_v24 = vmul.f32 %v1160_v52, %v3299_v42 }
 0x125   : > { %1069 = vrot.lane.b32.xlu1 %v1065_v53, %s4769_s3  ;;  %v1090_v53 = vsel %vm301_vm7, %v1087_v38, %v1089_v45 }
 0x126   : > { %v1168_v7 = vrot.slane %v1162_v28, 2  ;;  %v1167_v37 = vrot.slane %v1161_v24, 2  ;;  %v1296_v28 = vmul.f32 %v1294_v55, %v3297_v41 }
 0x127   : > { %1071 = vrot.lane.b32.xlu0 %v1066_v50, %s4769_s3  ;;  %v982_v50 = vsel %vm301_vm7, %v980_v44, %v981_v14 }
 0x129   : > { %1128 = vrot.lane.b32.xlu1 %v1124_v60, %s4768_s2  ;;  %v1002_v60 = vrot.slane %v996_v51, 2 }
 0x12b   : > { %1130 = vrot.lane.b32.xlu0 %v1125_v0, %s4768_s2  ;;  %v1163_v0 = vmul.f32 %v1160_v52, %v3301_v43  ;;  %v1309_v52 = vstv %s2684_s13  ;;  %s3851_s13 = sld [smem:[#allocation4 + $0x3e]] }
 0x12c   : > { %v1311_v62 = vmul.f32 %v1309_v52, %v3297_v41  ;;  %v1312_v63 = vmul.f32 %v1309_v52, %v3301_v43  ;;  %v1310_v2 = vmul.f32 %v1309_v52, %v3299_v42 }
 0x12d   : > { %1240 = vrot.lane.b32.xlu1 %v1236_v1, %s4769_s3  ;;  %v1004_v1 = vsel %vm320_vm8, %v1002_v60, %v1003_v31  ;;  %v1170_v8 = vrot.slane %v1163_v0, 2 }
 0x12e   : > { %v1319_v40 = vrot.slane %v1312_v63, 1 }
 0x12f   : > { %950 = vrot.lane.b32.xlu0 %v947_v13, %s4769_s3  ;;  %v1250_v13 = vstv %s2681_s11  ;;  %v1171_v15 = vsel %vm320_vm8, %v1168_v7, %v1170_v8  ;;  %v1295_v8 = vmul.f32 %v1294_v55, %v3299_v42  ;;  %s2750_s11 = sld [smem:[#allocation4 + $0x68]] }
 0x130   : > { %v1252_v23 = vmul.f32 %v1250_v13, %v3297_v41  ;;  %v1253_v25 = vmul.f32 %v1250_v13, %v3301_v43  ;;  %v1251_v38 = vmul.f32 %v1250_v13, %v3299_v42 }
 0x131   : > { %926 = vrot.lane.b32.xlu1 %v923_v19, %s4769_s3  ;;  %v1272_v19 = vstv %s2682_s16  ;;  %s3840_s16 = sld [smem:[#allocation4 + $0x3d]] }
 0x132   : > { %v1275_v33 = vmul.f32 %v1272_v19, %v3301_v43  ;;  %v1258_v34 = vrot.slane %v1252_v23, 1  ;;  %v1260_v22 = vrot.slane %v1253_v25, 1  ;;  %v1257_v44 = vrot.slane %v1251_v38, 1 }
 0x133   : > { %987 = vrot.lane.b32.xlu0 %v984_v26, %s4768_s2  ;;  %v1273_v51 = vmul.f32 %v1272_v19, %v3299_v42  ;;  %v2345_v38 = vstv %s3733_s20  ;;  %s2670_s20 = sld [smem:[#allocation4 + $0x2e]] }
 0x134   : > { %v1282_v46 = vrot.slane %v1275_v33, 2 }
 0x135   : > { %928 = vrot.lane.b32.xlu1 %v925_v5, %s4769_s3  ;;  %v1274_v5 = vmul.f32 %v1272_v19, %v3297_v41  ;;  %v1279_v60 = vrot.slane %v1273_v51, 2  ;;  %v1790_v19 = vstv %s3713_s18  ;;  %s2669_s18 = sld [smem:[#allocation4 + $0x25]] }
 0x136   : > { %v1792_v25 = vmul.f32 %v1790_v19, %v3337_v57 }
 0x137   : > { %1009 = vrot.lane.b32.xlu0 %v1006_v47, %s4768_s2  ;;  %v1280_v61 = vrot.slane %v1274_v5, 2  ;;  %v1261_v47 = vsel %vm301_vm7, %v1258_v34, %v1260_v22  ;;  %v3748_v5 = vld [vmem:[#allocation2 + $0x8] sm:$0xff] }
 0x139   : > { %948 = vrot.lane.b32.xlu1 %v945_v48, %s4769_s3  ;;  %v1169_v48 = vsel %vm320_vm8, %v1167_v37, %v1168_v7  ;;  %v1283_v49 = vsel %vm320_vm8, %v1280_v61, %v1282_v46  ;;  %v1281_v0 = vsel %vm320_vm8, %v1279_v60, %v1280_v61  ;;  %v1791_v37 = vmul.f32 %v1790_v19, %v3335_v56 }
 0x13b   : > { %1093 = vrot.lane.b32.xlu0 %v1090_v53, %s4769_s3 }
 0x13d   : > { %985 = vrot.lane.b32.xlu1 %v982_v50, %s4768_s2  ;;  %v1259_v50 = vsel %vm301_vm7, %v1257_v44, %v1258_v34 }
 0x13f   : > { %1115 = vrot.lane.b32.xlu0 %v1112_v36, %s4769_s3 }
 0x141   : > { %1007 = vrot.lane.b32.xlu1 %v1004_v1, %s4768_s2  ;;  %v1317_v1 = vrot.slane %v1311_v62, 1 }
 0x143   : > { %1152 = vrot.lane.b32.xlu0 %v1149_v35, %s4768_s2  ;;  %v1320_v9 = vsel %vm301_vm7, %v1317_v1, %v1319_v40  ;;  %v1619_v35 = vstv %s3702_s12  ;;  %s2709_s12 = sld [smem:[#allocation4 + $0x46]] }
 0x144   : > { %v1620_v24 = vmul.f32 %v1619_v35, %v3335_v56 }
 0x145   : > { %1091 = vrot.lane.b32.xlu1 %v1088_v11, %s4769_s3  ;;  %v1316_v11 = vrot.slane %v1310_v2, 1 }
 0x147   : > { %v3660_v14 = vpop.permute.xlu1 %337  ;;  %1174 = vrot.lane.b32.xlu0 %v1171_v15, %s4768_s2  ;;  %v1621_v15 = vmul.f32 %v1619_v35, %v3337_v57  ;;  %v1318_v17 = vsel %vm301_vm7, %v1316_v11, %v1317_v1 }
 0x148   : > { %4772 = vst [vmem:[#allocation19_spill] sm:$0xff] %v3660_v14 }
 0x149   : > { %1113 = vrot.lane.b32.xlu1 %v1110_v20, %s4769_s3  ;;  %v3669_v26 = vpop.permute.xlu0 %339 }
 0x14a   : > { %4773 = vst [vmem:[#allocation20_spill] sm:$0xff] %v3669_v26 }
 0x14b   : > { %v3671_v31 = vpop.permute.xlu1 %396  ;;  %1242 = vrot.lane.b32.xlu0 %v1237_v27, %s4769_s3  ;;  %v2174_v27 = vstv %s3724_s8  ;;  %s2718_s8 = sld [smem:[#allocation4 + $0x47]] }
 0x14c   : > { %4774 = vst [vmem:[#allocation21_spill] sm:$0xff] %v3671_v31  ;;  %v2176_v22 = vmul.f32 %v2174_v27, %v3748_v5 }
 0x14d   : > { %1150 = vrot.lane.b32.xlu1 %v1147_v30, %s4768_s2  ;;  %v3684_v45 = vpop.permute.xlu0 %398  ;;  %v1634_v30 = vstv %s2706_s19  ;;  %s3873_s19 = sld [smem:[#allocation4 + $0x59]] }
 0x14e   : > { %4775 = vst [vmem:[#allocation22_spill] sm:$0xff] %v3684_v45  ;;  %v1636_v61 = vmul.f32 %v1634_v30, %v3337_v57  ;;  %v1637_v46 = vmul.f32 %v1634_v30, %v3339_v58  ;;  %v1635_v44 = vmul.f32 %v1634_v30, %v3335_v56 }
 0x14f   : > { %v3686_v59 = vpop.permute.xlu1 %506  ;;  %1264 = vrot.lane.b32.xlu0 %v1261_v47, %s4769_s3  ;;  %v1805_v47 = vstv %s2715_s24  ;;  %s2743_s24 = sld [smem:[#allocation4 + $0x61]] }
 0x150   : > { %v1808_v60 = vmul.f32 %v1805_v47, %v3339_v58  ;;  %v1642_v62 = vrot.slane %v1636_v61, 1  ;;  %v1644_v63 = vrot.slane %v1637_v46, 1  ;;  %v1641_v40 = vrot.slane %v1635_v44, 1 }
 0x151   : > { %1172 = vrot.lane.b32.xlu1 %v1169_v48, %s4768_s2  ;;  %v3693_v53 = vpop.permute.xlu0 %508  ;;  %v3761_v48 = vld [vmem:[#allocation2] sm:$0xff]  ;;  %v1806_v2 = vmul.f32 %v1805_v47, %v3335_v56 }
 0x152   : > { %v2175_v55 = vmul.f32 %v2174_v27, %v3761_v48  ;;  %v2346_v1 = vmul.f32 %v2345_v38, %v3761_v48  ;;  %v1815_v11 = vrot.slane %v1808_v60, 1  ;;  %v1645_v19 = vsel %vm301_vm7, %v1642_v62, %v1644_v63 }
 0x153   : > { %v3695_v18 = vpop.permute.xlu1 %565  ;;  %1286 = vrot.lane.b32.xlu0 %v1283_v49, %s4769_s3  ;;  %v2347_v49 = vmul.f32 %v2345_v38, %v3748_v5 }
 0x155   : > { %1262 = vrot.lane.b32.xlu1 %v1259_v50, %s4769_s3  ;;  %v3706_v36 = vpop.permute.xlu0 %567  ;;  %v1807_v50 = vmul.f32 %v1805_v47, %v3337_v57 }
 0x157   : > { %v3708_v39 = vpop.permute.xlu1 %677  ;;  %1301 = vrot.lane.b32.xlu0 %v1296_v28, %s4768_s2  ;;  %v2189_v28 = vstv %s2740_s22  ;;  %v1813_v35 = vrot.slane %v1807_v50, 1  ;;  %s3886_s22 = sld [smem:[#allocation4 + $0x1c]] }
 0x158   : > { %v2190_v44 = vmul.f32 %v2189_v28, %v3761_v48 }
 0x159   : > { %1284 = vrot.lane.b32.xlu1 %v1281_v0, %s4769_s3  ;;  %v3717_v6 = vpop.permute.xlu0 %679  ;;  %v3774_v0 = vld [vmem:[#allocation2 + $0x10] sm:$0x3] }
 0x15b   : > { %v3719_v7 = vpop.permute.xlu1 %736  ;;  %1323 = vrot.lane.b32.xlu0 %v1320_v9, %s4768_s2 }
 0x15d   : > { %1299 = vrot.lane.b32.xlu1 %v1295_v8, %s4768_s2  ;;  %v3728_v12 = vpop.permute.xlu0 %738 }
 0x15f   : > { %v3730_v13 = vpop.permute.xlu1 %359  ;;  %1626 = vrot.lane.b32.xlu0 %v1621_v15, %s4769_s3  ;;  %v2191_v15 = vmul.f32 %v2189_v28, %v3748_v5 }
 0x160   : > { %4776 = vst [vmem:[#allocation23_spill] sm:$0xff] %v3730_v13  ;;  %v1021_v13 = vstv %s3886_s22  ;;  %s4098_s22 = sld [smem:[#allocation4 + $0x42]] }
 0x161   : > { %1321 = vrot.lane.b32.xlu1 %v1318_v17, %s4768_s2  ;;  %v3739_v20 = vpop.permute.xlu0 %361  ;;  %v2192_v17 = vmul.f32 %v2189_v28, %v3774_v0  ;;  %v2197_v38 = vrot.slane %v2191_v15, 1  ;;  %v1827_v15 = vstv %s2716_s7  ;;  %s3934_s7 = sld [smem:[#allocation4 + $0x26]] }
 0x162   : > { %4777 = vst [vmem:[#allocation24_spill] sm:$0xff] %v3739_v20  ;;  %v2248_v20 = vstv %s2743_s24  ;;  %s4093_s24 = sld [smem:[#allocation4 + $0x38]] }
 0x163   : > { %v3741_v23 = vpop.permute.xlu1 %381  ;;  %1797 = vrot.lane.b32.xlu0 %v1792_v25, %s4769_s3  ;;  %v2360_v25 = vstv %s2749_s30  ;;  %v2199_v61 = vrot.slane %v2192_v17, 1  ;;  %s3903_s30 = sld [smem:[#allocation4 + $0x62]] }
 0x164   : > { %4778 = vst [vmem:[#allocation25_spill] sm:$0xff] %v3741_v23  ;;  %v2362_v46 = vmul.f32 %v2360_v25, %v3748_v5  ;;  %v2363_v47 = vmul.f32 %v2360_v25, %v3774_v0 }
 0x165   : > { %1624 = vrot.lane.b32.xlu1 %v1620_v24, %s4769_s3  ;;  %v3750_v33 = vpop.permute.xlu0 %383  ;;  %v1812_v24 = vrot.slane %v1806_v2, 1 }
 0x166   : > { %4779 = vst [vmem:[#allocation26_spill] sm:$0xff] %v3750_v33  ;;  %v2370_v2 = vrot.slane %v2363_v47, 1 }
 0x167   : > { %v3752_v34 = vpop.permute.xlu1 %418  ;;  %2181 = vrot.lane.b32.xlu0 %v2176_v22, %s4769_s3  ;;  %v1816_v22 = vsel %vm301_vm7, %v1813_v35, %v1815_v11  ;;  %v1814_v63 = vsel %vm301_vm7, %v1812_v24, %v1813_v35  ;;  %v2196_v11 = vrot.slane %v2190_v44, 1  ;;  %v1829_v24 = vmul.f32 %v1827_v15, %v3337_v57 }
 0x168   : > { %4780 = vst [vmem:[#allocation27_spill] sm:$0xff] %v3752_v34  ;;  %v2211_v44 = vstv %s2741_s9  ;;  %s3945_s9 = sld [smem:[#allocation4 + $0x4f]] }
 0x169   : > { %1795 = vrot.lane.b32.xlu1 %v1791_v37, %s4769_s3  ;;  %v3764_v51 = vpop.permute.xlu0 %420  ;;  %v1643_v37 = vsel %vm301_vm7, %v1641_v40, %v1642_v62  ;;  %v2200_v62 = vsel %vm301_vm7, %v2197_v38, %v2199_v61  ;;  %v2368_v40 = vrot.slane %v2362_v46, 1  ;;  %v2198_v46 = vsel %vm301_vm7, %v2196_v11, %v2197_v38 }
 0x16a   : > { %4781 = vst [vmem:[#allocation28_spill] sm:$0xff] %v3764_v51  ;;  %v1828_v11 = vmul.f32 %v1827_v15, %v3335_v56 }
 0x16b   : > { %v3766_v52 = vpop.permute.xlu1 %440  ;;  %2352 = vrot.lane.b32.xlu0 %v2347_v49, %s4769_s3  ;;  %v1656_v49 = vstv %s2707_s14  ;;  %v2371_v61 = vsel %vm301_vm7, %v2368_v40, %v2370_v2  ;;  %v2213_v2 = vmul.f32 %v2211_v44, %v3748_v5  ;;  %s3916_s14 = sld [smem:[#allocation4 + $0x35]] }
 0x16c   : > { %4782 = vst [vmem:[#allocation29_spill] sm:$0xff] %v3766_v52  ;;  %v1659_v28 = vmul.f32 %v1656_v49, %v3339_v58  ;;  %v1657_v47 = vmul.f32 %v1656_v49, %v3335_v56  ;;  %v2212_v52 = vmul.f32 %v2211_v44, %v3761_v48 }
 0x16d   : > { %2179 = vrot.lane.b32.xlu1 %v2175_v55, %s4769_s3  ;;  %v3778_v8 = vpop.permute.xlu0 %442  ;;  %v2361_v55 = vmul.f32 %v2360_v25, %v3761_v48 }
 0x16e   : > { %4783 = vst [vmem:[#allocation30_spill] sm:$0xff] %v3778_v8  ;;  %v1666_v35 = vrot.slane %v1659_v28, 2  ;;  %v1835_v28 = vrot.slane %v1829_v24, 2  ;;  %v1663_v38 = vrot.slane %v1657_v47, 2  ;;  %v2219_v24 = vrot.slane %v2213_v2, 2 }
 0x16f   : > { %v3780_v9 = vpop.permute.xlu1 %528  ;;  %1648 = vrot.lane.b32.xlu0 %v1645_v19, %s4769_s3  ;;  %v2367_v17 = vrot.slane %v2361_v55, 1 }
 0x171   : > { %2350 = vrot.lane.b32.xlu1 %v2346_v1, %s4769_s3  ;;  %v3787_v27 = vpop.permute.xlu0 %530  ;;  %v1658_v1 = vmul.f32 %v1656_v49, %v3337_v57  ;;  %v2369_v55 = vsel %vm301_vm7, %v2367_v17, %v2368_v40  ;;  %v2214_v49 = vmul.f32 %v2211_v44, %v3774_v0 }
 0x173   : > { %v3789_v30 = vpop.permute.xlu1 %550  ;;  %1819 = vrot.lane.b32.xlu0 %v1816_v22, %s4769_s3  ;;  %v1664_v22 = vrot.slane %v1658_v1, 2  ;;  %v2221_v8 = vrot.slane %v2214_v49, 2 }
 0x175   : > { %1646 = vrot.lane.b32.xlu1 %v1643_v37, %s4769_s3  ;;  %v3799_v50 = vpop.permute.xlu0 %552  ;;  %v1830_v37 = vmul.f32 %v1827_v15, %v3339_v58  ;;  %v1667_v1 = vsel %vm320_vm8, %v1664_v22, %v1666_v35  ;;  %v1665_v47 = vsel %vm320_vm8, %v1663_v38, %v1664_v22  ;;  %v1834_v15 = vrot.slane %v1828_v11, 2 }
 0x176   : > { %v2222_v51 = vsel %vm320_vm8, %v2219_v24, %v2221_v8  ;;  %v2218_v38 = vrot.slane %v2212_v52, 2 }
 0x177   : > { %v3801_v60 = vpop.permute.xlu1 %587  ;;  %2203 = vrot.lane.b32.xlu0 %v2200_v62, %s4769_s3  ;;  %v1837_v10 = vrot.slane %v1830_v37, 2  ;;  %v1836_v22 = vsel %vm320_vm8, %v1834_v15, %v1835_v28 }
 0x178   : > { %4784 = vst [vmem:[#allocation31_spill] sm:$0xff] %v3801_v60  ;;  %v2220_v8 = vsel %vm320_vm8, %v2218_v38, %v2219_v24  ;;  %v2233_v38 = vstv %s3862_s21  ;;  %s4029_s21 = sld [smem:[#allocation4 + $0x6a]] }
 0x179   : > { %1817 = vrot.lane.b32.xlu1 %v1814_v63, %s4769_s3  ;;  %v3809_v19 = vpop.permute.xlu0 %589  ;;  %v1838_v35 = vsel %vm320_vm8, %v1835_v28, %v1837_v10  ;;  %v2234_v31 = vmul.f32 %v2233_v38, %v3761_v48 }
 0x17b   : > { %v3811_v25 = vpop.permute.xlu1 %609  ;;  %2374 = vrot.lane.b32.xlu0 %v2371_v61, %s4769_s3  ;;  %v2382_v61 = vstv %s2750_s11  ;;  %s3964_s11 = sld [smem:[#allocation4 + $0x2f]] }
 0x17c   : > { %4785 = vst [vmem:[#allocation32_spill] sm:$0xff] %v3811_v25  ;;  %v2384_v37 = vmul.f32 %v2382_v61, %v3748_v5  ;;  %v2383_v44 = vmul.f32 %v2382_v61, %v3761_v48 }
 0x17d   : > { %2201 = vrot.lane.b32.xlu1 %v2198_v46, %s4769_s3  ;;  %v3821_v62 = vpop.permute.xlu0 %611  ;;  %v2385_v46 = vmul.f32 %v2382_v61, %v3774_v0 }
 0x17e   : > { %v2389_v28 = vrot.slane %v2383_v44, 2  ;;  %v1028_v44 = vstv %s2669_s18  ;;  %s3072_s18 = smov 127  }
 0x17f   : > { %v3823_v63 = vpop.permute.xlu1 %699  ;;  %1670 = vrot.lane.b32.xlu0 %v1667_v1, %s4769_s3  ;;  %v2390_v1 = vrot.slane %v2384_v37, 2  ;;  %v2392_v2 = vrot.slane %v2385_v46, 2  ;;  %v1678_v37 = vstv %s3840_s16  ;;  %v1849_v46 = vstv %s3851_s13  ;;  %s3974_s16 = sld [smem:[#allocation4 + $0x50]] }
 0x180   : > { %v1680_v61 = vmul.f32 %v1678_v37, %v3337_v57  ;;  %s4003_s13 = sld [smem:[#allocation4 + $0x1d]] }
 0x181   : > { %2372 = vrot.lane.b32.xlu1 %v2369_v55, %s4769_s3  ;;  %v3831_v40 = vpop.permute.xlu0 %701  ;;  %v2391_v24 = vsel %vm320_vm8, %v2389_v28, %v2390_v1  ;;  %v2235_v28 = vmul.f32 %v2233_v38, %v3748_v5 }
 0x183   : > { %v3833_v17 = vpop.permute.xlu1 %721  ;;  %1841 = vrot.lane.b32.xlu0 %v1838_v35, %s4769_s3  ;;  %v2393_v35 = vsel %vm320_vm8, %v2390_v1, %v2392_v2  ;;  %v1851_v2 = vmul.f32 %v1849_v46, %v3337_v57  ;;  %v1693_v1 = vstv %s2709_s12  ;;  %s4058_s12 = sld [smem:[#allocation4 + $0x6b]] }
 0x185   : > { %1668 = vrot.lane.b32.xlu1 %v1665_v47, %s4769_s3  ;;  %v3844_v55 = vpop.permute.xlu0 %723 }
 0x187   : > { %v3846_v10 = vpop.permute.xlu1 %758  ;;  %2225 = vrot.lane.b32.xlu0 %v2222_v51, %s4769_s3 }
 0x189   : > { %1839 = vrot.lane.b32.xlu1 %v1836_v22, %s4769_s3  ;;  %v3855_v49 = vpop.permute.xlu0 %760  ;;  %v1679_v22 = vmul.f32 %v1678_v37, %v3335_v56  ;;  %v1695_v37 = vmul.f32 %v1693_v1, %v3337_v57 }
 0x18a   : > { %4786 = vst [vmem:[#allocation33_spill] sm:$0xff] %v3855_v49 }
 0x18b   : > { %v3857_v11 = vpop.permute.xlu1 %780  ;;  %2396 = vrot.lane.b32.xlu0 %v2393_v35, %s4769_s3  ;;  %v1701_v23 = vrot.slane %v1695_v37, 1 }
 0x18d   : > { %2223 = vrot.lane.b32.xlu1 %v2220_v8, %s4769_s3  ;;  %v3866_v51 = vpop.permute.xlu0 %782 }
 0x18e   : > { %4787 = vst [vmem:[#allocation34_spill] sm:$0xff] %v3866_v51 }
 0x18f   : > { %v3868_v52 = vpop.permute.xlu1 %904  ;;  %1685 = vrot.lane.b32.xlu0 %v1680_v61, %s4768_s2  ;;  %v1850_v61 = vmul.f32 %v1849_v46, %v3335_v56  ;;  %v1694_v46 = vmul.f32 %v1693_v1, %v3335_v56 }
 0x190   : > { %4788 = vst [vmem:[#allocation35_spill] sm:$0xff] %v3868_v52  ;;  %v3899_v52 = vmul.f32 %v1028_v44, %v3297_v41 }
 0x191   : > { %2394 = vrot.lane.b32.xlu1 %v2391_v24, %s4769_s3  ;;  %v3877_v47 = vpop.permute.xlu0 %906  ;;  %v2404_v24 = vstv %s3873_s19  ;;  %s4083_s19 = sld [smem:[#allocation4 + $0x4a]] }
 0x192   : > { %4789 = vst [vmem:[#allocation36_spill] sm:$0xff] %v3877_v47  ;;  %v2406_v45 = vmul.f32 %v2404_v24, %v3748_v5  ;;  %v2405_v37 = vmul.f32 %v2404_v24, %v3761_v48  ;;  %v1022_v24 = vmul.f32 %v1021_v13, %v3299_v42 }
 0x193   : > { %v3879_v15 = vpop.permute.xlu1 %963  ;;  %1856 = vrot.lane.b32.xlu0 %v1851_v2, %s4768_s2  ;;  %v1864_v2 = vstv %s2718_s8  ;;  %s4070_s8 = sld [smem:[#allocation4 + $0x41]] }
 0x194   : > { %4790 = vst [vmem:[#allocation37_spill] sm:$0xff] %v3879_v15  ;;  %v1696_v15 = vmul.f32 %v1693_v1, %v3339_v58  ;;  %v3913_v33 = vmul.f32 %v1864_v2, %v3337_v57  ;;  %v1865_v51 = vmul.f32 %v1864_v2, %v3335_v56 }
 0x195   : > { %1683 = vrot.lane.b32.xlu1 %v1679_v22, %s4768_s2  ;;  %v3888_v35 = vpop.permute.xlu0 %965  ;;  %v1029_v22 = vmul.f32 %v1028_v44, %v3299_v42 }
 0x196   : > { %4791 = vst [vmem:[#allocation38_spill] sm:$0xff] %v3888_v35  ;;  %v1046_v35 = vstv %s2670_s20  ;;  %v1871_v49 = vrot.slane %v1865_v51, 1  ;;  %s3073_s20 = smov 126  }
 0x197   : > { %v3890_v8 = vpop.permute.xlu1 %1069  ;;  %2240 = vrot.lane.b32.xlu0 %v2235_v28, %s4768_s2  ;;  %v1867_v28 = vmul.f32 %v1864_v2, %v3339_v58  ;;  %v1035_v1 = vrot.slane %v1029_v22, 1  ;;  %v1047_v38 = vmul.f32 %v1046_v35, %v3299_v42  ;;  %v3924_v16 = vmul.f32 %v1046_v35, %v3297_v41 }
 0x198   : > { %4792 = vst [vmem:[#allocation39_spill] sm:$0xff] %v3890_v8  ;;  %v1872_v22 = vrot.slane %v3913_v33, 1  ;;  %v2419_v33 = vstv %s3903_s30  ;;  %v2249_v2 = vmul.f32 %v2248_v20, %v3761_v48  ;;  %s4106_s30 = sld [smem:[#allocation4 + $0x39]] }
 0x199   : > { %1854 = vrot.lane.b32.xlu1 %v1850_v61, %s4768_s2  ;;  %v3906_v47 = vpop.permute.xlu0 %1071  ;;  %v1703_v61 = vrot.slane %v1696_v15, 1  ;;  %v1700_v15 = vrot.slane %v1694_v46, 1  ;;  %v1874_v26 = vrot.slane %v1867_v28, 1  ;;  %v4796_v46 = vrot.slane %v3899_v52, 1 }
 0x19a   : > { %v1053_v28 = vrot.slane %v1047_v38, 2  ;;  %v2421_v60 = vmul.f32 %v2419_v33, %v3748_v5  ;;  %v2422_v38 = vmul.f32 %v2419_v33, %v3774_v0  ;;  %v2255_v51 = vrot.slane %v2249_v2, 1 }
 0x19b   : > { %v3908_v34 = vpop.permute.xlu1 %1128  ;;  %2411 = vrot.lane.b32.xlu0 %v2406_v45, %s4768_s2  ;;  %v2250_v45 = vmul.f32 %v2248_v20, %v3748_v5  ;;  %v1037_v25 = vsel %vm301_vm7, %v1035_v1, %v4796_v46  ;;  %v1875_v1 = vsel %vm301_vm7, %v1872_v22, %v1874_v26 }
 0x19c   : > { %4793 = vst [vmem:[#allocation40_spill] sm:$0xff] %v3908_v34  ;;  %v1704_v34 = vsel %vm301_vm7, %v1701_v23, %v1703_v61  ;;  %v1031_v61 = vmul.f32 %v1028_v44, %v3301_v43  ;;  %v1023_v44 = vmul.f32 %v1021_v13, %v3297_v41  ;;  %v2429_v2 = vrot.slane %v2422_v38, 1 }
 0x19d   : > { %2238 = vrot.lane.b32.xlu1 %v2234_v31, %s4768_s2  ;;  %v3927_v14 = vpop.permute.xlu0 %1130  ;;  %v2251_v31 = vmul.f32 %v2248_v20, %v3774_v0  ;;  %v1049_v20 = vmul.f32 %v1046_v35, %v3301_v43 }
 0x19e   : > { %4794 = vst [vmem:[#allocation41_spill] sm:$0xff] %v3927_v14 }
 0x19f   : > { %v3929_v3 = vpop.permute.xlu1 %1240  ;;  %1707 = vrot.lane.b32.xlu0 %v1704_v34, %s4768_s2  ;;  %v1702_v34 = vsel %vm301_vm7, %v1700_v15, %v1701_v23  ;;  %v2258_v46 = vrot.slane %v2251_v31, 1  ;;  %v1038_v23 = vrot.slane %v1031_v61, 1  ;;  %v2427_v61 = vrot.slane %v2421_v60, 1 }
 0x1a0   : > { %4795 = vst [vmem:[#allocation42_spill] sm:$0xff] %v3929_v3  ;;  %v1054_v3 = vrot.slane %v3924_v16, 2  ;;  %v1331_v16 = vstv %s3916_s14  ;;  %s4113_s14 = sld [smem:[#allocation4 + $0x54]] }
 0x1a1   : > { %2409 = vrot.lane.b32.xlu1 %v2405_v37, %s4768_s2  ;;  %v3950_v14 = vpop.permute.xlu0 %950  ;;  %v2256_v37 = vrot.slane %v2250_v45, 1  ;;  %v1333_v35 = vmul.f32 %v1331_v16, %v3297_v41  ;;  %v1334_v31 = vmul.f32 %v1331_v16, %v3301_v43  ;;  %v1332_v60 = vmul.f32 %v1331_v16, %v3299_v42 }
 0x1a2   : > { %4797 = vst [vmem:[#allocation43_spill] sm:$0xff] %v3950_v14  ;;  %v1042_v14 = vadd.f32 %v1037_v25, %v1022_v24  ;;  %v1055_v26 = vsel %vm320_vm8, %v1053_v28, %v1054_v3  ;;  %v2420_v25 = vmul.f32 %v2419_v33, %v3761_v48  ;;  %v513_v24 = vadd.f32 %v3693_v53, %v3552_v21 }
 0x1a3   : > { %v3952_v8 = vpop.permute.xlu1 %926  ;;  %1878 = vrot.lane.b32.xlu0 %v1875_v1, %s4768_s2  ;;  %v2259_v13 = vsel %vm301_vm7, %v2256_v37, %v2258_v46  ;;  %v1873_v28 = vsel %vm301_vm7, %v1871_v49, %v1872_v22  ;;  %v683_v1 = vadd.f32 %v3708_v39, %v3570_v4  ;;  %v1199_v46 = vstv %s3934_s7  ;;  %s4132_s7 = sld [smem:[#allocation4 + $0x5b]] }
 0x1a4   : > { %4798 = vst [vmem:[#allocation44_spill] sm:$0xff] %v3952_v8  ;;  %v535_v33 = vadd.f32 %v3787_v27, %v513_v24  ;;  %v4800_v8 = vrot.slane %v3899_v52, 1  ;;  %v2257_v53 = vsel %vm301_vm7, %v2255_v51, %v2256_v37  ;;  %v1339_v22 = vrot.slane %v1333_v35, 2 }
 0x1a5   : > { %1705 = vrot.lane.b32.xlu1 %v1702_v34, %s4768_s2  ;;  %v3966_v15 = vpop.permute.xlu0 %987  ;;  %v1056_v34 = vrot.slane %v1049_v20, 2  ;;  %v705_v49 = vadd.f32 %v3823_v63, %v683_v1  ;;  %v1341_v38 = vrot.slane %v1334_v31, 2  ;;  %v2426_v20 = vrot.slane %v2420_v25, 1 }
 0x1a6   : > { %4799 = vst [vmem:[#allocation45_spill] sm:$0xff] %v3966_v15  ;;  %v1715_v15 = vstv %s3945_s9  ;;  %v1039_v21 = vsel %vm301_vm7, %v4800_v8, %v1038_v23  ;;  %v557_v27 = vadd.f32 %v3799_v50, %v535_v33  ;;  %v2430_v52 = vsel %vm301_vm7, %v2427_v61, %v2429_v2  ;;  %s4142_s9 = sld [smem:[#allocation4 + $0x64]] }
 0x1a7   : > { %v3968_v45 = vpop.permute.xlu1 %928  ;;  %2262 = vrot.lane.b32.xlu0 %v2259_v13, %s4768_s2  ;;  %v1717_v8 = vmul.f32 %v1715_v15, %v3337_v57  ;;  %v1718_v37 = vmul.f32 %v1715_v15, %v3339_v58  ;;  %v727_v16 = vadd.f32 %v3833_v17, %v705_v49  ;;  %v4001_v63 = vadd.f32 %v1055_v26, %v1042_v14 }
 0x1a8   : > { %v4006_v23 = vmul.f32 %v1199_v46, %v3299_v42  ;;  %v1043_v50 = vadd.f32 %v1039_v21, %v1023_v44  ;;  %v1057_v51 = vsel %vm320_vm8, %v1054_v3, %v1056_v34  ;;  %v4012_v13 = vstv %s3964_s11  ;;  %s4149_s11 = sld [smem:[#allocation4 + $0x5d]] }
 0x1a9   : > { %1876 = vrot.lane.b32.xlu1 %v1873_v28, %s4768_s2  ;;  %v3992_v4 = vpop.permute.xlu0 %1009  ;;  %v1338_v35 = vrot.slane %v1332_v60, 2  ;;  %v1342_v14 = vsel %vm320_vm8, %v1339_v22, %v1341_v38  ;;  %v2428_v17 = vsel %vm301_vm7, %v2426_v20, %v2427_v61  ;;  %v1716_v26 = vmul.f32 %v1715_v15, %v3335_v56 }
 0x1aa   : > { %4801 = vst [vmem:[#allocation46_spill] sm:$0xff] %v3992_v4  ;;  %v1886_v24 = vstv %s3974_s16  ;;  %v512_v28 = vadd.f32 %v3686_v59, %v3523_v54  ;;  %v572_v44 = vadd.f32 %v3706_v36, %v557_v27  ;;  %v1723_v2 = vrot.slane %v1717_v8, 2  ;;  %s4153_s16 = sld [smem:[#allocation4 + $0x52]]  ;;  %v4817_v4 = vld [vmem:[#allocation23_spill] sm:$0xff] }
 0x1ab   : > { %v3994_v39 = vpop.permute.xlu1 %948  ;;  %2433 = vrot.lane.b32.xlu0 %v2430_v52, %s4768_s2  ;;  %v1725_v3 = vrot.slane %v1718_v37, 2  ;;  %v684_v1 = vadd.f32 %v3717_v6, %v3582_v29  ;;  %v742_v34 = vadd.f32 %v3719_v7, %v727_v16  ;;  %v1201_v33 = vmul.f32 %v1199_v46, %v3297_v41 }
 0x1ac   : > { %4802 = vst [vmem:[#allocation47_spill] sm:$0xff] %v3994_v39  ;;  %v534_v15 = vadd.f32 %v3780_v9, %v512_v28  ;;  %v1061_v54 = vadd.f32 %v1057_v51, %v1043_v50  ;;  %v4034_v59 = vmul.f32 %v4012_v13, %v3297_v41  ;;  %v1340_v29 = vsel %vm320_vm8, %v1338_v35, %v1339_v22 }
 0x1ad   : > { %2260 = vrot.lane.b32.xlu1 %v2257_v53, %s4768_s2  ;;  %v1094_v31 = vpop.permute.xlu0 %1093  ;;  %v706_v36 = vadd.f32 %v3831_v40, %v684_v1  ;;  %v1722_v61 = vrot.slane %v1716_v26, 2  ;;  %v1887_v21 = vmul.f32 %v1886_v24, %v3335_v56  ;;  %v1202_v53 = vmul.f32 %v1199_v46, %v3301_v43 }
 0x1ae   : > { %v556_v9 = vadd.f32 %v3789_v30, %v534_v15  ;;  %v594_v60 = vadd.f32 %v3809_v19, %v572_v44  ;;  %v1726_v49 = vsel %vm320_vm8, %v1723_v2, %v1725_v3  ;;  %v4046_v38 = vmul.f32 %v1886_v24, %v3337_v57 }
 0x1af   : > { %v4014_v25 = vpop.permute.xlu1 %985  ;;  %1345 = vrot.lane.b32.xlu0 %v1342_v14, %s4768_s2  ;;  %v728_v22 = vadd.f32 %v3844_v55, %v706_v36  ;;  %v764_v40 = vadd.f32 %v3846_v10, %v742_v34  ;;  %v1076_v20 = vadd.f32 %v3906_v47, %v1061_v54  ;;  %v1192_v27 = vstv %s4003_s13  ;;  %v4805_v34 = vld [vmem:[#allocation31_spill] sm:$0xff]  ;;  %s4165_s13 = sld [smem:[#allocation4 + $0x4b]] }
 0x1b0   : > { %4803 = vst [vmem:[#allocation48_spill] sm:$0xff] %v4014_v25  ;;  %v1206_v30 = vrot.slane %v4006_v23, 1  ;;  %v1207_v46 = vrot.slane %v1201_v33, 1  ;;  %v1220_v19 = vmul.f32 %v4012_v13, %v3301_v43  ;;  %v1889_v52 = vmul.f32 %v1886_v24, %v3339_v58  ;;  %v4807_v36 = vld [vmem:[#allocation39_spill] sm:$0xff] }
 0x1b1   : > { %2431 = vrot.lane.b32.xlu1 %v2428_v17, %s4768_s2  ;;  %v1116_v6 = vpop.permute.xlu0 %1115  ;;  %v616_v55 = vadd.f32 %v3821_v62, %v594_v60  ;;  %v786_v10 = vadd.f32 %v3857_v11, %v764_v40  ;;  %v1098_v47 = vadd.f32 %v1094_v31, %v1076_v20  ;;  %v1209_v16 = vrot.slane %v1202_v53, 1  ;;  %v4810_v40 = vld [vmem:[#allocation34_spill] sm:$0xff] }
 0x1b2   : > { %v571_v50 = vadd.f32 %v3695_v18, %v556_v9  ;;  %v1724_v23 = vsel %vm320_vm8, %v1722_v61, %v1723_v2  ;;  %v1893_v51 = vrot.slane %v1887_v21, 2  ;;  %v1894_v35 = vrot.slane %v4046_v38, 2  ;;  %v4808_v61 = vld [vmem:[#allocation41_spill] sm:$0xff]  ;;  %v4809_v38 = vld [vmem:[#allocation32_spill] sm:$0xff] }
 0x1b3   : > { %v4038_v7 = vpop.permute.xlu1 %1007  ;;  %1729 = vrot.lane.b32.xlu0 %v1726_v49, %s4768_s2  ;;  %v743_v14 = vadd.f32 %v3728_v12, %v728_v22  ;;  %v1193_v17 = vmul.f32 %v1192_v27, %v3299_v42  ;;  %v1120_v26 = vadd.f32 %v1116_v6, %v1098_v47  ;;  %v2270_v62 = vstv %s4029_s21  ;;  %s4174_s21 = sld [smem:[#allocation4 + $0x5c]] }
 0x1b4   : > { %4804 = vst [vmem:[#allocation49_spill] sm:$0xff] %v4038_v7  ;;  %v1208_v18 = vsel %vm301_vm7, %v1206_v30, %v1207_v46  ;;  %v1218_v11 = vmul.f32 %v4012_v13, %v3299_v42  ;;  %v1225_v31 = vrot.slane %v4034_v59, 2  ;;  %v1194_v12 = vmul.f32 %v1192_v27, %v3297_v41  ;;  %v4806_v59 = vld [vmem:[#allocation33_spill] sm:$0xff] }
 0x1b5   : > { %1343 = vrot.lane.b32.xlu1 %v1340_v29, %s4768_s2  ;;  %v1153_v8 = vpop.permute.xlu0 %1152  ;;  %v796_v24 = vmul.f32 %v3273_v32, %v786_v10  ;;  %v1210_v2 = vsel %vm301_vm7, %v1207_v46, %v1209_v16  ;;  %v1227_v3 = vrot.slane %v1220_v19, 2  ;;  %v1896_v1 = vrot.slane %v1889_v52, 2 }
 0x1b6   : > { %v593_v33 = vadd.f32 %v4805_v34, %v571_v50  ;;  %v1895_v15 = vsel %vm320_vm8, %v1893_v51, %v1894_v35  ;;  %v2271_v54 = vmul.f32 %v2270_v62, %v3761_v48  ;;  %v2272_v13 = vmul.f32 %v2270_v62, %v3748_v5 }
 0x1b7   : > { %v1092_v37 = vpop.permute.xlu1 %1091  ;;  %621 = vrot.lane.b32.xlu0 %v616_v55, %s3072_s18  ;;  %v765_v29 = vadd.f32 %v4806_v59, %v743_v14  ;;  %v1075_v6 = vadd.f32 %v4807_v36, %v4001_v63  ;;  %v1135_v21 = vadd.f32 %v4808_v61, %v1120_v26  ;;  %v1224_v53 = vrot.slane %v1218_v11, 2  ;;  %v4812_v61 = vld [vmem:[#allocation42_spill] sm:$0xff] }
 0x1b8   : > { %v1214_v9 = vadd.f32 %v1210_v2, %v1194_v12  ;;  %v2273_v60 = vmul.f32 %v2270_v62, %v3774_v0  ;;  %v2441_v49 = vstv %s4058_s12  ;;  %v615_v22 = vadd.f32 %v4809_v38, %v593_v33  ;;  %s4196_s12 = sld [smem:[#allocation4 + $0x66]] }
 0x1b9   : > { %1727 = vrot.lane.b32.xlu1 %v1724_v23, %s4768_s2  ;;  %v1175_v28 = vpop.permute.xlu0 %1174  ;;  %v787_v20 = vadd.f32 %v4810_v40, %v765_v29  ;;  %v1097_v63 = vadd.f32 %v1092_v37, %v1075_v6  ;;  %v1228_v27 = vsel %vm320_vm8, %v1225_v31, %v1227_v3  ;;  %v1213_v19 = vadd.f32 %v1208_v18, %v1193_v17 }
 0x1ba   : > { %v1897_v52 = vsel %vm320_vm8, %v1894_v35, %v1896_v1  ;;  %v2277_v55 = vrot.slane %v2271_v54, 2  ;;  %v2278_v10 = vrot.slane %v2272_v13, 2  ;;  %v1157_v47 = vadd.f32 %v1153_v8, %v1135_v21 }
 0x1bb   : > { %v1114_v44 = vpop.permute.xlu1 %1113  ;;  %800 = vrot.lane.b32.xlu0 %v796_v24, %s3073_s20  ;;  %v4104_v37 = vmul.f32 %v2441_v49, %v3748_v5  ;;  %v4109_v50 = vstv %s4070_s8  ;;  %v1226_v23 = vsel %vm320_vm8, %v1224_v53, %v1225_v31  ;;  %v1232_v51 = vadd.f32 %v1228_v27, %v1214_v9  ;;  %s4206_s8 = sld [smem:[#allocation4 + $0x65]] }
 0x1bc   : > { %v1119_v16 = vadd.f32 %v1114_v44, %v1097_v63  ;;  %v2280_v35 = vrot.slane %v2273_v60, 2  ;;  %v2444_v14 = vmul.f32 %v2441_v49, %v3774_v0  ;;  %v797_v8 = vmul.f32 %v3273_v32, %v787_v20  ;;  %v4811_v44 = vld [vmem:[#allocation40_spill] sm:$0xff] }
 0x1bd   : > { %1898 = vrot.lane.b32.xlu1 %v1895_v15, %s4768_s2  ;;  %v1243_v30 = vpop.permute.xlu0 %1242  ;;  %v1179_v17 = vadd.f32 %v1175_v28, %v1157_v47  ;;  %v4118_v11 = vmul.f32 %v4109_v50, %v3337_v57  ;;  %v1757_v31 = vmul.f32 %v4109_v50, %v3339_v58  ;;  %v4123_v12 = vstv %s4083_s19  ;;  %s4232_s19 = sld [smem:[#allocation4 + $0x53]] }
 0x1be   : > { %v1247_v18 = vadd.f32 %v1243_v30, %v1232_v51  ;;  %v1231_v24 = vadd.f32 %v1226_v23, %v1213_v19  ;;  %v1134_v2 = vadd.f32 %v4811_v44, %v1119_v16  ;;  %v2279_v28 = vsel %vm320_vm8, %v2277_v55, %v2278_v10 }
 0x1bf   : > { %v1151_v46 = vpop.permute.xlu1 %1150  ;;  %1900 = vrot.lane.b32.xlu0 %v1897_v52, %s4768_s2  ;;  %v2449_v3 = vrot.slane %v4104_v37, 2  ;;  %v2281_v34 = vsel %vm320_vm8, %v2278_v10, %v2280_v35  ;;  %v2451_v33 = vrot.slane %v2444_v14, 2  ;;  %v2442_v15 = vmul.f32 %v2441_v49, %v3761_v48 }
 0x1c0   : > { %v1747_v59 = vstv %s4093_s24  ;;  %v4137_v29 = vmul.f32 %v4123_v12, %v3337_v57  ;;  %v1775_v36 = vmul.f32 %v4123_v12, %v3339_v58  ;;  %v1469_v6 = vstv %s4098_s22  ;;  %s4283_s24 = sld [smem:[#allocation4 + $0x3c]] }
 0x1c1   : > { %619 = vrot.lane.b32.xlu1 %v615_v22, %s3072_s18  ;;  %v1265_v26 = vpop.permute.xlu0 %1264  ;;  %v1246_v21 = vadd.f32 %v4812_v61, %v1231_v24  ;;  %v1762_v9 = vrot.slane %v4118_v11, 1  ;;  %v1764_v60 = vrot.slane %v1757_v31, 1  ;;  %v1156_v49 = vadd.f32 %v1151_v46, %v1134_v2  ;;  %s4292_s22 = sld [smem:[#allocation4 + $0x45]] }
 0x1c2   : > { %v1269_v1 = vadd.f32 %v1265_v26, %v1247_v18  ;;  %v1454_v38 = vstv %s4106_s30  ;;  %v2452_v40 = vsel %vm320_vm8, %v2449_v3, %v2451_v33  ;;  %v2448_v20 = vrot.slane %v2442_v15, 2  ;;  %s4298_s30 = sld [smem:[#allocation4 + $0x57]] }
 0x1c3   : > { %v1173_v62 = vpop.permute.xlu1 %1172  ;;  %1184 = vrot.lane.b32.xlu0 %v1179_v17, %s3072_s18  ;;  %v2009_v63 = vstv %s4113_s14  ;;  %v1749_v46 = vmul.f32 %v1747_v59, %v3337_v57  ;;  %v1780_v52 = vrot.slane %v4137_v29, 2  ;;  %v4160_v55 = vmul.f32 %v1469_v6, %v3337_v57  ;;  %s4309_s14 = sld [smem:[#allocation4 + $0x60]] }
 0x1c4   : > { %v1178_v27 = vadd.f32 %v1173_v62, %v1156_v49  ;;  %v1765_v16 = vsel %vm301_vm7, %v1762_v9, %v1764_v60  ;;  %v1782_v37 = vrot.slane %v1775_v36, 2  ;;  %v1472_v23 = vmul.f32 %v1469_v6, %v3339_v58 }
 0x1c5   : > { %802 = vrot.lane.b32.xlu1 %v797_v8, %s3073_s20  ;;  %v1287_v54 = vpop.permute.xlu0 %1286  ;;  %v1456_v51 = vmul.f32 %v1454_v38, %v3337_v57  ;;  %v4172_v35 = vstv %s4132_s7  ;;  %v2450_v17 = vsel %vm320_vm8, %v2448_v20, %v2449_v3  ;;  %v2011_v26 = vmul.f32 %v2009_v63, %v3748_v5  ;;  %s4336_s7 = sld [smem:[#allocation4 + $0x4e]] }
 0x1c6   : > { %v1291_v53 = vadd.f32 %v1287_v54, %v1269_v1  ;;  %v1769_v62 = vadd.f32 %v1765_v16, %v1749_v46  ;;  %v4179_v18 = vstv %s4142_s9  ;;  %v1783_v44 = vsel %vm320_vm8, %v1780_v52, %v1782_v37  ;;  %s4364_s9 = sld [smem:[#allocation4 + $0x69]] }
 0x1c7   : > { %v1263_v13 = vpop.permute.xlu1 %1262  ;;  %2284 = vrot.lane.b32.xlu0 %v2281_v34, %s4768_s2  ;;  %v1477_v2 = vrot.slane %v4160_v55, 1  ;;  %v2141_v3 = vmul.f32 %v4172_v35, %v3774_v0  ;;  %v4193_v1 = vmul.f32 %v4172_v35, %v3748_v5  ;;  %v2024_v34 = vstv %s4149_s11  ;;  %s2704_s11 = sld [smem:[#allocation4 + $0x49]] }
 0x1c8   : > { %v1268_v22 = vadd.f32 %v1263_v13, %v1246_v21  ;;  %v1455_v33 = vmul.f32 %v1454_v38, %v3335_v56  ;;  %v2131_v15 = vstv %s4153_s16  ;;  %v2159_v54 = vmul.f32 %v4179_v18, %v3774_v0  ;;  %s2702_s16 = sld [smem:[#allocation4 + $0x37]] }
 0x1c9   : > { %2282 = vrot.lane.b32.xlu1 %v2279_v28, %s4768_s2  ;;  %v1302_v30 = vpop.permute.xlu0 %1301  ;;  %v1479_v28 = vrot.slane %v1472_v23, 1  ;;  %v4204_v13 = vmul.f32 %v4179_v18, %v3748_v5  ;;  %v4210_v21 = vadd.f32 %v1783_v44, %v1769_v62  ;;  %v4215_v60 = vmul.f32 %v4109_v50, %v3335_v56 }
 0x1ca   : > { %v1306_v10 = vadd.f32 %v1302_v30, %v1291_v53  ;;  %v2010_v53 = vmul.f32 %v2009_v63, %v3761_v48  ;;  %v1470_v49 = vmul.f32 %v1469_v6, %v3335_v56  ;;  %v1491_v20 = vstv %s4165_s13 }
 0x1cb   : > { %v1285_v19 = vpop.permute.xlu1 %1284  ;;  %2455 = vrot.lane.b32.xlu0 %v2452_v40, %s4768_s2  ;;  %v2027_v40 = vmul.f32 %v2024_v34, %v3774_v0  ;;  %v1480_v63 = vsel %vm301_vm7, %v1477_v2, %v1479_v28  ;;  %v2148_v50 = vrot.slane %v2141_v3, 1  ;;  %v2146_v6 = vrot.slane %v4193_v1, 1 }
 0x1cc   : > { %v1290_v47 = vadd.f32 %v1285_v19, %v1268_v22  ;;  %v4221_v22 = vmul.f32 %v2024_v34, %v3748_v5  ;;  %v2166_v30 = vrot.slane %v2159_v54, 2  ;;  %v2164_v19 = vrot.slane %v4204_v13, 2 }
 0x1cd   : > { %1182 = vrot.lane.b32.xlu1 %v1178_v27, %s3072_s18  ;;  %v1324_v14 = vpop.permute.xlu0 %1323  ;;  %v2133_v27 = vmul.f32 %v2131_v15, %v3748_v5  ;;  %v4237_v46 = vmul.f32 %v4123_v12, %v3335_v56  ;;  %v2309_v55 = vstv %s4174_s21  ;;  %v1476_v16 = vrot.slane %v1470_v49, 1  ;;  %s2661_s21 = sld [smem:[#allocation4 + $0x2d]] }
 0x1ce   : > { %v4181_v31 = vadd.f32 %v1324_v14, %v1306_v10  ;;  %v4245_v37 = vmul.f32 %v1491_v20, %v3337_v57  ;;  %v1494_v23 = vmul.f32 %v1491_v20, %v3339_v58  ;;  %v1748_v14 = vmul.f32 %v1747_v59, %v3335_v56 }
 0x1cf   : > { %v1300_v8 = vpop.permute.xlu1 %1299  ;;  %1461 = vrot.lane.b32.xlu0 %v1456_v51, %s4769_s3  ;;  %v2025_v51 = vmul.f32 %v2024_v34, %v3761_v48  ;;  %v1761_v12 = vrot.slane %v4215_v60, 1  ;;  %v4260_v62 = vmul.f32 %v2309_v55, %v3748_v5  ;;  %v2046_v44 = vstv %s4196_s12  ;;  %s2659_s12 = sld [smem:[#allocation4 + $0x1b]] }
 0x1d0   : > { %v1305_v24 = vadd.f32 %v1300_v8, %v1290_v47  ;;  %v2032_v8 = vrot.slane %v4221_v22, 1  ;;  %v2167_v59 = vsel %vm320_vm8, %v2164_v19, %v2166_v30  ;;  %v1779_v28 = vrot.slane %v4237_v46, 2 }
 0x1d1   : > { %2453 = vrot.lane.b32.xlu1 %v2450_v17, %s4768_s2  ;;  %v4208_v36 = vpop.permute.xlu0 %1626  ;;  %v2034_v17 = vrot.slane %v2027_v40, 1  ;;  %v2327_v3 = vstv %s4206_s8  ;;  %v2139_v34 = vmul.f32 %v4172_v35, %v3761_v48  ;;  %v1501_v60 = vrot.slane %v1494_v23, 2  ;;  %s2694_s8 = sld [smem:[#allocation4 + $0x3f]] }
 0x1d2   : > { %v2031_v49 = vrot.slane %v2025_v51, 1  ;;  %v4279_v40 = vmul.f32 %v2046_v44, %v3748_v5  ;;  %v2302_v35 = vstv %s4232_s19  ;;  %v4290_v46 = vmul.f32 %v2327_v3, %v3748_v5  ;;  %s2695_s19 = sld [smem:[#allocation4 + $0x48]] }
 0x1d3   : > { %v1322_v61 = vpop.permute.xlu1 %1321  ;;  %2016 = vrot.lane.b32.xlu0 %v2011_v26, %s4769_s3  ;;  %v2149_v26 = vsel %vm301_vm7, %v2146_v6, %v2148_v50  ;;  %v2035_v22 = vsel %vm301_vm7, %v2032_v8, %v2034_v17  ;;  %v1492_v50 = vmul.f32 %v1491_v20, %v3335_v56  ;;  %v2157_v20 = vmul.f32 %v4179_v18, %v3761_v48 }
 0x1d4   : > { %v4218_v38 = vadd.f32 %v1322_v61, %v1305_v24  ;;  %v2312_v24 = vmul.f32 %v2309_v55, %v3774_v0  ;;  %v1478_v61 = vsel %vm301_vm7, %v1476_v16, %v1477_v2  ;;  %v2317_v2 = vrot.slane %v4260_v62, 1 }
 0x1d5   : > { %1459 = vrot.lane.b32.xlu1 %v1455_v33, %s4769_s3  ;;  %v4240_v10 = vpop.permute.xlu0 %1797  ;;  %v2330_v16 = vmul.f32 %v2327_v3, %v3774_v0  ;;  %v2310_v23 = vmul.f32 %v2309_v55, %v3761_v48  ;;  %v2153_v51 = vadd.f32 %v2149_v26, %v2133_v27  ;;  %v1763_v17 = vsel %vm301_vm7, %v1761_v12, %v1762_v9  ;;  %v4312_v27 = vld [vmem:[#allocation2] sm:$0xff]  ;;  %v4315_v26 = vld [vmem:[#allocation2 + $0x8] sm:$0xff] }
 0x1d6   : > { %v2319_v30 = vrot.slane %v2312_v24, 1  ;;  %v2033_v24 = vsel %vm301_vm7, %v2031_v49, %v2032_v8  ;;  %v2054_v48 = vrot.slane %v4279_v40, 2  ;;  %v1498_v55 = vrot.slane %v1492_v50, 2 }
 0x1d7   : > { %v4242_v47 = vpop.permute.xlu1 %1624  ;;  %1483 = vrot.lane.b32.xlu0 %v1480_v63, %s4769_s3  ;;  %v2049_v63 = vmul.f32 %v2046_v44, %v3774_v0  ;;  %v2047_v11 = vmul.f32 %v4312_v27, %v2046_v44  ;;  %v2304_v9 = vmul.f32 %v4315_v26, %v2302_v35  ;;  %v2132_v8 = vmul.f32 %v4312_v27, %v2131_v15 }
 0x1d8   : > { %v2320_v12 = vsel %vm301_vm7, %v2317_v2, %v2319_v30  ;;  %v2316_v49 = vrot.slane %v2310_v23, 1  ;;  %v1768_v40 = vadd.f32 %v1763_v17, %v1748_v14  ;;  %v2303_v50 = vmul.f32 %v4312_v27, %v2302_v35 }
 0x1d9   : > { %2014 = vrot.lane.b32.xlu1 %v2010_v53, %s4769_s3  ;;  %v4271_v33 = vpop.permute.xlu0 %2181  ;;  %v1499_v53 = vrot.slane %v4245_v37, 2  ;;  %v2145_v37 = vrot.slane %v2139_v34, 1  ;;  %v2056_v18 = vrot.slane %v2049_v63, 2  ;;  %v2335_v34 = vrot.slane %v4290_v46, 2 }
 0x1da   : > { %v1781_v63 = vsel %vm320_vm8, %v1779_v28, %v1780_v52  ;;  %v1513_v46 = vstv %s4283_s24  ;;  %v2324_v14 = vadd.f32 %v2320_v12, %v2304_v9  ;;  %v2328_v52 = vmul.f32 %v4312_v27, %v2327_v3  ;;  %s2728_s24 = sld [smem:[#allocation4 + $0x5a]] }
 0x1db   : > { %v4273_v54 = vpop.permute.xlu1 %1795  ;;  %2038 = vrot.lane.b32.xlu0 %v2035_v22, %s4769_s3  ;;  %v1502_v0 = vsel %vm320_vm8, %v1499_v53, %v1501_v60  ;;  %v2147_v44 = vsel %vm301_vm7, %v2145_v37, %v2146_v6  ;;  %v2163_v60 = vrot.slane %v2157_v20, 2  ;;  %v2171_v22 = vadd.f32 %v2167_v59, %v2153_v51 }
 0x1dc   : > { %v2057_v1 = vsel %vm320_vm8, %v2054_v48, %v2056_v18  ;;  %v1500_v6 = vsel %vm320_vm8, %v1498_v55, %v1499_v53  ;;  %v2053_v59 = vrot.slane %v2047_v11, 2  ;;  %v2152_v29 = vadd.f32 %v2147_v44, %v2132_v8 }
 0x1dd   : > { %1481 = vrot.lane.b32.xlu1 %v1478_v61, %s4769_s3  ;;  %v4303_v5 = vpop.permute.xlu0 %2352  ;;  %v2337_v61 = vrot.slane %v2330_v16, 2  ;;  %v1528_v28 = vstv %s4292_s22  ;;  %v1802_v35 = vadd.f32 %v4240_v10, %v4210_v21  ;;  %v2165_v53 = vsel %vm320_vm8, %v2163_v60, %v2164_v19  ;;  %v4371_v60 = vld [vmem:[#allocation2 + $0x10] sm:$0x3]  ;;  %s4570_s22 = sld [smem:[#allocation4 + $0x36]] }
 0x1de   : > { %v2318_v37 = vsel %vm301_vm7, %v2316_v49, %v2317_v2  ;;  %v1786_v20 = vadd.f32 %v1781_v63, %v1768_v40  ;;  %v1515_v3 = vmul.f32 %v1513_v46, %v3337_v57  ;;  %v2068_v17 = vstv %s4298_s30  ;;  %s2729_s30 = sld [smem:[#allocation4 + $0x63]] }
 0x1df   : > { %v4305_v62 = vpop.permute.xlu1 %2179  ;;  %1505 = vrot.lane.b32.xlu0 %v1502_v0, %s4769_s3  ;;  %v2338_v16 = vsel %vm320_vm8, %v2335_v34, %v2337_v61  ;;  %v2083_v0 = vstv %s4309_s14  ;;  %v2055_v21 = vsel %vm320_vm8, %v2053_v59, %v2054_v48  ;;  %v1530_v10 = vmul.f32 %v1528_v28, %v3337_v57  ;;  %s4580_s14 = sld [smem:[#allocation4 + $0x51]] }
 0x1e0   : > { %v1531_v13 = vmul.f32 %v1528_v28, %v3339_v58  ;;  %v2342_v18 = vadd.f32 %v2338_v16, %v2324_v14  ;;  %v2170_v19 = vadd.f32 %v2165_v53, %v2152_v29  ;;  %v2323_v2 = vadd.f32 %v2318_v37, %v2303_v50 }
 0x1e1   : > { %2036 = vrot.lane.b32.xlu1 %v2033_v24, %s4769_s3  ;;  %v4331_v15 = vpop.permute.xlu0 %1648  ;;  %v2334_v55 = vrot.slane %v2328_v52, 2  ;;  %v2186_v11 = vadd.f32 %v4271_v33, %v2171_v22  ;;  %v1801_v9 = vadd.f32 %v4273_v54, %v1786_v20  ;;  %v2070_v48 = vmul.f32 %v4315_v26, %v2068_v17 }
 0x1e2   : > { %v2085_v12 = vmul.f32 %v4315_v26, %v2083_v0  ;;  %v1514_v44 = vmul.f32 %v1513_v46, %v3335_v56  ;;  %v2086_v49 = vmul.f32 %v4371_v60, %v2083_v0  ;;  %v1529_v40 = vmul.f32 %v1528_v28, %v3335_v56 }
 0x1e3   : > { %v4334_v30 = vpop.permute.xlu1 %2350  ;;  %2060 = vrot.lane.b32.xlu0 %v2057_v1, %s4769_s3  ;;  %v1550_v63 = vstv %s4336_s7  ;;  %v1536_v22 = vrot.slane %v1530_v10, 1  ;;  %v1538_v54 = vrot.slane %v1531_v13, 1  ;;  %v2336_v1 = vsel %vm320_vm8, %v2334_v55, %v2335_v34  ;;  %s4638_s7 = sld [smem:[#allocation5 + $0x1]] }
 0x1e4   : > { %v2357_v46 = vadd.f32 %v4303_v5, %v2342_v18  ;;  %v2185_v59 = vadd.f32 %v4305_v62, %v2170_v19  ;;  %v2091_v14 = vrot.slane %v2085_v12, 1  ;;  %v2084_v29 = vmul.f32 %v4312_v27, %v2083_v0 }
 0x1e5   : > { %1503 = vrot.lane.b32.xlu1 %v1500_v6, %s4769_s3  ;;  %v1820_v23 = vpop.permute.xlu0 %1819  ;;  %v2069_v6 = vmul.f32 %v4312_v27, %v2068_v17  ;;  %v1535_v16 = vrot.slane %v1529_v40, 1  ;;  %v1552_v34 = vmul.f32 %v1550_v63, %v3337_v57  ;;  %v1553_v53 = vmul.f32 %v1550_v63, %v3339_v58 }
 0x1e6   : > { %v4357_v24 = vadd.f32 %v1820_v23, %v1802_v35  ;;  %v2093_v35 = vrot.slane %v2086_v49, 1  ;;  %v2341_v37 = vadd.f32 %v2336_v1, %v2323_v2  ;;  %v1539_v5 = vsel %vm301_vm7, %v1536_v22, %v1538_v54 }
 0x1e7   : > { %v4352_v51 = vpop.permute.xlu1 %1646  ;;  %1520 = vrot.lane.b32.xlu0 %v1515_v3, %s4768_s2  ;;  %v2105_v62 = vstv %s4364_s9  ;;  %v2090_v17 = vrot.slane %v2084_v29, 1  ;;  %v1537_v13 = vsel %vm301_vm7, %v1535_v16, %v1536_v22  ;;  %v1558_v18 = vrot.slane %v1552_v34, 2  ;;  %s4650_s9 = sld [smem:[#allocation5 + $0x2]] }
 0x1e8   : > { %v2356_v3 = vadd.f32 %v4334_v30, %v2341_v37  ;;  %v2094_v10 = vsel %vm301_vm7, %v2091_v14, %v2093_v35  ;;  %v1560_v19 = vrot.slane %v1553_v53, 2  ;;  %v2107_v55 = vmul.f32 %v4315_v26, %v2105_v62 }
 0x1e9   : > { %2058 = vrot.lane.b32.xlu1 %v2055_v21, %s4769_s3  ;;  %v2204_v8 = vpop.permute.xlu0 %2203  ;;  %s2703_s3 = sld [smem:[#allocation4 + $0x40]] }
 0x1ea   : > { %v4376_v50 = vadd.f32 %v2204_v8, %v2186_v11  ;;  %v2108_v11 = vmul.f32 %v4371_v60, %v2105_v62  ;;  %v1561_v12 = vsel %vm320_vm8, %v1558_v18, %v1560_v19  ;;  %v2092_v8 = vsel %vm301_vm7, %v2090_v17, %v2091_v14 }
 0x1eb   : > { %v1818_v61 = vpop.permute.xlu1 %1817  ;;  %2075 = vrot.lane.b32.xlu0 %v2070_v48, %s4768_s2  ;;  %v2113_v49 = vrot.slane %v2107_v55, 2 }
 0x1ec   : > { %v1823_v33 = vadd.f32 %v1818_v61, %v1801_v9  ;;  %v1551_v9 = vmul.f32 %v1550_v63, %v3335_v56  ;;  %v2106_v61 = vmul.f32 %v4312_v27, %v2105_v62  ;;  %v2115_v40 = vrot.slane %v2108_v11, 2 }
 0x1ed   : > { %1518 = vrot.lane.b32.xlu1 %v1514_v44, %s4768_s2  ;;  %v2375_v52 = vpop.permute.xlu0 %2374 }
 0x1ee   : > { %v2379_v20 = vadd.f32 %v2375_v52, %v2357_v46  ;;  %v1557_v22 = vrot.slane %v1551_v9, 2 }
 0x1ef   : > { %v2202_v28 = vpop.permute.xlu1 %2201  ;;  %1542 = vrot.lane.b32.xlu0 %v1539_v5, %s4768_s2  ;;  %v1583_v34 = vstv %s2703_s3  ;;  %v1601_v5 = vstv %s2704_s11  ;;  %s4659_s3 = sld [smem:[#allocation5 + $0x3]]  ;;  %s2765_s11 = sshll.u32 %s3049_s27, 10 }
 0x1f0   : > { %v4387_v23 = vadd.f32 %v2202_v28, %v2185_v59  ;;  %v1559_v46 = vsel %vm320_vm8, %v1557_v22, %v1558_v18  ;;  %v2112_v59 = vrot.slane %v2106_v61, 2  ;;  %v1585_v62 = vmul.f32 %v1583_v34, %v3337_v57  ;;  %s2495_s27 = scalar_lea.sflag [#allocation8], %s3228_s25 }
 0x1f1   : > { %2073 = vrot.lane.b32.xlu1 %v2069_v6, %s4768_s2  ;;  %v4394_v0 = vpop.permute.xlu0 %1670  ;;  %v2116_v6 = vsel %vm320_vm8, %v2113_v49, %v2115_v40  ;;  %v1603_v19 = vmul.f32 %v1601_v5, %v3337_v57  ;;  %v1584_v55 = vmul.f32 %v1583_v34, %v3335_v56  ;;  %v1602_v40 = vmul.f32 %v1601_v5, %v3335_v56 }
 0x1f2   : > { %v2114_v52 = vsel %vm320_vm8, %v2112_v59, %v2113_v49  ;;  %v1591_v18 = vrot.slane %v1585_v62, 1 }
 0x1f3   : > { %v2373_v21 = vpop.permute.xlu1 %2372  ;;  %2097 = vrot.lane.b32.xlu0 %v2094_v10, %s4768_s2  ;;  %v1604_v10 = vmul.f32 %v1601_v5, %v3339_v58  ;;  %v1609_v61 = vrot.slane %v1603_v19, 2  ;;  %v1590_v49 = vrot.slane %v1584_v55, 1 }
 0x1f4   : > { %v4398_v2 = vadd.f32 %v2373_v21, %v2356_v3  ;;  %v1576_v21 = vstv %s2702_s16 }
 0x1f5   : > { %1540 = vrot.lane.b32.xlu1 %v1537_v13, %s4768_s2  ;;  %v1842_v30 = vpop.permute.xlu0 %1841 }
 0x1f6   : > { %v4411_v44 = vadd.f32 %v1842_v30, %v4357_v24  ;;  %v1611_v30 = vrot.slane %v1604_v10, 2 }
 0x1f7   : > { %v4405_v48 = vpop.permute.xlu1 %1668  ;;  %1564 = vrot.lane.b32.xlu0 %v1561_v12, %s4768_s2  ;;  %v1578_v12 = vmul.f32 %v1576_v21, %v3337_v57 }
 0x1f8   : > { %v1612_v59 = vsel %vm320_vm8, %v1609_v61, %v1611_v30 }
 0x1f9   : > { %2095 = vrot.lane.b32.xlu1 %v2092_v8, %s4768_s2  ;;  %v4415_v63 = vpop.permute.xlu0 %2225 }
 0x1fb   : > { %v1840_v54 = vpop.permute.xlu1 %1839  ;;  %2119 = vrot.lane.b32.xlu0 %v2116_v6, %s4768_s2 }
 0x1fc   : > { %v4417_v1 = vadd.f32 %v1840_v54, %v1823_v33 }
 0x1fd   : > { %1562 = vrot.lane.b32.xlu1 %v1559_v46, %s4768_s2  ;;  %v2397_v24 = vpop.permute.xlu0 %2396  ;;  %v1577_v46 = vmul.f32 %v1576_v21, %v3335_v56 }
 0x1fe   : > { %v4425_v29 = vadd.f32 %v2397_v24, %v2379_v20  ;;  %v1586_v20 = vmul.f32 %v1583_v34, %v3339_v58  ;;  %v1592_v24 = vsel %vm301_vm7, %v1590_v49, %v1591_v18  ;;  %v4816_v49 = vld [vmem:[#allocation20_spill] sm:$0xff] }
 0x1ff   : > { %v4423_v14 = vpop.permute.xlu1 %2223  ;;  %v1597_v10 = vadd.f32 %v1592_v24, %v1577_v46 }
 0x200   : > { %v1593_v13 = vrot.slane %v1586_v20, 1 }
 0x201   : > { %2117 = vrot.lane.b32.xlu1 %v2114_v52, %s4768_s2  ;;  %v1686_v33 = vpop.permute.xlu0 %1685  ;;  %v1608_v52 = vrot.slane %v1602_v40, 2  ;;  %s808_s2 = sld [smem:[#allocation5]] }
 0x202   : > { %v1594_v8 = vsel %vm301_vm7, %v1591_v18, %v1593_v13  ;;  %v4815_v18 = vld [vmem:[#allocation18_spill] sm:$0xff] }
 0x203   : > { %v4429_v28 = vpop.permute.xlu1 %2394  ;;  %v1598_v6 = vadd.f32 %v1594_v8, %v1578_v12  ;;  %v1610_v13 = vsel %vm320_vm8, %v1608_v52, %v1609_v61  ;;  %v4813_v12 = vld [vmem:[#allocation17_spill] sm:$0xff]  ;;  %v4814_v8 = vld [vmem:[#allocation19_spill] sm:$0xff]  ;;  %v344_v40 = vadd.f32 %v4816_v49, %v4815_v18  ;;  %v4822_v18 = vld [vmem:[#allocation22_spill] sm:$0xff] }
 0x204   : > { %v343_v21 = vadd.f32 %v4814_v8, %v4813_v12  ;;  %v1615_v7 = vadd.f32 %v1610_v13, %v1597_v10  ;;  %v4819_v52 = vld [vmem:[#allocation25_spill] sm:$0xff] }
 0x205   : > { %v4431_v35 = vpop.permute.xlu0 %1856  ;;  %v1616_v62 = vadd.f32 %v1612_v59, %v1598_v6  ;;  %v4818_v59 = vld [vmem:[#allocation24_spill] sm:$0xff] }
 0x206   : > { %v365_v25 = vadd.f32 %v4817_v4, %v343_v21  ;;  %v1630_v6 = vadd.f32 %v4242_v47, %v1615_v7  ;;  %v366_v24 = vadd.f32 %v4818_v59, %v344_v40  ;;  %v4821_v7 = vld [vmem:[#allocation21_spill] sm:$0xff] }
 0x207   : > { %v1684_v16 = vpop.permute.xlu1 %1683  ;;  %v1631_v5 = vadd.f32 %v4208_v36, %v1616_v62 }
 0x208   : > { %v387_v62 = vadd.f32 %v4819_v52, %v365_v25  ;;  %v1652_v10 = vadd.f32 %v4352_v51, %v1630_v6  ;;  %v4823_v51 = vld [vmem:[#allocation27_spill] sm:$0xff]  ;;  %v4826_v52 = vld [vmem:[#allocation30_spill] sm:$0xff] }
 0x209   : > { %v4433_v53 = vpop.permute.xlu0 %2240  ;;  %v1653_v30 = vadd.f32 %v4331_v15, %v1631_v5  ;;  %v4820_v15 = vld [vmem:[#allocation26_spill] sm:$0xff] }
 0x20a   : > { %v388_v5 = vadd.f32 %v4820_v15, %v366_v24  ;;  %v1674_v12 = vadd.f32 %v4405_v48, %v1652_v10  ;;  %v402_v47 = vadd.f32 %v4821_v7, %v387_v62  ;;  %v4827_v10 = vld [vmem:[#allocation16_spill] sm:$0xff] }
 0x20b   : > { %v4435_v37 = vpop.permute.xlu1 %1854  ;;  %v1675_v61 = vadd.f32 %v4394_v0, %v1653_v30 }
 0x20c   : > { %v1689_v0 = vadd.f32 %v1684_v16, %v1674_v12  ;;  %v403_v49 = vadd.f32 %v4822_v18, %v388_v5 }
 0x20d   : > { %v4439_v3 = vpop.permute.xlu0 %2411  ;;  %v1690_v13 = vadd.f32 %v1686_v33, %v1675_v61  ;;  %v424_v33 = vadd.f32 %v4823_v51, %v402_v47  ;;  %v4824_v61 = vld [vmem:[#allocation28_spill] sm:$0xff] }
 0x20e   : > { %v425_v48 = vadd.f32 %v4824_v61, %v403_v49 }
 0x20f   : > { %v4441_v17 = vpop.permute.xlu1 %2238 }
 0x210   : > { %v447_v62 = vadd.f32 %v4826_v52, %v425_v48 }
 0x211   : > { %v1708_v11 = vpop.permute.xlu0 %1707 }
 0x212   : > { %v1712_v8 = vadd.f32 %v1708_v11, %v1690_v13  ;;  %v4825_v11 = vld [vmem:[#allocation29_spill] sm:$0xff]  ;;  %v453_v5 = vmul.f32 %v4827_v10, %v447_v62 }
 0x213   : > { %v4446_v9 = vpop.permute.xlu1 %2409  ;;  %v446_v59 = vadd.f32 %v4825_v11, %v424_v33 }
 0x215   : > { %v4451_v22 = vpop.permute.xlu0 %1878 }
 0x217   : > { %v1706_v54 = vpop.permute.xlu1 %1705 }
 0x218   : > { %v1711_v39 = vadd.f32 %v1706_v54, %v1689_v0  ;;  %v452_v54 = vmul.f32 %v4827_v10, %v446_v59 }
 0x219   : > { %v2263_v34 = vpop.permute.xlu0 %2262 }
 0x21b   : > { %v4456_v20 = vpop.permute.xlu1 %1876 }
 0x21d   : > { %v4460_v19 = vpop.permute.xlu0 %2433 }
 0x21f   : > { %v2261_v55 = vpop.permute.xlu1 %2260 }
 0x221   : > { %v1346_v46 = vpop.permute.xlu0 %1345 }
 0x223   : > { %v4470_v36 = vpop.permute.xlu1 %2431 }
 0x225   : > { %v1730_v4 = vpop.permute.xlu0 %1729 }
 0x226   : > { %v1734_v30 = vadd.f32 %v1730_v4, %v1712_v8  ;;  %v809_v8 = vstv %s808_s2  ;;  %v2229_v4 = vadd.f32 %v4423_v14, %v4387_v23  ;;  %v1860_v23 = vadd.f32 %v4435_v37, %v4417_v1 }
 0x227   : > { %v1344_v21 = vpop.permute.xlu1 %1343 }
 0x228   : > { %1739 = vrot.lane.b32.xlu0 %v1734_v30, %s3072_s18  ;;  %v2244_v49 = vadd.f32 %v4441_v17, %v2229_v4  ;;  %v1349_v14 = vadd.f32 %v1344_v21, %v4218_v38 }
 0x229   : > { %v622_v25 = vpop.permute.xlu0 %621 }
 0x22a   : > { %v626_v7 = vadd.f32 %v622_v25, %v453_v5 }
 0x22b   : > { %v1728_v40 = vpop.permute.xlu1 %1727 }
 0x22c   : > { %v1733_v6 = vadd.f32 %v1728_v40, %v1711_v39  ;;  %v2230_v39 = vadd.f32 %v4415_v63, %v4376_v50  ;;  %v1861_v50 = vadd.f32 %v4431_v35, %v4411_v44  ;;  %v1350_v63 = vadd.f32 %v1346_v46, %v4181_v31 }
 0x22d   : > { %v801_v24 = vpop.permute.xlu0 %800  ;;  %v1882_v44 = vadd.f32 %v4456_v20, %v1860_v23  ;;  %v2416_v31 = vadd.f32 %v4439_v3, %v4425_v29 }
 0x22e   : > { %1737 = vrot.lane.b32.xlu1 %v1733_v6, %s3072_s18  ;;  %v2245_v18 = vadd.f32 %v4433_v53, %v2230_v39  ;;  %v2266_v6 = vadd.f32 %v2261_v55, %v2244_v49  ;;  %v1883_v55 = vadd.f32 %v4451_v22, %v1861_v50  ;;  %v1352_v35 = vmul.f32 %v1350_v63, %v3273_v32 }
 0x22f   : > { %v1899_v16 = vpop.permute.xlu1 %1898  ;;  %v2438_v20 = vadd.f32 %v4460_v19, %v2416_v31  ;;  %v881_v63 = vstv %s2661_s21 }
 0x230   : > { %v2267_v33 = vadd.f32 %v2263_v34, %v2245_v18  ;;  %v2400_v34 = vadd.f32 %v4429_v28, %v4398_v2  ;;  %v1351_v2 = vmul.f32 %v1349_v14, %v3273_v32  ;;  %v1904_v28 = vadd.f32 %v1899_v16, %v1882_v44 }
 0x231   : > { %v1901_v13 = vpop.permute.xlu0 %1900  ;;  %v884_v31 = vmul.f32 %v881_v63, %v3301_v43 }
 0x232   : > { %v2415_v38 = vadd.f32 %v4446_v9, %v2400_v34  ;;  %v1905_v37 = vadd.f32 %v1901_v13, %v1883_v55  ;;  %v1906_v3 = vmul.f32 %v1904_v28, %v3273_v32 }
 0x233   : > { %v620_v15 = vpop.permute.xlu1 %619 }
 0x234   : > { %v625_v12 = vadd.f32 %v620_v15, %v452_v54  ;;  %v2437_v46 = vadd.f32 %v4470_v36, %v2415_v38  ;;  %v1907_v9 = vmul.f32 %v1905_v37, %v3273_v32  ;;  %v2889_v15 = vld [vmem:[%s3234_s17] sm:$0xff]  ;;  %v1418_v38 = vstv %s2694_s8 }
 0x235   : > { %v4491_v0 = vpop.permute.xlu0 %1184 }
 0x236   : > { %v806_v47 = vadd.f32 %v801_v24, %v625_v12 }
 0x237   : > { %v803_v30 = vpop.permute.xlu1 %802 }
 0x238   : > { %v807_v40 = vadd.f32 %v803_v30, %v626_v7  ;;  %v810_v51 = vadd.f32 %v809_v8, %v806_v47 }
 0x239   : > { %v2285_v25 = vpop.permute.xlu0 %2284 }
 0x23a   : > { %v811_v61 = vadd.f32 %v809_v8, %v807_v40  ;;  %v2655_v48 = vmul.f32 -1.442695, %v810_v51  ;;  %v2289_v11 = vadd.f32 %v2285_v25, %v2267_v33  ;;  %v2890_v8 = vld [vmem:[%s3234_s17 + $0x8] sm:$0xff] }
 0x23b   : > { %v2283_v53 = vpop.permute.xlu1 %2282 }
 0x23c   : > { %2854 = vpow2.f32 %v2655_v48  ;;  %v2656_v17 = vmul.f32 -1.442695, %v811_v61  ;;  %v2288_v59 = vadd.f32 %v2283_v53, %v2266_v6  ;;  %2294 = vrot.lane.b32.xlu0 %v2289_v11, %s3072_s18  ;;  %v882_v11 = vmul.f32 %v881_v63, %v3299_v42 }
 0x23d   : > { %v2456_v22 = vpop.permute.xlu0 %2455 }
 0x23e   : > { %2856 = vpow2.f32 %v2656_v17  ;;  %2292 = vrot.lane.b32.xlu1 %v2288_v59, %s3072_s18  ;;  %v2460_v21 = vadd.f32 %v2456_v22, %v2438_v20  ;;  %s4828_s18 = sshll.u32 %s3228_s25, 6  ;;  %v856_v17 = vstv %s2659_s12  ;;  %v883_v59 = vmul.f32 %v881_v63, %v3297_v41  ;;  %s3074_s12 = smov [#allocation11]  }
 0x23f   : > { %v4510_v1 = vpop.permute.xlu1 %1182  ;;  %s4530_s13 = scalar_lea.vmem [#allocation11], %s4828_s18  ;;  %v857_v28 = vmul.f32 %v856_v17, %v3299_v42  ;;  %v888_v37 = vrot.slane %v882_v11, 2  ;;  %v858_v20 = vmul.f32 %v856_v17, %v3297_v41  ;;  %v1966_v11 = vstv %s4580_s14  ;;  %s2975_s8 = sshll.u32 %s3074_s12, 4  ;;  %s2976_s8 = int_to_ptr.vmem [resolvable:$false] %s2975_s8 }
 0x240   : > { %1357 = vrot.lane.b32.xlu0 %v1352_v35, %s3073_s20  ;;  %v2462_v19 = vmul.f32 %v2460_v21, %v3273_v32  ;;  %v889_v22 = vrot.slane %v883_v59, 2  ;;  %v1436_v21 = vstv %s2695_s19  ;;  %s2513_s16 = sshll.u32 %s4530_s13, 4  ;;  %s2977_s19 = scalar_lea.vmem %s2976_s8, 2048  ;;  %s4687_s16 = int_to_ptr.vmem [resolvable:$true] %s2513_s16 }
 0x241   : > { %s2971_s21 = scalar_lea.vmem %s4687_s16, 1024  ;;  %p2978_p5 = scmp.lt.s32.totalorder %s4687_s16, %s2976_s8 }
 0x242   : > { %1355 = vrot.lane.b32.xlu1 %v1351_v2, %s3073_s20  ;;  %p2972_p6 = scmp.ne.s32.totalorder %s4687_s16, %s2971_s21  ;;  %p2979_p7 = scmp.lt.s32.totalorder %s2977_s19, %s2971_s21 }
 0x243   : > { %v2454_v29 = vpop.permute.xlu1 %2453 }
 0x244   : > { %v2459_v24 = vadd.f32 %v2454_v29, %v2437_v46  ;;  %1912 = vrot.lane.b32.xlu0 %v1907_v9, %s3073_s20  ;;  %v891_v29 = vrot.slane %v884_v31, 2  ;;  %v1421_v9 = vmul.f32 %v1418_v38, %v3339_v58  ;;  %p2973_p13 = pnand %p2972_p6, %p3200_p4  ;;  %p2980_p8 = por %p2979_p7, %p2978_p5 }
 0x246   : > { %1910 = vrot.lane.b32.xlu1 %v1906_v3, %s3073_s20  ;;  %v2461_v36 = vmul.f32 %v2459_v24, %v3273_v32  ;;  %v4536_v32 = vpop.permute.xlu0 %1461  ;;  %v1420_v3 = vmul.f32 %v1418_v38, %v3337_v57  ;;  %p2974_p3 = pneg %p2973_p13 }
 0x247   : > { %v4538_v4 = vpop.permute.xlu1 %1459 }
 0x248   : > { %2467 = vrot.lane.b32.xlu0 %v2462_v19, %s3073_s20  ;;  %p2981_p10 = pnand %p2980_p8, %p2974_p3 }
 0x249   : > { %v2855_v16 = vpop.eup %2854 }
 0x24a   : > { %v818_v52 = vadd.f32 1.0, %v2855_v16  ;;  %2465 = vrot.lane.b32.xlu1 %v2461_v36, %s3073_s20  ;;  %v4540_v7 = vpop.permute.xlu0 %2016  ;;  %s2660_s20 = sld [smem:[#allocation4 + $0x24]]  ;;  %v1973_v36 = vstv %s2728_s24  ;;  %v892_v16 = vsel %vm320_vm8, %v889_v22, %v891_v29 }
 0x24b   : > { %v2857_v62 = vpop.eup %2856  ;;  %v4542_v47 = vpop.permute.xlu1 %2014 }
 0x24c   : > { %v819_v54 = vadd.f32 1.0, %v2857_v62  ;;  %2858 = vrcp.f32 %v818_v52  ;;  %v1438_v52 = vmul.f32 %v1436_v21, %v3337_v57  ;;  %v1419_v62 = vmul.f32 %v1418_v38, %v3335_v56 }
 0x24e   : > { %2860 = vrcp.f32 %v819_v54  ;;  %v4544_v30 = vpop.permute.xlu0 %1483  ;;  %v1444_v17 = vrot.slane %v1438_v52, 2  ;;  %v1425_v59 = vrot.slane %v1419_v62, 1 }
 0x24f   : > { %v4546_v18 = vpop.permute.xlu1 %1481 }
 0x250   : > { %v863_v48 = vstv %s2660_s20  ;;  %s4685_s20 = scalar_lea.hbm %s4744_s5, %s2765_s11 }
 0x251   : > { %v864_v50 = vmul.f32 %v863_v48, %v3299_v42  ;;  %v865_v23 = vmul.f32 %v863_v48, %v3297_v41  ;;  %v866_v14 = vmul.f32 %v863_v48, %v3301_v43  ;;  %v890_v42 = vsel %vm320_vm8, %v888_v37, %v889_v22 }
 0x252   : > { %v4548_v49 = vpop.permute.xlu0 %2038  ;;  %v1411_v41 = vstv %s4570_s22  ;;  %v1991_v48 = vstv %s2729_s30 }
 0x253   : > { %v4550_v40 = vpop.permute.xlu1 %2036  ;;  %v870_v34 = vrot.slane %v864_v50, 1  ;;  %v871_v55 = vrot.slane %v865_v23, 1  ;;  %v873_v44 = vrot.slane %v866_v14, 1  ;;  %v1413_v63 = vmul.f32 %v1411_v41, %v3337_v57 }
 0x254   : > { %v1974_v14 = vmul.f32 %v4312_v27, %v1973_v36  ;;  %v1993_v38 = vmul.f32 %v4315_v26, %v1991_v48  ;;  %v1994_v22 = vmul.f32 %v4371_v60, %v1991_v48  ;;  %v1992_v57 = vmul.f32 %v4312_v27, %v1991_v48 }
 0x255   : > { %v872_v46 = vsel %vm301_vm7, %v870_v34, %v871_v55  ;;  %v874_v43 = vsel %vm301_vm7, %v871_v55, %v873_v44  ;;  %v1437_v34 = vmul.f32 %v1436_v21, %v3335_v56  ;;  %v4829_v55 = vld [vmem:[#allocation36_spill] sm:$0xff] }
 0x256   : > { %v4552_v51 = vpop.permute.xlu0 %1505  ;;  %v877_v24 = vadd.f32 %v872_v46, %v857_v28  ;;  %v878_v19 = vadd.f32 %v874_v43, %v858_v20  ;;  %v1412_v43 = vmul.f32 %v1411_v41, %v3335_v56  ;;  %v2001_v62 = vrot.slane %v1994_v22, 2  ;;  %v4832_v41 = vld [vmem:[#allocation43_spill] sm:$0xff] }
 0x257   : > { %v4554_v33 = vpop.permute.xlu1 %1503 }
 0x258   : > { %v895_v50 = vadd.f32 %v890_v42, %v877_v24  ;;  %v896_v23 = vadd.f32 %v892_v16, %v878_v19  ;;  %v1443_v42 = vrot.slane %v1437_v34, 2  ;;  %v1999_v16 = vrot.slane %v1993_v38, 2 }
 0x259   : > { %v2859_v13 = vpop.eup %2858 }
 0x25a   : > { %v824_v5 = vmul.f32 %v2889_v15, %v2859_v13  ;;  %v4556_v6 = vpop.permute.xlu0 %2060  ;;  %v1426_v15 = vrot.slane %v1420_v3, 1  ;;  %v911_v44 = vadd.f32 %v4829_v55, %v896_v23  ;;  %v1980_v3 = vrot.slane %v1974_v14, 1  ;;  %v4834_v55 = vld [vmem:[#allocation38_spill] sm:$0xff] }
 0x25b   : > { %v2861_v12 = vpop.eup %2860  ;;  %v4558_v61 = vpop.permute.xlu1 %2058  ;;  %v1445_v48 = vsel %vm320_vm8, %v1443_v42, %v1444_v17 }
 0x25c   : > { %v825_v39 = vmul.f32 %v2890_v8, %v2861_v12  ;;  %827 = vst.msk [vmem:[%s4530_s13] sm:$0xff] %vm826_vm9, %v824_v5  ;;  %v1428_v5 = vrot.slane %v1421_v9, 1  ;;  %v1439_v12 = vmul.f32 %v1436_v21, %v3339_v58  ;;  %v1975_v8 = vmul.f32 %v4315_v26, %v1973_v36  ;;  %v4830_v9 = vld [vmem:[#allocation35_spill] sm:$0xff] }
 0x25d   : > { %v933_v29 = vadd.f32 %v3968_v45, %v911_v44  ;;  %v910_v21 = vadd.f32 %v4830_v9, %v895_v50  ;;  %v1427_v24 = vsel %vm301_vm7, %v1425_v59, %v1426_v15  ;;  %v1998_v45 = vrot.slane %v1992_v57, 2 }
 0x25e   : > { %828 = vst.msk [vmem:[%s4530_s13 + $0x8] sm:$0xff] %vm826_vm9, %v825_v39  ;;  %v4563_v25 = vpop.permute.xlu0 %1520  ;;  %v1976_v39 = vmul.f32 %v4371_v60, %v1973_v36  ;;  %v1429_v58 = vsel %vm301_vm7, %v1426_v15, %v1428_v5  ;;  %v1446_v31 = vrot.slane %v1439_v12, 2  ;;  %v1981_v28 = vrot.slane %v1975_v8, 1  ;;  %v4831_v12 = vld [vmem:[#allocation44_spill] sm:$0xff] }
 0x25f   : > { %v4565_v53 = vpop.permute.xlu1 %1518  ;;  %v1433_v19 = vadd.f32 %v1429_v58, %v1413_v63  ;;  %v1968_v60 = vmul.f32 %v4315_v26, %v1966_v11  ;;  %v1967_v5 = vmul.f32 %v4312_v27, %v1966_v11  ;;  %v932_v56 = vadd.f32 %v4831_v12, %v910_v21  ;;  %v4833_v63 = vld [vmem:[#allocation47_spill] sm:$0xff] }
 0x260   : > { %v1983_v37 = vrot.slane %v1976_v39, 1  ;;  %v1447_v36 = vsel %vm320_vm8, %v1444_v17, %v1446_v31  ;;  %v955_v8 = vadd.f32 %v4832_v41, %v933_v29  ;;  %v1432_v39 = vadd.f32 %v1427_v24, %v1412_v43  ;;  %v4835_v31 = vld [vmem:[#allocation37_spill] sm:$0xff] }
 0x261   : > { %v1982_v15 = vsel %vm301_vm7, %v1980_v3, %v1981_v28  ;;  %v954_v26 = vadd.f32 %v4833_v63, %v932_v56  ;;  %v1451_v14 = vadd.f32 %v1447_v36, %v1433_v19  ;;  %v2002_v27 = vsel %vm320_vm8, %v1999_v16, %v2001_v62  ;;  %v4836_v43 = vld [vmem:[#allocation45_spill] sm:$0xff]  ;;  %v4837_v19 = vld [vmem:[#allocation48_spill] sm:$0xff] }
 0x262   : > { %v4572_v35 = vpop.permute.xlu0 %2075  ;;  %v1984_v52 = vsel %vm301_vm7, %v1981_v28, %v1983_v37  ;;  %v1987_v34 = vadd.f32 %v1982_v15, %v1967_v5  ;;  %v970_v44 = vadd.f32 %v4834_v55, %v955_v8  ;;  %v1450_v11 = vadd.f32 %v1445_v48, %v1432_v39  ;;  %v4839_v5 = vld [vmem:[#allocation49_spill] sm:$0xff] }
 0x263   : > { %v4574_v2 = vpop.permute.xlu1 %2073  ;;  %v1988_v59 = vadd.f32 %v1984_v52, %v1968_v60  ;;  %v2000_v58 = vsel %vm320_vm8, %v1998_v45, %v1999_v16  ;;  %v969_v38 = vadd.f32 %v4835_v31, %v954_v26  ;;  %v1466_v28 = vadd.f32 %v4536_v32, %v1451_v14 }
 0x264   : > { %v1465_v17 = vadd.f32 %v4538_v4, %v1450_v11  ;;  %v2005_v22 = vadd.f32 %v2000_v58, %v1987_v34  ;;  %v992_v3 = vadd.f32 %v4836_v43, %v970_v44  ;;  %v1364_v48 = vstv %s4638_s7 }
 0x265   : > { %v2006_v37 = vadd.f32 %v2002_v27, %v1988_v59  ;;  %v1488_v9 = vadd.f32 %v4544_v30, %v1466_v28  ;;  %v991_v36 = vadd.f32 %v4837_v19, %v969_v38  ;;  %v4838_v30 = vld [vmem:[#allocation46_spill] sm:$0xff]  ;;  %v1919_v44 = vstv %s4650_s9 }
 0x266   : > { %v4589_v54 = vpop.permute.xlu0 %1542  ;;  %v1487_v21 = vadd.f32 %v4546_v18, %v1465_v17  ;;  %v2020_v42 = vadd.f32 %v4542_v47, %v2005_v22  ;;  %v1014_v18 = vadd.f32 %v4838_v30, %v992_v3 }
 0x267   : > { %v4591_v13 = vpop.permute.xlu1 %1540  ;;  %v2021_v24 = vadd.f32 %v4540_v7, %v2006_v37  ;;  %v1510_v32 = vadd.f32 %v4552_v51, %v1488_v9  ;;  %v1013_v7 = vadd.f32 %v4839_v5, %v991_v36 }
 0x268   : > { %v1509_v4 = vadd.f32 %v4554_v33, %v1487_v21  ;;  %v2042_v16 = vadd.f32 %v4550_v40, %v2020_v42 }
 0x269   : > { %v2043_v60 = vadd.f32 %v4548_v49, %v2021_v24  ;;  %v1525_v47 = vadd.f32 %v4563_v25, %v1510_v32  ;;  %v1016_v25 = vmul.f32 %v1014_v18, %v4827_v10 }
 0x26a   : > { %v4605_v20 = vpop.permute.xlu0 %2097  ;;  %v1524_v45 = vadd.f32 %v4565_v53, %v1509_v4  ;;  %v2064_v33 = vadd.f32 %v4558_v61, %v2042_v16  ;;  %v1015_v53 = vmul.f32 %v1013_v7, %v4827_v10 }
 0x26b   : > { %v4607_v46 = vpop.permute.xlu1 %2095  ;;  %v2065_v51 = vadd.f32 %v4556_v6, %v2043_v60  ;;  %v1547_v49 = vadd.f32 %v4589_v54, %v1525_v47 }
 0x26c   : > { %v1546_v40 = vadd.f32 %v4591_v13, %v1524_v45  ;;  %v2079_v56 = vadd.f32 %v4574_v2, %v2064_v33  ;;  %v1189_v13 = vadd.f32 %v4491_v0, %v1016_v25 }
 0x26d   : > { %v2080_v12 = vadd.f32 %v4572_v35, %v2065_v51  ;;  %v1188_v35 = vadd.f32 %v4510_v1, %v1015_v53  ;;  %v2893_v53 = vld [vmem:[%s3234_s17 + $0x28] sm:$0xff] }
 0x26e   : > { %v1565_v50 = vpop.permute.xlu0 %1564  ;;  %v2101_v54 = vadd.f32 %v4607_v46, %v2079_v56  ;;  %v2892_v56 = vld [vmem:[%s3234_s17 + $0x10] sm:$0xff] }
 0x26f   : > { %v1563_v23 = vpop.permute.xlu1 %1562  ;;  %v1569_v6 = vadd.f32 %v1565_v50, %v1547_v49  ;;  %v2102_v61 = vadd.f32 %v4605_v20, %v2080_v12 }
 0x270   : > { %v1568_v39 = vadd.f32 %v1563_v23, %v1546_v40  ;;  %v2891_v40 = vld [vmem:[%s3234_s17 + $0x18] sm:$0xff] }
 0x271   : > { %v1571_v14 = vmul.f32 %v1569_v6, %v4827_v10 }
 0x272   : > { %v2120_v57 = vpop.permute.xlu0 %2119  ;;  %v1570_v50 = vmul.f32 %v1568_v39, %v4827_v10  ;;  %v2894_v39 = vld [vmem:[%s3234_s17 + $0x20] sm:$0xff] }
 0x273   : > { %v2118_v29 = vpop.permute.xlu1 %2117  ;;  %v2124_v15 = vadd.f32 %v2120_v57, %v2102_v61 }
 0x274   : > { %v2123_v2 = vadd.f32 %v2118_v29, %v2101_v54  ;;  %v2474_v29 = vstv %s4659_s3 }
 0x275   : > { %v2126_v1 = vmul.f32 %v2124_v15, %v4827_v10 }
 0x276   : > { %v2125_v55 = vmul.f32 %v2123_v2, %v4827_v10  ;;  %v2896_v2 = vld [vmem:[%s3234_s17 + $0x30] sm:$0xff] }
 0x29a   : > { %v1740_v52 = vpop.permute.xlu0 %1739 }
 0x29b   : > { %v1744_v59 = vadd.f32 %v1740_v52, %v1571_v14 }
 0x2a0   : > { %v1738_v62 = vpop.permute.xlu1 %1737 }
 0x2a1   : > { %v1743_v46 = vadd.f32 %v1738_v62, %v1570_v50 }
 0x2ae   : > { %v2295_v41 = vpop.permute.xlu0 %2294 }
 0x2af   : > { %v2299_v17 = vadd.f32 %v2295_v41, %v2126_v1 }
 0x2b0   : > { %v2293_v8 = vpop.permute.xlu1 %2292 }
 0x2b1   : > { %v2298_v37 = vadd.f32 %v2293_v8, %v2125_v55 }
 0x2b2   : > { %v1358_v63 = vpop.permute.xlu0 %1357 }
 0x2b3   : > { %v1362_v23 = vadd.f32 %v1358_v63, %v1189_v13 }
 0x2b4   : > { %v1356_v26 = vpop.permute.xlu1 %1355 }
 0x2b5   : > { %v1361_v20 = vadd.f32 %v1356_v26, %v1188_v35  ;;  %v1366_v34 = vadd.f32 %v1364_v48, %v1362_v23  ;;  %v2895_v35 = vld [vmem:[%s3234_s17 + $0x38] sm:$0xff] }
 0x2b6   : > { %v1913_v27 = vpop.permute.xlu0 %1912 }
 0x2b7   : > { %v1365_v0 = vadd.f32 %v1364_v48, %v1361_v20  ;;  %v2688_v58 = vmul.f32 -1.442695, %v1366_v34  ;;  %v1917_v38 = vadd.f32 %v1913_v27, %v1744_v59 }
 0x2b8   : > { %v1911_v11 = vpop.permute.xlu1 %1910 }
 0x2b9   : > { %v2687_v31 = vmul.f32 -1.442695, %v1365_v0  ;;  %v1916_v28 = vadd.f32 %v1911_v11, %v1743_v46  ;;  %2862 = vpow2.f32 %v2688_v58  ;;  %v1921_v22 = vadd.f32 %v1919_v44, %v1917_v38 }
 0x2ba   : > { %v2468_v43 = vpop.permute.xlu0 %2467 }
 0x2bb   : > { %v1920_v57 = vadd.f32 %v1919_v44, %v1916_v28  ;;  %2864 = vpow2.f32 %v2687_v31  ;;  %v2722_v9 = vmul.f32 -1.442695, %v1921_v22  ;;  %v2472_v24 = vadd.f32 %v2468_v43, %v2299_v17 }
 0x2bc   : > { %v2466_v3 = vpop.permute.xlu1 %2465 }
 0x2bd   : > { %v2721_v21 = vmul.f32 -1.442695, %v1920_v57  ;;  %v2471_v10 = vadd.f32 %v2466_v3, %v2298_v37  ;;  %2866 = vpow2.f32 %v2722_v9  ;;  %v2476_v42 = vadd.f32 %v2474_v29, %v2472_v24 }
 0x2bf   : > { %v2475_v19 = vadd.f32 %v2474_v29, %v2471_v10  ;;  %2868 = vpow2.f32 %v2721_v21  ;;  %v2756_v36 = vmul.f32 -1.442695, %v2476_v42 }
 0x2c1   : > { %v2755_v32 = vmul.f32 -1.442695, %v2475_v19  ;;  %2870 = vpow2.f32 %v2756_v36 }
 0x2c3   : > { %2872 = vpow2.f32 %v2755_v32 }
 0x2c6   : > { %v2863_v4 = vpop.eup %2862 }
 0x2c7   : > { %v1374_v16 = vadd.f32 1.0, %v2863_v4 }
 0x2c8   : > { %v2865_v60 = vpop.eup %2864 }
 0x2c9   : > { %v1373_v52 = vadd.f32 1.0, %v2865_v60  ;;  %2874 = vrcp.f32 %v1374_v16 }
 0x2ca   : > { %v2867_v62 = vpop.eup %2866 }
 0x2cb   : > { %2876 = vrcp.f32 %v1373_v52  ;;  %v1929_v18 = vadd.f32 1.0, %v2867_v62 }
 0x2cc   : > { %v2869_v30 = vpop.eup %2868 }
 0x2cd   : > { %v1928_v5 = vadd.f32 1.0, %v2869_v30  ;;  %2878 = vrcp.f32 %v1929_v18 }
 0x2ce   : > { %v2871_v7 = vpop.eup %2870 }
 0x2cf   : > { %2880 = vrcp.f32 %v1928_v5  ;;  %v2484_v45 = vadd.f32 1.0, %v2871_v7 }
 0x2d0   : > { %v2873_v47 = vpop.eup %2872 }
 0x2d1   : > { %v2483_v51 = vadd.f32 1.0, %v2873_v47  ;;  %2882 = vrcp.f32 %v2484_v45 }
 0x2d3   : > { %2884 = vrcp.f32 %v2483_v51 }
 0x2d6   : > { %v2875_v33 = vpop.eup %2874 }
 0x2d7   : > { %v1380_v12 = vmul.f32 %v2891_v40, %v2875_v33 }
 0x2d8   : > { %v2877_v49 = vpop.eup %2876 }
 0x2d9   : > { %v1379_v41 = vmul.f32 %v2892_v56, %v2877_v49  ;;  %2690 = vst.msk [vmem:[%s4530_s13 + $0x18] sm:$0xff] %vm826_vm9, %v1380_v12 }
 0x2da   : > { %v2879_v8 = vpop.eup %2878 }
 0x2db   : > { %2689 = vst.msk [vmem:[%s4530_s13 + $0x10] sm:$0xff] %vm826_vm9, %v1379_v41  ;;  %v1935_v6 = vmul.f32 %v2893_v53, %v2879_v8 }
 0x2dc   : > { %v2881_v25 = vpop.eup %2880 }
 0x2dd   : > { %v1934_v61 = vmul.f32 %v2894_v39, %v2881_v25  ;;  %2724 = vst.msk [vmem:[%s4530_s13 + $0x28] sm:$0xff] %vm826_vm9, %v1935_v6 }
 0x2de   : > { %v2883_v54 = vpop.eup %2882 }
 0x2df   : > { %2723 = vst.msk [vmem:[%s4530_s13 + $0x20] sm:$0xff] %vm826_vm9, %v1934_v61  ;;  %v2490_v15 = vmul.f32 %v2895_v35, %v2883_v54 }
 0x2e0   : > { %v2885_v13 = vpop.eup %2884 }
 0x2e1   : > { %v2489_v48 = vmul.f32 %v2896_v2, %v2885_v13  ;;  %2758 = vst.msk [vmem:[%s4530_s13 + $0x38] sm:$0xff] %vm826_vm9, %v2490_v15 }
 0x2e3   : > { %2757 = vst.msk [vmem:[%s4530_s13 + $0x30] sm:$0xff] %vm826_vm9, %v2489_v48 }
 0x2e4   : > { %2984 = shalt.err (!%p2981_p10)
}
 0x2e5   : > { %s2985_s17 = scalar_lea.hbm %s4685_s20, 1024  ;;  %s2989_s22 = scalar_lea.hbm %s4744_s5, 2048 }
 0x2e6   : > { %p2986_p12 = scmp.ne.s32.totalorder %s4685_s20, %s2985_s17  ;;  %p2990_p0 = scmp.lt.s32.totalorder %s4685_s20, %s4744_s5 }
 0x2e7   : > { %p2991_p2 = scmp.lt.s32.totalorder %s2989_s22, %s2985_s17 }
 0x2e8   : > { %p2987_p11 = pnand %p2986_p12, %p3200_p4 }
 0x2e9   : > { %p2992_p1 = por %p2991_p2, %p2990_p0 }
 0x2ea   : > { %p2988_p9 = pneg %p2987_p11 }
 0x2ec   : > { %p2993_p6 = pnand %p2992_p1, %p2988_p9 }
 0x2ee   : > { %2996 = shalt.err (!%p2993_p6)
}
 0x2ef   : > { %s3075_s7 = smov 128   ;;  %s3076_s9 = smov 8  }
 0x2f0   : > { %2772 = dma.vmem_to_hbm [thread:$0]  (%p3200_p4), %s4687_s16, 1024, %s4685_s20, %s2495_s27, %s3075_s7, %s3075_s7, %s3076_s9  }
 0x2f1 PF: > { %s2528_s3 = sand.u32 1, %s3037_s0   ;;  %p4840_p13 = scmp.ne.s32.totalorder %s4758_s10, 0 }
 0x2f2   : > { %p4841_p3 = scmp.ge.s32.totalorder %s3057_s29, 2  ;;  %s2529_s11 = scalar_lea.sflag [#allocation8], %s2528_s3 }
 0x2f4   : > { %p2783_p5 = pnand %p4841_p3, %p4840_p13 }
 0x2f6   : > { %p2784_p7 = pneg %p2783_p5 }
 0x2f8   : > { %3032 = dma.done.wait (%p2784_p7), %s2529_s11, 1024  }
 0x2f9   : > { %3034 = vsyncadd (%p2784_p7), %s2529_s11, 4294966272  ;;  %s30_s29 = sadd.s32 1, %s3057_s29   ;;  %s4842_s0 = smov %s3041_s1 }
 0x2fa   : > { %p27_p8 = scmp.ge.s32.totalorder %s30_s29, 4   ;;  %s4843_s1 = smov %s3045_s26 }
 0x2fb   : > { %s4844_s26 = smov %s3209_s6  ;;  %s4845_s27 = smov %s3053_s28 }
 0x2fc   : > { %s4846_s28 = smov %s4848_s15  ;;  %29 = sbr.rel (!%p27_p8) target bundleno = 24 (0x18), region = 90 }
 0x301   :  { %2534 = vsyncpa [#allocation7], 1 }
 0x302   :  { %2536 = vsyncpa [#allocation7 + $0x1], 1 }
 0x303   :  { %2537 = vsyncpa [#allocation10], 1 }
 0x304   :  { %2538 = vsyncpa [#allocation8], 1 }
 0x305   :  { %2540 = vsyncpa [#allocation8 + $0x1], 1 }

</bundles_post_ra>
